<compile_context>
chip_gen: v5e
topology: v5e:2x2
jax: 0.10.0
libtpu: 0.0.40
codegen_flags: <defaults>
</compile_context>

<pallas_src>
import math
import numpy as np
import jax
import jax.numpy as jnp
from jax import lax
from jax.experimental import pallas as pl
from jax.experimental.pallas import tpu as pltpu


# ----------------------------------------------------------------------------
# fixed structure (placeholders for classes whose source was not provided)
# ----------------------------------------------------------------------------

def _build_pool_matrices(V):
    # TODO(synk): Down_Joint2Part / Down_Part2Body / Up_Body2Part / Up_Part2Joint
    # sources were not provided; implemented as fixed pooling (mean) / unpooling
    # (copy) matmuls over the joint axis: 25 joints -> 10 parts -> 5 body parts.
    group_sizes = [3, 3, 3, 3, 3, 2, 2, 2, 2, 2]      # sums to 25
    assert sum(group_sizes) == V and len(group_sizes) == 10
    M_j2p = np.zeros((V, 10), np.float32)
    M_p2j = np.zeros((10, V), np.float32)
    j = 0
    for p_idx, gsz in enumerate(group_sizes):
        for _ in range(gsz):
            M_j2p[j, p_idx] = 1.0 / gsz
            M_p2j[p_idx, j] = 1.0
            j += 1
    M_p2b = np.zeros((10, 5), np.float32)
    M_b2p = np.zeros((5, 10), np.float32)
    for p_idx in range(10):
        b_idx = p_idx // 2
        M_p2b[p_idx, b_idx] = 0.5
        M_b2p[b_idx, p_idx] = 1.0
    return (jnp.asarray(M_j2p), jnp.asarray(M_p2j),
            jnp.asarray(M_p2b), jnp.asarray(M_b2p))


def _build_pe(C, V):
    # TODO(synk): PositionalEncoding source not provided; standard DSTA-Net-style
    # 'spatial' sinusoidal PE (depends only on joint index and channel).
    pos = jnp.arange(V, dtype=jnp.float32)
    div = jnp.exp(jnp.arange(0, C, 2, dtype=jnp.float32) * (-math.log(10000.0) / C))
    ang = pos[None, :] * div[:, None]                 # (C//2, V)
    pe = jnp.zeros((C, V), jnp.float32)
    pe = pe.at[0::2, :].set(jnp.sin(ang))
    pe = pe.at[1::2, :].set(jnp.cos(ang))
    return pe                                          # (C, V)


# ----------------------------------------------------------------------------
# parameters
# ----------------------------------------------------------------------------

def init_params(key, C_in, C_out, T, V):
    S, K = 3, 9
    inter = C_out // 4
    d = C_out // 2
    counter = [0]

    def nrm(shape, std=0.1):
        counter[0] += 1
        return std * jax.random.normal(jax.random.fold_in(key, counter[0]),
                                       shape, jnp.float32)

    p = {}
    p['A_joint'] = nrm((S, V, V), 0.2)
    p['PA_joint'] = jnp.full((S, V, V), 1e-6, jnp.float32)
    p['A_part'] = nrm((S, 10, 10), 0.2)
    p['PA_part'] = jnp.full((S, 10, 10), 1e-6, jnp.float32)
    p['A_body'] = nrm((S, 5, 5), 0.2)
    p['PA_body'] = jnp.full((S, 5, 5), 1e-6, jnp.float32)
    p['G_part'] = nrm((V, V), 0.2)
    p['G_body'] = nrm((V, V), 0.2)
    p['Wj'] = nrm((S, C_out, C_in), math.sqrt(2.0 / (C_out * S)))
    p['bj'] = jnp.zeros((S, C_out), jnp.float32)
    p['Wp'] = nrm((S, C_out, C_in), math.sqrt(2.0 / C_out))
    p['bp'] = jnp.zeros((S, C_out), jnp.float32)
    p['Wb'] = nrm((S, C_out, C_in), math.sqrt(2.0 / C_out))
    p['bb'] = jnp.zeros((S, C_out), jnp.float32)
    p['W_theta'] = nrm((inter, C_in), math.sqrt(2.0 / inter))
    p['b_theta'] = jnp.zeros((inter,), jnp.float32)
    p['W_phi'] = nrm((inter, C_in), math.sqrt(2.0 / inter))
    p['b_phi'] = jnp.zeros((inter,), jnp.float32)
    p['W_nl'] = nrm((C_out, C_in), math.sqrt(2.0 / C_out))
    p['b_nl'] = jnp.zeros((C_out,), jnp.float32)
    p['W_gp'] = nrm((C_out, C_in), math.sqrt(2.0 / C_out))
    p['b_gp'] = jnp.zeros((C_out,), jnp.float32)
    p['W_gb'] = nrm((C_out, C_in), math.sqrt(2.0 / C_out))
    p['b_gb'] = jnp.zeros((C_out,), jnp.float32)
    p['W_fc'] = nrm((d, C_out), 0.1)
    p['b_fc'] = nrm((d,), 0.1)
    p['W_fcb'] = nrm((3, C_out, d), 0.1)
    p['b_fcb'] = nrm((3, C_out), 0.1)
    p['bn_gcn_gamma'] = jnp.full((C_out,), 1e-6, jnp.float32)   # bn_init(self.bn, 1e-6)
    p['bn_gcn_beta'] = jnp.zeros((C_out,), jnp.float32)
    p['bn_tcn_gamma'] = jnp.ones((C_out,), jnp.float32)
    p['bn_tcn_beta'] = jnp.zeros((C_out,), jnp.float32)
    p['W_tcn'] = nrm((9, C_out, C_out), math.sqrt(2.0 / (C_out * 9)))
    p['b_tcn'] = jnp.zeros((C_out,), jnp.float32)
    p['M_j2p'], p['M_p2j'], p['M_p2b'], p['M_b2p'] = _build_pool_matrices(V)
    p['pe'] = _build_pe(C_in, V)
    return p


# ----------------------------------------------------------------------------
# forward
# ----------------------------------------------------------------------------

def tcn_gcn_unit_forward(x, p):
    # x: (N, C, T, V) float32.  in_channels == out_channels, stride == 1 ->
    # unit_gcn.down and TCN_GCN_unit.residual are identities.
    N, C, T, V = x.shape
    S = p['A_joint'].shape[0]
    Cout = p['Wj'].shape[1]
    inter = p['W_theta'].shape[0]
    K = p['W_tcn'].shape[0]
    assert C == Cout, "identity residual requires in_channels == out_channels"
    CT = C * T
    IT = inter * T
    NV = N * V
    Pn = p['M_j2p'].shape[1]
    Bn = p['M_p2b'].shape[1]
    NP_, NB_ = N * Pn, N * Bn
    eps = 1e-5
    f32, bf16 = jnp.float32, jnp.bfloat16

    # ------------- host-side (XLA) weight / structure preprocessing (tiny) ----------
    eyeT = jnp.eye(T, dtype=f32)
    kron_T = lambda w: jnp.kron(w, eyeT)                 # 1x1 conv -> right-mult weight
    rep_T = lambda b: jnp.repeat(b, T)[None, :]          # per-channel -> (1, C*T) row
    bd = lambda m: jnp.kron(jnp.eye(N, dtype=f32), m)    # block-diagonal over batch

    A_joint = p['A_joint'] + p['PA_joint']
    A_part = p['A_part'] + p['PA_part']
    A_body = p['A_body'] + p['PA_body']
    Mj2pT, Mp2jT = p['M_j2p'].T, p['M_p2j'].T
    Mp2bT, Mb2pT = p['M_p2b'].T, p['M_b2p'].T

    # One "structure" matrix: all graph / pooling / hypergraph matmuls collapse
    # into a single (RZ, N*V) @ (N*V, C*T) dot in-kernel.  Sections are padded to
    # multiples of 8 rows so every in-kernel slice is sublane-aligned.
    sec = ([bd(A_joint[s].T) for s in range(S)]
           + [bd(A_part[s].T @ Mj2pT) for s in range(S)]
           + [bd(A_body[s].T @ Mp2bT @ Mj2pT) for s in range(S)]
           + [bd(p['G_part'].T), bd(p['G_body'].T)])
    parts, offs, cur = [], [], 0
    for m in sec:
        offs.append(cur)
        r = m.shape[0]
        padr = (-r) % 8
        parts.append(jnp.pad(m, ((0, padr), (0, 0))))
        cur += r + padr
    sbig = jnp.concatenate(parts, axis=0)                        # (RZ, NV) f32
    OJ, OP, OB = tuple(offs[0:3]), tuple(offs[3:6]), tuple(offs[6:9])
    OGP, OGB = offs[9], offs[10]

    # 1x1 convs as lane-dense right-multiplications; the 3 subsets of each level
    # are vstacked so one level is ONE dot with contraction depth 3*C*T.
    lvl_w = lambda W: jnp.concatenate([kron_T(W[s].T) for s in range(S)], axis=0)
    w_lvl = jnp.stack([lvl_w(p['Wj']), lvl_w(p['Wp']),
                       lvl_w(p['Wb'])]).astype(bf16)             # (3, 3*CT, CT)
    w_oth = jnp.stack([kron_T(p['W_gp'].T), kron_T(p['W_gb'].T),
                       kron_T(p['W_nl'].T)]).astype(bf16)        # (3, CT, CT)
    w_tp = jnp.stack([kron_T(p['W_theta'].T),
                      kron_T(p['W_phi'].T)]).astype(bf16)        # (2, CT, IT)

    # TODO(synk): kron / banded weights are O((C*T)^2) -- fine at toy size only.
    padk = (K - 1) // 2
    wbig = sum(jnp.kron(p['W_tcn'][k], jnp.eye(T, T, k - padk, dtype=f32))
               for k in range(K))
    w_tcn = wbig.T.astype(bf16)                                  # (CT, CT)

    upp = bd(Mp2jT)                                              # (NV, N*10)
    upb = bd(Mp2jT @ Mb2pT)                                      # (NV, N*5)
    pe_plane = jnp.tile(jnp.repeat(p['pe'].T, T, axis=1), (N, 1))  # (NV, CT)

    bias6 = jnp.stack([rep_T(p['bj'].sum(0)), rep_T(p['bp'].sum(0)),
                       rep_T(p['bb'].sum(0)), rep_T(p['b_gp']),
                       rep_T(p['b_gb']), rep_T(p['b_nl'])])      # (6, 1, CT)
    btp = jnp.stack([rep_T(p['b_theta']), rep_T(p['b_phi'])])    # (2, 1, IT)
    btcn = rep_T(p['b_tcn'])                                     # (1, CT)

    eexp = jnp.kron(jnp.eye(Cout, dtype=f32), jnp.ones((1, T), f32))   # (Cout, CT)
    rowsel = jnp.kron(jnp.eye(N, dtype=f32), jnp.ones((1, V), f32))    # (N, NV)

    wfc, bfc = p['W_fc'], p['b_fc'][None, :]                     # (d,Cout), (1,d)
    wfcb, bfcb = p['W_fcb'], p['b_fcb'][:, None, :]              # (3,Cout,d), (3,1,Cout)
    bnpar = jnp.stack([p['bn_gcn_gamma'], p['bn_gcn_beta'],
                       p['bn_tcn_gamma'], p['bn_tcn_beta']])[:, None, :]  # (4,1,Cout)

    x2d = x.transpose(0, 3, 1, 2).reshape(NV, CT)                # lane-dense layout

    inv_K = 1.0 / float(IT)
    inv_TV = 1.0 / float(T * V)
    inv_NTV = 1.0 / float(N * T * V)

    # =========================  the fused kernel  ================================
    def kernel(x_ref, sbig_ref, wlvl_ref, woth_ref, wtp_ref, wtcn_ref,
               upp_ref, upb_ref, pe_ref, bias_ref, btp_ref, btcn_ref,
               eexp_ref, rowsel_ref, wfc_ref, bfc_ref, wfcb_ref, bfcb_ref,
               bn_ref, o_ref):

        def dot(a, b):
            return jnp.dot(a, b, preferred_element_type=f32)

        def dot_t(a, b):            # a (m,k) x b (n,k) -> (m,n)
            return lax.dot_general(a, b, (((1,), (1,)), ((), ())),
                                   preferred_element_type=f32)

        def dot_l(a, b):            # a (k,m) x b (k,n) -> (m,n)
            return lax.dot_general(a, b, (((0,), (0,)), ((), ())),
                                   preferred_element_type=f32)

        xx = x_ref[...]                                          # (NV, CT) f32
        eex = eexp_ref[...]                                      # (Cout, CT)
        rsel = rowsel_ref[...]                                   # (N, NV)

        # ---- all graph / pooling / hypergraph matmuls: ONE structural dot ----
        z = dot(sbig_ref[...], xx)                               # (RZ, CT) f32
        zb = z.astype(bf16)                                      # cast once, slice after

        def branch(offsets, rows, w):                            # fused 3-subset conv
            zc = jnp.concatenate([zb[o:o + rows] for o in offsets], axis=1)
            return dot(zc, w)                                    # contraction 3*CT

        x_joint = branch(OJ, NV, wlvl_ref[0]) + bias_ref[0]                  # (NV, CT)
        x_part = dot(upp_ref[...], branch(OP, NP_, wlvl_ref[1]) + bias_ref[1])
        x_body = dot(upb_ref[...], branch(OB, NB_, wlvl_ref[2]) + bias_ref[2])
        x_part = x_part + dot(zb[OGP:OGP + NV], woth_ref[0]) + bias_ref[3]
        x_body = x_body + dot(zb[OGB:OGB + NV], woth_ref[1]) + bias_ref[4]

        # ---- non-local attention (softmax over source joints, per sample) ----
        xpe = (xx + pe_ref[...]).astype(bf16)
        theta = dot(xpe, wtp_ref[0]) + btp_ref[0]                # (NV, IT)
        phi = dot(xpe, wtp_ref[1]) + btp_ref[1]                  # (NV, IT)
        blk = dot_l(rsel, rsel)                                  # same-sample block mask
        logits = jnp.where(blk > 0.5, dot_t(phi, theta) * inv_K, -1e30)
        lmax = jnp.max(logits, axis=-1, keepdims=True)
        lexp = jnp.exp(logits - lmax)
        att = lexp * pl.reciprocal(jnp.sum(lexp, axis=-1, keepdims=True),
                                   approx=True)                  # (NV, NV)
        x_nl = dot(dot(att, xx).astype(bf16), woth_ref[2]) + bias_ref[5]

        # ---- SKNet-style branch selection ----
        x_sum = x_joint + x_part + x_body
        glo = dot_t(dot(rsel, x_sum), eex) * inv_TV              # (N, Cout)
        fz = dot_t(glo, wfc_ref[...]) + bfc_ref[...]             # (N, d)
        l0 = dot_t(fz, wfcb_ref[0]) + bfcb_ref[0]                # (N, Cout)
        l1 = dot_t(fz, wfcb_ref[1]) + bfcb_ref[1]
        l2 = dot_t(fz, wfcb_ref[2]) + bfcb_ref[2]
        lm = jnp.maximum(jnp.maximum(l0, l1), l2)
        e0, e1, e2 = jnp.exp(l0 - lm), jnp.exp(l1 - lm), jnp.exp(l2 - lm)
        inv_den = pl.reciprocal(e0 + e1 + e2, approx=True)

        def amap(e):                                             # (N,Cout) -> (NV,CT)
            return dot_l(rsel, dot(e * inv_den, eex))

        y = amap(e0) * x_joint + amap(e1) * x_part + amap(e2) * x_body + x_nl

        # ---- BatchNorm (training-mode batch stats) fully in-kernel ----
        def bn(v, gamma, beta):
            cs = jnp.sum(v, axis=0, keepdims=True)               # (1, CT)
            css = jnp.sum(v * v, axis=0, keepdims=True)
            mc = dot_t(cs, eex) * inv_NTV                        # (1, Cout)
            vc = dot_t(css, eex) * inv_NTV - mc * mc
            ac = gamma * lax.rsqrt(vc + eps)
            bc = beta - mc * ac
            return v * dot(ac, eex) + dot(bc, eex)

        g = jnp.maximum(bn(y, bn_ref[0], bn_ref[1]) + xx, 0.0)   # unit_gcn output

        # ---- 9x1 temporal conv (banded weight, one dot) + BN + residual + ReLU ----
        t = dot(g.astype(bf16), wtcn_ref[...]) + btcn_ref[...]
        o_ref[...] = jnp.maximum(bn(t, bn_ref[2], bn_ref[3]) + xx, 0.0)

    out2d = pl.pallas_call(
        kernel,
        out_shape=jax.ShapeDtypeStruct((NV, CT), jnp.float32),
    )(x2d, sbig, w_lvl, w_oth, w_tp, w_tcn, upp, upb, pe_plane,
      bias6, btp, btcn, eexp, rowsel, wfc, bfc, wfcb, bfcb, bnpar)

    return out2d.reshape(N, V, C, T).transpose(0, 2, 3, 1)       # (N, C, T, V)


# ----------------------------------------------------------------------------
if __name__ == "__main__":
    key = jax.random.PRNGKey(0)
    N, C, T, V = 2, 8, 16, 25          # in_channels == out_channels == 8, 25 joints
    x = jax.random.normal(jax.random.fold_in(key, 1000), (N, C, T, V), jnp.float32)
    params = init_params(key, C, C, T, V)

    fwd = jax.jit(tcn_gcn_unit_forward)
    y = fwd(x, params)
    y = jax.block_until_ready(y)

    assert y.shape == (N, C, T, V), y.shape
    assert bool(jnp.all(jnp.isfinite(y)))
    assert bool(jnp.all(y >= 0.0))      # final ReLU
    print("KERNEL_OK")
</pallas_src>

<mosaic_0001>
module attributes {stable_mosaic.version = 11 : i64} {
  func.func @kernel(%arg0: memref<50x128xf32, #tpu.memory_space<vmem>>, %arg1: memref<400x50xf32, #tpu.memory_space<vmem>>, %arg2: memref<3x384x128xbf16, #tpu.memory_space<vmem>>, %arg3: memref<3x128x128xbf16, #tpu.memory_space<vmem>>, %arg4: memref<2x128x32xbf16, #tpu.memory_space<vmem>>, %arg5: memref<128x128xbf16, #tpu.memory_space<vmem>>, %arg6: memref<50x20xf32, #tpu.memory_space<vmem>>, %arg7: memref<50x10xf32, #tpu.memory_space<vmem>>, %arg8: memref<50x128xf32, #tpu.memory_space<vmem>>, %arg9: memref<6x1x128xf32, #tpu.memory_space<vmem>>, %arg10: memref<2x1x32xf32, #tpu.memory_space<vmem>>, %arg11: memref<1x128xf32, #tpu.memory_space<vmem>>, %arg12: memref<8x128xf32, #tpu.memory_space<vmem>>, %arg13: memref<2x50xf32, #tpu.memory_space<vmem>>, %arg14: memref<4x8xf32, #tpu.memory_space<vmem>>, %arg15: memref<1x4xf32, #tpu.memory_space<vmem>>, %arg16: memref<3x8x4xf32, #tpu.memory_space<vmem>>, %arg17: memref<3x1x8xf32, #tpu.memory_space<vmem>>, %arg18: memref<4x1x8xf32, #tpu.memory_space<vmem>>, %arg19: memref<50x128xf32, #tpu.memory_space<vmem>>) attributes {dimension_semantics = [], scalar_prefetch = 0 : i64, scratch_operands = 0 : i64, tpu.core_type = #tpu.core_type<tc>} {
    %c0 = arith.constant 0 : index
    %c0_0 = arith.constant 0 : index
    %0 = vector.load %arg0[%c0, %c0_0] : memref<50x128xf32, #tpu.memory_space<vmem>>, vector<50x128xf32>
    %c0_1 = arith.constant 0 : index
    %c0_2 = arith.constant 0 : index
    %1 = vector.load %arg12[%c0_1, %c0_2] : memref<8x128xf32, #tpu.memory_space<vmem>>, vector<8x128xf32>
    %c0_3 = arith.constant 0 : index
    %c0_4 = arith.constant 0 : index
    %2 = vector.load %arg13[%c0_3, %c0_4] : memref<2x50xf32, #tpu.memory_space<vmem>>, vector<2x50xf32>
    %c0_5 = arith.constant 0 : index
    %c0_6 = arith.constant 0 : index
    %3 = vector.load %arg1[%c0_5, %c0_6] : memref<400x50xf32, #tpu.memory_space<vmem>>, vector<400x50xf32>
    %cst = arith.constant dense<0.000000e+00> : vector<400x128xf32>
    %4 = tpu.matmul %3, %0, %cst {dimension_numbers = #tpu.dot_dimension_numbers<[1], [0], [0], [1], [0, 0, 1, 1], [], []>} : vector<400x50xf32>, vector<50x128xf32>, vector<400x128xf32> -> vector<400x128xf32>
    %5 = arith.truncf %4 : vector<400x128xf32> to vector<400x128xbf16>
    %c0_7 = arith.constant 0 : index
    %c0_8 = arith.constant 0 : index
    %c0_9 = arith.constant 0 : index
    %6 = vector.load %arg2[%c0_7, %c0_8, %c0_9] : memref<3x384x128xbf16, #tpu.memory_space<vmem>>, vector<1x384x128xbf16>
    %7 = vector.shape_cast %6 : vector<1x384x128xbf16> to vector<384x128xbf16>
    %8 = vector.extract_strided_slice %5 {offsets = [0, 0], sizes = [50, 128], strides = [1, 1]} : vector<400x128xbf16> to vector<50x128xbf16>
    %9 = vector.extract_strided_slice %5 {offsets = [56, 0], sizes = [50, 128], strides = [1, 1]} : vector<400x128xbf16> to vector<50x128xbf16>
    %10 = vector.extract_strided_slice %5 {offsets = [112, 0], sizes = [50, 128], strides = [1, 1]} : vector<400x128xbf16> to vector<50x128xbf16>
    %11 = tpu.concatenate %8, %9, %10 in 1 : vector<50x128xbf16>, vector<50x128xbf16>, vector<50x128xbf16> -> vector<50x384xbf16>
    %cst_10 = arith.constant dense<0.000000e+00> : vector<50x128xf32>
    %12 = tpu.matmul %11, %7, %cst_10 {dimension_numbers = #tpu.dot_dimension_numbers<[1], [0], [0], [1], [0, 0, 1, 1], [], []>} : vector<50x384xbf16>, vector<384x128xbf16>, vector<50x128xf32> -> vector<50x128xf32>
    %c0_11 = arith.constant 0 : index
    %c0_12 = arith.constant 0 : index
    %c0_13 = arith.constant 0 : index
    %13 = vector.load %arg9[%c0_11, %c0_12, %c0_13] : memref<6x1x128xf32, #tpu.memory_space<vmem>>, vector<1x1x128xf32>
    %14 = vector.shape_cast %13 : vector<1x1x128xf32> to vector<1x128xf32>
    %15 = vector.broadcast %14 : vector<1x128xf32> to vector<50x128xf32>
    %16 = arith.addf %12, %15 : vector<50x128xf32>
    %c0_14 = arith.constant 0 : index
    %c0_15 = arith.constant 0 : index
    %17 = vector.load %arg6[%c0_14, %c0_15] : memref<50x20xf32, #tpu.memory_space<vmem>>, vector<50x20xf32>
    %c1 = arith.constant 1 : index
    %c0_16 = arith.constant 0 : index
    %c0_17 = arith.constant 0 : index
    %18 = vector.load %arg2[%c1, %c0_16, %c0_17] : memref<3x384x128xbf16, #tpu.memory_space<vmem>>, vector<1x384x128xbf16>
    %19 = vector.shape_cast %18 : vector<1x384x128xbf16> to vector<384x128xbf16>
    %20 = vector.extract_strided_slice %5 {offsets = [168, 0], sizes = [20, 128], strides = [1, 1]} : vector<400x128xbf16> to vector<20x128xbf16>
    %21 = vector.extract_strided_slice %5 {offsets = [192, 0], sizes = [20, 128], strides = [1, 1]} : vector<400x128xbf16> to vector<20x128xbf16>
    %22 = vector.extract_strided_slice %5 {offsets = [216, 0], sizes = [20, 128], strides = [1, 1]} : vector<400x128xbf16> to vector<20x128xbf16>
    %23 = tpu.concatenate %20, %21, %22 in 1 : vector<20x128xbf16>, vector<20x128xbf16>, vector<20x128xbf16> -> vector<20x384xbf16>
    %cst_18 = arith.constant dense<0.000000e+00> : vector<20x128xf32>
    %24 = tpu.matmul %23, %19, %cst_18 {dimension_numbers = #tpu.dot_dimension_numbers<[1], [0], [0], [1], [0, 0, 1, 1], [], []>} : vector<20x384xbf16>, vector<384x128xbf16>, vector<20x128xf32> -> vector<20x128xf32>
    %c1_19 = arith.constant 1 : index
    %c0_20 = arith.constant 0 : index
    %c0_21 = arith.constant 0 : index
    %25 = vector.load %arg9[%c1_19, %c0_20, %c0_21] : memref<6x1x128xf32, #tpu.memory_space<vmem>>, vector<1x1x128xf32>
    %26 = vector.shape_cast %25 : vector<1x1x128xf32> to vector<1x128xf32>
    %27 = vector.broadcast %26 : vector<1x128xf32> to vector<20x128xf32>
    %28 = arith.addf %24, %27 : vector<20x128xf32>
    %cst_22 = arith.constant dense<0.000000e+00> : vector<50x128xf32>
    %29 = tpu.matmul %17, %28, %cst_22 {dimension_numbers = #tpu.dot_dimension_numbers<[1], [0], [0], [1], [0, 0, 1, 1], [], []>} : vector<50x20xf32>, vector<20x128xf32>, vector<50x128xf32> -> vector<50x128xf32>
    %c0_23 = arith.constant 0 : index
    %c0_24 = arith.constant 0 : index
    %30 = vector.load %arg7[%c0_23, %c0_24] : memref<50x10xf32, #tpu.memory_space<vmem>>, vector<50x10xf32>
    %c2 = arith.constant 2 : index
    %c0_25 = arith.constant 0 : index
    %c0_26 = arith.constant 0 : index
    %31 = vector.load %arg2[%c2, %c0_25, %c0_26] : memref<3x384x128xbf16, #tpu.memory_space<vmem>>, vector<1x384x128xbf16>
    %32 = vector.shape_cast %31 : vector<1x384x128xbf16> to vector<384x128xbf16>
    %33 = vector.extract_strided_slice %5 {offsets = [240, 0], sizes = [10, 128], strides = [1, 1]} : vector<400x128xbf16> to vector<10x128xbf16>
    %34 = vector.extract_strided_slice %5 {offsets = [256, 0], sizes = [10, 128], strides = [1, 1]} : vector<400x128xbf16> to vector<10x128xbf16>
    %35 = vector.extract_strided_slice %5 {offsets = [272, 0], sizes = [10, 128], strides = [1, 1]} : vector<400x128xbf16> to vector<10x128xbf16>
    %36 = tpu.concatenate %33, %34, %35 in 1 : vector<10x128xbf16>, vector<10x128xbf16>, vector<10x128xbf16> -> vector<10x384xbf16>
    %cst_27 = arith.constant dense<0.000000e+00> : vector<10x128xf32>
    %37 = tpu.matmul %36, %32, %cst_27 {dimension_numbers = #tpu.dot_dimension_numbers<[1], [0], [0], [1], [0, 0, 1, 1], [], []>} : vector<10x384xbf16>, vector<384x128xbf16>, vector<10x128xf32> -> vector<10x128xf32>
    %c2_28 = arith.constant 2 : index
    %c0_29 = arith.constant 0 : index
    %c0_30 = arith.constant 0 : index
    %38 = vector.load %arg9[%c2_28, %c0_29, %c0_30] : memref<6x1x128xf32, #tpu.memory_space<vmem>>, vector<1x1x128xf32>
    %39 = vector.shape_cast %38 : vector<1x1x128xf32> to vector<1x128xf32>
    %40 = vector.broadcast %39 : vector<1x128xf32> to vector<10x128xf32>
    %41 = arith.addf %37, %40 : vector<10x128xf32>
    %cst_31 = arith.constant dense<0.000000e+00> : vector<50x128xf32>
    %42 = tpu.matmul %30, %41, %cst_31 {dimension_numbers = #tpu.dot_dimension_numbers<[1], [0], [0], [1], [0, 0, 1, 1], [], []>} : vector<50x10xf32>, vector<10x128xf32>, vector<50x128xf32> -> vector<50x128xf32>
    %43 = vector.extract_strided_slice %5 {offsets = [288, 0], sizes = [50, 128], strides = [1, 1]} : vector<400x128xbf16> to vector<50x128xbf16>
    %c0_32 = arith.constant 0 : index
    %c0_33 = arith.constant 0 : index
    %c0_34 = arith.constant 0 : index
    %44 = vector.load %arg3[%c0_32, %c0_33, %c0_34] : memref<3x128x128xbf16, #tpu.memory_space<vmem>>, vector<1x128x128xbf16>
    %45 = vector.shape_cast %44 : vector<1x128x128xbf16> to vector<128x128xbf16>
    %cst_35 = arith.constant dense<0.000000e+00> : vector<50x128xf32>
    %46 = tpu.matmul %43, %45, %cst_35 {dimension_numbers = #tpu.dot_dimension_numbers<[1], [0], [0], [1], [0, 0, 1, 1], [], []>} : vector<50x128xbf16>, vector<128x128xbf16>, vector<50x128xf32> -> vector<50x128xf32>
    %47 = arith.addf %29, %46 : vector<50x128xf32>
    %c3 = arith.constant 3 : index
    %c0_36 = arith.constant 0 : index
    %c0_37 = arith.constant 0 : index
    %48 = vector.load %arg9[%c3, %c0_36, %c0_37] : memref<6x1x128xf32, #tpu.memory_space<vmem>>, vector<1x1x128xf32>
    %49 = vector.shape_cast %48 : vector<1x1x128xf32> to vector<1x128xf32>
    %50 = vector.broadcast %49 : vector<1x128xf32> to vector<50x128xf32>
    %51 = arith.addf %47, %50 : vector<50x128xf32>
    %52 = vector.extract_strided_slice %5 {offsets = [344, 0], sizes = [50, 128], strides = [1, 1]} : vector<400x128xbf16> to vector<50x128xbf16>
    %c1_38 = arith.constant 1 : index
    %c0_39 = arith.constant 0 : index
    %c0_40 = arith.constant 0 : index
    %53 = vector.load %arg3[%c1_38, %c0_39, %c0_40] : memref<3x128x128xbf16, #tpu.memory_space<vmem>>, vector<1x128x128xbf16>
    %54 = vector.shape_cast %53 : vector<1x128x128xbf16> to vector<128x128xbf16>
    %cst_41 = arith.constant dense<0.000000e+00> : vector<50x128xf32>
    %55 = tpu.matmul %52, %54, %cst_41 {dimension_numbers = #tpu.dot_dimension_numbers<[1], [0], [0], [1], [0, 0, 1, 1], [], []>} : vector<50x128xbf16>, vector<128x128xbf16>, vector<50x128xf32> -> vector<50x128xf32>
    %56 = arith.addf %42, %55 : vector<50x128xf32>
    %c4 = arith.constant 4 : index
    %c0_42 = arith.constant 0 : index
    %c0_43 = arith.constant 0 : index
    %57 = vector.load %arg9[%c4, %c0_42, %c0_43] : memref<6x1x128xf32, #tpu.memory_space<vmem>>, vector<1x1x128xf32>
    %58 = vector.shape_cast %57 : vector<1x1x128xf32> to vector<1x128xf32>
    %59 = vector.broadcast %58 : vector<1x128xf32> to vector<50x128xf32>
    %60 = arith.addf %56, %59 : vector<50x128xf32>
    %c0_44 = arith.constant 0 : index
    %c0_45 = arith.constant 0 : index
    %61 = vector.load %arg8[%c0_44, %c0_45] : memref<50x128xf32, #tpu.memory_space<vmem>>, vector<50x128xf32>
    %62 = arith.addf %0, %61 : vector<50x128xf32>
    %63 = arith.truncf %62 : vector<50x128xf32> to vector<50x128xbf16>
    %c0_46 = arith.constant 0 : index
    %c0_47 = arith.constant 0 : index
    %c0_48 = arith.constant 0 : index
    %64 = vector.load %arg4[%c0_46, %c0_47, %c0_48] : memref<2x128x32xbf16, #tpu.memory_space<vmem>>, vector<1x128x32xbf16>
    %65 = vector.shape_cast %64 : vector<1x128x32xbf16> to vector<128x32xbf16>
    %cst_49 = arith.constant dense<0.000000e+00> : vector<50x32xf32>
    %66 = tpu.matmul %63, %65, %cst_49 {dimension_numbers = #tpu.dot_dimension_numbers<[1], [0], [0], [1], [0, 0, 1, 1], [], []>} : vector<50x128xbf16>, vector<128x32xbf16>, vector<50x32xf32> -> vector<50x32xf32>
    %c0_50 = arith.constant 0 : index
    %c0_51 = arith.constant 0 : index
    %c0_52 = arith.constant 0 : index
    %67 = vector.load %arg10[%c0_50, %c0_51, %c0_52] : memref<2x1x32xf32, #tpu.memory_space<vmem>>, vector<1x1x32xf32>
    %68 = vector.shape_cast %67 : vector<1x1x32xf32> to vector<1x32xf32>
    %69 = vector.broadcast %68 : vector<1x32xf32> to vector<50x32xf32>
    %70 = arith.addf %66, %69 : vector<50x32xf32>
    %c1_53 = arith.constant 1 : index
    %c0_54 = arith.constant 0 : index
    %c0_55 = arith.constant 0 : index
    %71 = vector.load %arg4[%c1_53, %c0_54, %c0_55] : memref<2x128x32xbf16, #tpu.memory_space<vmem>>, vector<1x128x32xbf16>
    %72 = vector.shape_cast %71 : vector<1x128x32xbf16> to vector<128x32xbf16>
    %cst_56 = arith.constant dense<0.000000e+00> : vector<50x32xf32>
    %73 = tpu.matmul %63, %72, %cst_56 {dimension_numbers = #tpu.dot_dimension_numbers<[1], [0], [0], [1], [0, 0, 1, 1], [], []>} : vector<50x128xbf16>, vector<128x32xbf16>, vector<50x32xf32> -> vector<50x32xf32>
    %c1_57 = arith.constant 1 : index
    %c0_58 = arith.constant 0 : index
    %c0_59 = arith.constant 0 : index
    %74 = vector.load %arg10[%c1_57, %c0_58, %c0_59] : memref<2x1x32xf32, #tpu.memory_space<vmem>>, vector<1x1x32xf32>
    %75 = vector.shape_cast %74 : vector<1x1x32xf32> to vector<1x32xf32>
    %76 = vector.broadcast %75 : vector<1x32xf32> to vector<50x32xf32>
    %77 = arith.addf %73, %76 : vector<50x32xf32>
    %cst_60 = arith.constant dense<0.000000e+00> : vector<50x50xf32>
    %78 = tpu.matmul %2, %2, %cst_60 {dimension_numbers = #tpu.dot_dimension_numbers<[0], [0], [1], [1], [0, 1, 1, 1], [], []>} : vector<2x50xf32>, vector<2x50xf32>, vector<50x50xf32> -> vector<50x50xf32>
    %cst_61 = arith.constant 5.000000e-01 : f32
    %79 = vector.broadcast %cst_61 : f32 to vector<50x50xf32>
    %80 = arith.cmpf ogt, %78, %79 : vector<50x50xf32>
    %cst_62 = arith.constant dense<0.000000e+00> : vector<50x50xf32>
    %81 = tpu.matmul %77, %70, %cst_62 {dimension_numbers = #tpu.dot_dimension_numbers<[1], [1], [0], [0], [0, 0, 1, 0], [], []>} : vector<50x32xf32>, vector<50x32xf32>, vector<50x50xf32> -> vector<50x50xf32>
    %cst_63 = arith.constant 3.125000e-02 : f32
    %82 = vector.broadcast %cst_63 : f32 to vector<50x50xf32>
    %83 = arith.mulf %81, %82 : vector<50x50xf32>
    %cst_64 = arith.constant -1.000000e+30 : f32
    %84 = vector.broadcast %cst_64 : f32 to vector<50x50xf32>
    %85 = arith.select %80, %83, %84 : vector<50x50xi1>, vector<50x50xf32>
    %cst_65 = arith.constant dense<0xFF800000> : vector<50xf32>
    %86 = vector.multi_reduction <maximumf>, %85, %cst_65 [1] : vector<50x50xf32> to vector<50xf32>
    %87 = vector.shape_cast %86 : vector<50xf32> to vector<50x1xf32>
    %88 = vector.broadcast %87 : vector<50x1xf32> to vector<50x50xf32>
    %89 = arith.subf %85, %88 : vector<50x50xf32>
    %90 = math.exp %89 : vector<50x50xf32>
    %cst_66 = arith.constant dense<0.000000e+00> : vector<50xf32>
    %91 = vector.multi_reduction <add>, %90, %cst_66 [1] : vector<50x50xf32> to vector<50xf32>
    %92 = vector.shape_cast %91 : vector<50xf32> to vector<50x1xf32>
    %93 = tpu.reciprocal %92 {approx = true} : vector<50x1xf32> -> vector<50x1xf32>
    %94 = vector.broadcast %93 : vector<50x1xf32> to vector<50x50xf32>
    %95 = arith.mulf %90, %94 : vector<50x50xf32>
    %cst_67 = arith.constant dense<0.000000e+00> : vector<50x128xf32>
    %96 = tpu.matmul %95, %0, %cst_67 {dimension_numbers = #tpu.dot_dimension_numbers<[1], [0], [0], [1], [0, 0, 1, 1], [], []>} : vector<50x50xf32>, vector<50x128xf32>, vector<50x128xf32> -> vector<50x128xf32>
    %97 = arith.truncf %96 : vector<50x128xf32> to vector<50x128xbf16>
    %c2_68 = arith.constant 2 : index
    %c0_69 = arith.constant 0 : index
    %c0_70 = arith.constant 0 : index
    %98 = vector.load %arg3[%c2_68, %c0_69, %c0_70] : memref<3x128x128xbf16, #tpu.memory_space<vmem>>, vector<1x128x128xbf16>
    %99 = vector.shape_cast %98 : vector<1x128x128xbf16> to vector<128x128xbf16>
    %cst_71 = arith.constant dense<0.000000e+00> : vector<50x128xf32>
    %100 = tpu.matmul %97, %99, %cst_71 {dimension_numbers = #tpu.dot_dimension_numbers<[1], [0], [0], [1], [0, 0, 1, 1], [], []>} : vector<50x128xbf16>, vector<128x128xbf16>, vector<50x128xf32> -> vector<50x128xf32>
    %c5 = arith.constant 5 : index
    %c0_72 = arith.constant 0 : index
    %c0_73 = arith.constant 0 : index
    %101 = vector.load %arg9[%c5, %c0_72, %c0_73] : memref<6x1x128xf32, #tpu.memory_space<vmem>>, vector<1x1x128xf32>
    %102 = vector.shape_cast %101 : vector<1x1x128xf32> to vector<1x128xf32>
    %103 = vector.broadcast %102 : vector<1x128xf32> to vector<50x128xf32>
    %104 = arith.addf %100, %103 : vector<50x128xf32>
    %105 = arith.addf %16, %51 : vector<50x128xf32>
    %106 = arith.addf %105, %60 : vector<50x128xf32>
    %cst_74 = arith.constant dense<0.000000e+00> : vector<2x128xf32>
    %107 = tpu.matmul %2, %106, %cst_74 {dimension_numbers = #tpu.dot_dimension_numbers<[1], [0], [0], [1], [0, 0, 1, 1], [], []>} : vector<2x50xf32>, vector<50x128xf32>, vector<2x128xf32> -> vector<2x128xf32>
    %cst_75 = arith.constant dense<0.000000e+00> : vector<2x8xf32>
    %108 = tpu.matmul %107, %1, %cst_75 {dimension_numbers = #tpu.dot_dimension_numbers<[1], [1], [0], [0], [0, 0, 1, 0], [], []>} : vector<2x128xf32>, vector<8x128xf32>, vector<2x8xf32> -> vector<2x8xf32>
    %cst_76 = arith.constant 2.500000e-03 : f32
    %109 = vector.broadcast %cst_76 : f32 to vector<2x8xf32>
    %110 = arith.mulf %108, %109 : vector<2x8xf32>
    %c0_77 = arith.constant 0 : index
    %c0_78 = arith.constant 0 : index
    %111 = vector.load %arg14[%c0_77, %c0_78] : memref<4x8xf32, #tpu.memory_space<vmem>>, vector<4x8xf32>
    %cst_79 = arith.constant dense<0.000000e+00> : vector<2x4xf32>
    %112 = tpu.matmul %110, %111, %cst_79 {dimension_numbers = #tpu.dot_dimension_numbers<[1], [1], [0], [0], [0, 0, 1, 0], [], []>} : vector<2x8xf32>, vector<4x8xf32>, vector<2x4xf32> -> vector<2x4xf32>
    %c0_80 = arith.constant 0 : index
    %c0_81 = arith.constant 0 : index
    %113 = vector.load %arg15[%c0_80, %c0_81] : memref<1x4xf32, #tpu.memory_space<vmem>>, vector<1x4xf32>
    %114 = vector.broadcast %113 : vector<1x4xf32> to vector<2x4xf32>
    %115 = arith.addf %112, %114 : vector<2x4xf32>
    %c0_82 = arith.constant 0 : index
    %c0_83 = arith.constant 0 : index
    %c0_84 = arith.constant 0 : index
    %116 = vector.load %arg16[%c0_82, %c0_83, %c0_84] : memref<3x8x4xf32, #tpu.memory_space<vmem>>, vector<1x8x4xf32>
    %117 = vector.shape_cast %116 : vector<1x8x4xf32> to vector<8x4xf32>
    %cst_85 = arith.constant dense<0.000000e+00> : vector<2x8xf32>
    %118 = tpu.matmul %115, %117, %cst_85 {dimension_numbers = #tpu.dot_dimension_numbers<[1], [1], [0], [0], [0, 0, 1, 0], [], []>} : vector<2x4xf32>, vector<8x4xf32>, vector<2x8xf32> -> vector<2x8xf32>
    %c0_86 = arith.constant 0 : index
    %c0_87 = arith.constant 0 : index
    %c0_88 = arith.constant 0 : index
    %119 = vector.load %arg17[%c0_86, %c0_87, %c0_88] : memref<3x1x8xf32, #tpu.memory_space<vmem>>, vector<1x1x8xf32>
    %120 = vector.shape_cast %119 : vector<1x1x8xf32> to vector<1x8xf32>
    %121 = vector.broadcast %120 : vector<1x8xf32> to vector<2x8xf32>
    %122 = arith.addf %118, %121 : vector<2x8xf32>
    %c1_89 = arith.constant 1 : index
    %c0_90 = arith.constant 0 : index
    %c0_91 = arith.constant 0 : index
    %123 = vector.load %arg16[%c1_89, %c0_90, %c0_91] : memref<3x8x4xf32, #tpu.memory_space<vmem>>, vector<1x8x4xf32>
    %124 = vector.shape_cast %123 : vector<1x8x4xf32> to vector<8x4xf32>
    %cst_92 = arith.constant dense<0.000000e+00> : vector<2x8xf32>
    %125 = tpu.matmul %115, %124, %cst_92 {dimension_numbers = #tpu.dot_dimension_numbers<[1], [1], [0], [0], [0, 0, 1, 0], [], []>} : vector<2x4xf32>, vector<8x4xf32>, vector<2x8xf32> -> vector<2x8xf32>
    %c1_93 = arith.constant 1 : index
    %c0_94 = arith.constant 0 : index
    %c0_95 = arith.constant 0 : index
    %126 = vector.load %arg17[%c1_93, %c0_94, %c0_95] : memref<3x1x8xf32, #tpu.memory_space<vmem>>, vector<1x1x8xf32>
    %127 = vector.shape_cast %126 : vector<1x1x8xf32> to vector<1x8xf32>
    %128 = vector.broadcast %127 : vector<1x8xf32> to vector<2x8xf32>
    %129 = arith.addf %125, %128 : vector<2x8xf32>
    %c2_96 = arith.constant 2 : index
    %c0_97 = arith.constant 0 : index
    %c0_98 = arith.constant 0 : index
    %130 = vector.load %arg16[%c2_96, %c0_97, %c0_98] : memref<3x8x4xf32, #tpu.memory_space<vmem>>, vector<1x8x4xf32>
    %131 = vector.shape_cast %130 : vector<1x8x4xf32> to vector<8x4xf32>
    %cst_99 = arith.constant dense<0.000000e+00> : vector<2x8xf32>
    %132 = tpu.matmul %115, %131, %cst_99 {dimension_numbers = #tpu.dot_dimension_numbers<[1], [1], [0], [0], [0, 0, 1, 0], [], []>} : vector<2x4xf32>, vector<8x4xf32>, vector<2x8xf32> -> vector<2x8xf32>
    %c2_100 = arith.constant 2 : index
    %c0_101 = arith.constant 0 : index
    %c0_102 = arith.constant 0 : index
    %133 = vector.load %arg17[%c2_100, %c0_101, %c0_102] : memref<3x1x8xf32, #tpu.memory_space<vmem>>, vector<1x1x8xf32>
    %134 = vector.shape_cast %133 : vector<1x1x8xf32> to vector<1x8xf32>
    %135 = vector.broadcast %134 : vector<1x8xf32> to vector<2x8xf32>
    %136 = arith.addf %132, %135 : vector<2x8xf32>
    %137 = arith.maximumf %122, %129 : vector<2x8xf32>
    %138 = arith.maximumf %137, %136 : vector<2x8xf32>
    %139 = arith.subf %122, %138 : vector<2x8xf32>
    %140 = math.exp %139 : vector<2x8xf32>
    %141 = arith.subf %129, %138 : vector<2x8xf32>
    %142 = math.exp %141 : vector<2x8xf32>
    %143 = arith.subf %136, %138 : vector<2x8xf32>
    %144 = math.exp %143 : vector<2x8xf32>
    %145 = arith.addf %140, %142 : vector<2x8xf32>
    %146 = arith.addf %145, %144 : vector<2x8xf32>
    %147 = tpu.reciprocal %146 {approx = true} : vector<2x8xf32> -> vector<2x8xf32>
    %148 = arith.mulf %140, %147 : vector<2x8xf32>
    %cst_103 = arith.constant dense<0.000000e+00> : vector<2x128xf32>
    %149 = tpu.matmul %148, %1, %cst_103 {dimension_numbers = #tpu.dot_dimension_numbers<[1], [0], [0], [1], [0, 0, 1, 1], [], []>} : vector<2x8xf32>, vector<8x128xf32>, vector<2x128xf32> -> vector<2x128xf32>
    %cst_104 = arith.constant dense<0.000000e+00> : vector<50x128xf32>
    %150 = tpu.matmul %2, %149, %cst_104 {dimension_numbers = #tpu.dot_dimension_numbers<[0], [0], [1], [1], [0, 1, 1, 1], [], []>} : vector<2x50xf32>, vector<2x128xf32>, vector<50x128xf32> -> vector<50x128xf32>
    %151 = arith.mulf %150, %16 : vector<50x128xf32>
    %152 = arith.mulf %142, %147 : vector<2x8xf32>
    %cst_105 = arith.constant dense<0.000000e+00> : vector<2x128xf32>
    %153 = tpu.matmul %152, %1, %cst_105 {dimension_numbers = #tpu.dot_dimension_numbers<[1], [0], [0], [1], [0, 0, 1, 1], [], []>} : vector<2x8xf32>, vector<8x128xf32>, vector<2x128xf32> -> vector<2x128xf32>
    %cst_106 = arith.constant dense<0.000000e+00> : vector<50x128xf32>
    %154 = tpu.matmul %2, %153, %cst_106 {dimension_numbers = #tpu.dot_dimension_numbers<[0], [0], [1], [1], [0, 1, 1, 1], [], []>} : vector<2x50xf32>, vector<2x128xf32>, vector<50x128xf32> -> vector<50x128xf32>
    %155 = arith.mulf %154, %51 : vector<50x128xf32>
    %156 = arith.addf %151, %155 : vector<50x128xf32>
    %157 = arith.mulf %144, %147 : vector<2x8xf32>
    %cst_107 = arith.constant dense<0.000000e+00> : vector<2x128xf32>
    %158 = tpu.matmul %157, %1, %cst_107 {dimension_numbers = #tpu.dot_dimension_numbers<[1], [0], [0], [1], [0, 0, 1, 1], [], []>} : vector<2x8xf32>, vector<8x128xf32>, vector<2x128xf32> -> vector<2x128xf32>
    %cst_108 = arith.constant dense<0.000000e+00> : vector<50x128xf32>
    %159 = tpu.matmul %2, %158, %cst_108 {dimension_numbers = #tpu.dot_dimension_numbers<[0], [0], [1], [1], [0, 1, 1, 1], [], []>} : vector<2x50xf32>, vector<2x128xf32>, vector<50x128xf32> -> vector<50x128xf32>
    %160 = arith.mulf %159, %60 : vector<50x128xf32>
    %161 = arith.addf %156, %160 : vector<50x128xf32>
    %162 = arith.addf %161, %104 : vector<50x128xf32>
    %c0_109 = arith.constant 0 : index
    %c0_110 = arith.constant 0 : index
    %c0_111 = arith.constant 0 : index
    %163 = vector.load %arg18[%c0_109, %c0_110, %c0_111] : memref<4x1x8xf32, #tpu.memory_space<vmem>>, vector<1x1x8xf32>
    %164 = vector.shape_cast %163 : vector<1x1x8xf32> to vector<1x8xf32>
    %c1_112 = arith.constant 1 : index
    %c0_113 = arith.constant 0 : index
    %c0_114 = arith.constant 0 : index
    %165 = vector.load %arg18[%c1_112, %c0_113, %c0_114] : memref<4x1x8xf32, #tpu.memory_space<vmem>>, vector<1x1x8xf32>
    %166 = vector.shape_cast %165 : vector<1x1x8xf32> to vector<1x8xf32>
    %cst_115 = arith.constant dense<0.000000e+00> : vector<128xf32>
    %167 = vector.multi_reduction <add>, %162, %cst_115 [0] : vector<50x128xf32> to vector<128xf32>
    %168 = vector.shape_cast %167 : vector<128xf32> to vector<1x128xf32>
    %169 = arith.mulf %162, %162 : vector<50x128xf32>
    %cst_116 = arith.constant dense<0.000000e+00> : vector<128xf32>
    %170 = vector.multi_reduction <add>, %169, %cst_116 [0] : vector<50x128xf32> to vector<128xf32>
    %171 = vector.shape_cast %170 : vector<128xf32> to vector<1x128xf32>
    %cst_117 = arith.constant dense<0.000000e+00> : vector<1x8xf32>
    %172 = tpu.matmul %168, %1, %cst_117 {dimension_numbers = #tpu.dot_dimension_numbers<[1], [1], [0], [0], [0, 0, 1, 0], [], []>} : vector<1x128xf32>, vector<8x128xf32>, vector<1x8xf32> -> vector<1x8xf32>
    %cst_118 = arith.constant 1.250000e-03 : f32
    %173 = vector.broadcast %cst_118 : f32 to vector<1x8xf32>
    %174 = arith.mulf %172, %173 : vector<1x8xf32>
    %cst_119 = arith.constant dense<0.000000e+00> : vector<1x8xf32>
    %175 = tpu.matmul %171, %1, %cst_119 {dimension_numbers = #tpu.dot_dimension_numbers<[1], [1], [0], [0], [0, 0, 1, 0], [], []>} : vector<1x128xf32>, vector<8x128xf32>, vector<1x8xf32> -> vector<1x8xf32>
    %cst_120 = arith.constant 1.250000e-03 : f32
    %176 = vector.broadcast %cst_120 : f32 to vector<1x8xf32>
    %177 = arith.mulf %175, %176 : vector<1x8xf32>
    %178 = arith.mulf %174, %174 : vector<1x8xf32>
    %179 = arith.subf %177, %178 : vector<1x8xf32>
    %cst_121 = arith.constant 9.99999974E-6 : f32
    %180 = vector.broadcast %cst_121 : f32 to vector<1x8xf32>
    %181 = arith.addf %179, %180 : vector<1x8xf32>
    %182 = math.rsqrt %181 : vector<1x8xf32>
    %183 = arith.mulf %164, %182 : vector<1x8xf32>
    %184 = arith.mulf %174, %183 : vector<1x8xf32>
    %185 = arith.subf %166, %184 : vector<1x8xf32>
    %cst_122 = arith.constant dense<0.000000e+00> : vector<1x128xf32>
    %186 = tpu.matmul %183, %1, %cst_122 {dimension_numbers = #tpu.dot_dimension_numbers<[1], [0], [0], [1], [0, 0, 1, 1], [], []>} : vector<1x8xf32>, vector<8x128xf32>, vector<1x128xf32> -> vector<1x128xf32>
    %187 = vector.broadcast %186 : vector<1x128xf32> to vector<50x128xf32>
    %188 = arith.mulf %162, %187 : vector<50x128xf32>
    %cst_123 = arith.constant dense<0.000000e+00> : vector<1x128xf32>
    %189 = tpu.matmul %185, %1, %cst_123 {dimension_numbers = #tpu.dot_dimension_numbers<[1], [0], [0], [1], [0, 0, 1, 1], [], []>} : vector<1x8xf32>, vector<8x128xf32>, vector<1x128xf32> -> vector<1x128xf32>
    %190 = vector.broadcast %189 : vector<1x128xf32> to vector<50x128xf32>
    %191 = arith.addf %188, %190 : vector<50x128xf32>
    %192 = arith.addf %191, %0 : vector<50x128xf32>
    %cst_124 = arith.constant 0.000000e+00 : f32
    %193 = vector.broadcast %cst_124 : f32 to vector<50x128xf32>
    %194 = arith.maximumf %192, %193 : vector<50x128xf32>
    %195 = arith.truncf %194 : vector<50x128xf32> to vector<50x128xbf16>
    %c0_125 = arith.constant 0 : index
    %c0_126 = arith.constant 0 : index
    %196 = vector.load %arg5[%c0_125, %c0_126] : memref<128x128xbf16, #tpu.memory_space<vmem>>, vector<128x128xbf16>
    %cst_127 = arith.constant dense<0.000000e+00> : vector<50x128xf32>
    %197 = tpu.matmul %195, %196, %cst_127 {dimension_numbers = #tpu.dot_dimension_numbers<[1], [0], [0], [1], [0, 0, 1, 1], [], []>} : vector<50x128xbf16>, vector<128x128xbf16>, vector<50x128xf32> -> vector<50x128xf32>
    %c0_128 = arith.constant 0 : index
    %c0_129 = arith.constant 0 : index
    %198 = vector.load %arg11[%c0_128, %c0_129] : memref<1x128xf32, #tpu.memory_space<vmem>>, vector<1x128xf32>
    %199 = vector.broadcast %198 : vector<1x128xf32> to vector<50x128xf32>
    %200 = arith.addf %197, %199 : vector<50x128xf32>
    %c2_130 = arith.constant 2 : index
    %c0_131 = arith.constant 0 : index
    %c0_132 = arith.constant 0 : index
    %201 = vector.load %arg18[%c2_130, %c0_131, %c0_132] : memref<4x1x8xf32, #tpu.memory_space<vmem>>, vector<1x1x8xf32>
    %202 = vector.shape_cast %201 : vector<1x1x8xf32> to vector<1x8xf32>
    %c3_133 = arith.constant 3 : index
    %c0_134 = arith.constant 0 : index
    %c0_135 = arith.constant 0 : index
    %203 = vector.load %arg18[%c3_133, %c0_134, %c0_135] : memref<4x1x8xf32, #tpu.memory_space<vmem>>, vector<1x1x8xf32>
    %204 = vector.shape_cast %203 : vector<1x1x8xf32> to vector<1x8xf32>
    %cst_136 = arith.constant dense<0.000000e+00> : vector<128xf32>
    %205 = vector.multi_reduction <add>, %200, %cst_136 [0] : vector<50x128xf32> to vector<128xf32>
    %206 = vector.shape_cast %205 : vector<128xf32> to vector<1x128xf32>
    %207 = arith.mulf %200, %200 : vector<50x128xf32>
    %cst_137 = arith.constant dense<0.000000e+00> : vector<128xf32>
    %208 = vector.multi_reduction <add>, %207, %cst_137 [0] : vector<50x128xf32> to vector<128xf32>
    %209 = vector.shape_cast %208 : vector<128xf32> to vector<1x128xf32>
    %cst_138 = arith.constant dense<0.000000e+00> : vector<1x8xf32>
    %210 = tpu.matmul %206, %1, %cst_138 {dimension_numbers = #tpu.dot_dimension_numbers<[1], [1], [0], [0], [0, 0, 1, 0], [], []>} : vector<1x128xf32>, vector<8x128xf32>, vector<1x8xf32> -> vector<1x8xf32>
    %cst_139 = arith.constant 1.250000e-03 : f32
    %211 = vector.broadcast %cst_139 : f32 to vector<1x8xf32>
    %212 = arith.mulf %210, %211 : vector<1x8xf32>
    %cst_140 = arith.constant dense<0.000000e+00> : vector<1x8xf32>
    %213 = tpu.matmul %209, %1, %cst_140 {dimension_numbers = #tpu.dot_dimension_numbers<[1], [1], [0], [0], [0, 0, 1, 0], [], []>} : vector<1x128xf32>, vector<8x128xf32>, vector<1x8xf32> -> vector<1x8xf32>
    %cst_141 = arith.constant 1.250000e-03 : f32
    %214 = vector.broadcast %cst_141 : f32 to vector<1x8xf32>
    %215 = arith.mulf %213, %214 : vector<1x8xf32>
    %216 = arith.mulf %212, %212 : vector<1x8xf32>
    %217 = arith.subf %215, %216 : vector<1x8xf32>
    %cst_142 = arith.constant 9.99999974E-6 : f32
    %218 = vector.broadcast %cst_142 : f32 to vector<1x8xf32>
    %219 = arith.addf %217, %218 : vector<1x8xf32>
    %220 = math.rsqrt %219 : vector<1x8xf32>
    %221 = arith.mulf %202, %220 : vector<1x8xf32>
    %222 = arith.mulf %212, %221 : vector<1x8xf32>
    %223 = arith.subf %204, %222 : vector<1x8xf32>
    %cst_143 = arith.constant dense<0.000000e+00> : vector<1x128xf32>
    %224 = tpu.matmul %221, %1, %cst_143 {dimension_numbers = #tpu.dot_dimension_numbers<[1], [0], [0], [1], [0, 0, 1, 1], [], []>} : vector<1x8xf32>, vector<8x128xf32>, vector<1x128xf32> -> vector<1x128xf32>
    %225 = vector.broadcast %224 : vector<1x128xf32> to vector<50x128xf32>
    %226 = arith.mulf %200, %225 : vector<50x128xf32>
    %cst_144 = arith.constant dense<0.000000e+00> : vector<1x128xf32>
    %227 = tpu.matmul %223, %1, %cst_144 {dimension_numbers = #tpu.dot_dimension_numbers<[1], [0], [0], [1], [0, 0, 1, 1], [], []>} : vector<1x8xf32>, vector<8x128xf32>, vector<1x128xf32> -> vector<1x128xf32>
    %228 = vector.broadcast %227 : vector<1x128xf32> to vector<50x128xf32>
    %229 = arith.addf %226, %228 : vector<50x128xf32>
    %230 = arith.addf %229, %0 : vector<50x128xf32>
    %cst_145 = arith.constant 0.000000e+00 : f32
    %231 = vector.broadcast %cst_145 : f32 to vector<50x128xf32>
    %232 = arith.maximumf %230, %231 : vector<50x128xf32>
    %c0_146 = arith.constant 0 : index
    %c0_147 = arith.constant 0 : index
    %233 = vector.load %arg19[%c0_146, %c0_147] : memref<50x128xf32, #tpu.memory_space<vmem>>, vector<50x128xf32>
    tpu.vector_store %arg19[%c0_146, %c0_147], %232 {strides = array<i32>} : memref<50x128xf32, #tpu.memory_space<vmem>>, vector<50x128xf32>,
    return
  }
}

</mosaic_0001>

<bundles_post_ra>
// kernel: tile.7
= control target key start
LH: loop header
LB: loop body
LE: loop exit
PB: predicated region body
PF: predicated region fallthrough
CT: control target
= control target key end

     0   :  { %s13_s6 = smov 3  ;;  %s93_s0 = inlined_call_operand.vmem [shape: f32[2,25,128], index: 0, kind: input, shape index: {}]   ;;  %s94_s1 = inlined_call_operand.vmem [shape: f32[50,128], index: 1, kind: output, shape index: {}]  }
   0x1   :  { %v2_v0 = vld [vmem:[%s93_s0] sm:$0xff]   ;;  %v29_v1 = vld [vmem:[%s93_s0 + $0x8] sm:$0xff]   ;;  %v31_v2 = vld [vmem:[%s93_s0 + $0x10] sm:$0xff]  }
   0x2   :  { %3 = vst [vmem:[%s94_s1] sm:$0xff] %v2_v0   ;;  %v33_v3 = vld [vmem:[%s93_s0 + $0x18] ss:$8 sm:%s13_s6]  }
   0x3   :  { %30 = vst [vmem:[%s94_s1 + $0x8] sm:$0xff] %v29_v1   ;;  %v35_v4 = vld [vmem:[%s93_s0 + $0x21] sm:$0xff]   ;;  %v37_v5 = vld [vmem:[%s93_s0 + $0x29] sm:$0xff]   ;;  %v39_v6 = vld [vmem:[%s93_s0 + $0x31] sm:$0xff]  }
   0x4   :  { %32 = vst [vmem:[%s94_s1 + $0x10] sm:$0xff] %v31_v2  }
   0x5   :  { %34 = vst [vmem:[%s94_s1 + $0x18] sm:$0x3] %v33_v3  }
   0x6   :  { %36 = vst [vmem:[%s94_s1 + $0x1a] sm:$0xff] %v35_v4  }
   0x7   :  { %38 = vst [vmem:[%s94_s1 + $0x22] sm:$0xff] %v37_v5  }
   0x8   :  { %40 = vst [vmem:[%s94_s1 + $0x2a] sm:$0xff] %v39_v6  }

// kernel: tcn_gcn_unit_forward.1
= control target key start
LH: loop header
LB: loop body
LE: loop exit
PB: predicated region body
PF: predicated region fallthrough
CT: control target
= control target key end

     0   :  { %vm272_vm0 = vcmask 1041408   ;;  %vm121_vm1 = vcmask 408576   ;;  %vm1529_vm2 = vcmask 1043456   ;;  %vm1507_vm3 = vcmask 162816   ;;  %s5691_s0 = inlined_call_operand.vmem [shape: f32[50,128], index: 0, kind: input, shape index: {}]   ;;  %s5692_s1 = inlined_call_operand.vmem [shape: f32[400,50], index: 1, kind: input, shape index: {}]   ;;  %s5693_s2 = inlined_call_operand.vmem [shape: bf16[3,384,128], index: 2, kind: input, shape index: {}]   ;;  %s5694_s9 = inlined_call_operand.vmem [shape: f32[6,1,128], index: 9, kind: input, shape index: {}]   ;;  %s5695_s3 = inlined_call_operand.vmem [shape: bf16[3,128,128], index: 3, kind: input, shape index: {}]   ;;  %s5696_s4 = inlined_call_operand.vmem [shape: bf16[2,128,32], index: 4, kind: input, shape index: {}]   ;;  %s5697_s8 = inlined_call_operand.vmem [shape: f32[50,128], index: 8, kind: input, shape index: {}]   ;;  %s5698_s10 = inlined_call_operand.vmem [shape: f32[2,1,32], index: 10, kind: input, shape index: {}]   ;;  %s5699_s13 = inlined_call_operand.vmem [shape: f32[2,50], index: 13, kind: input, shape index: {}]   ;;  %s5700_s6 = inlined_call_operand.vmem [shape: f32[50,20], index: 6, kind: input, shape index: {}]   ;;  %s5701_s7 = inlined_call_operand.vmem [shape: f32[50,10], index: 7, kind: input, shape index: {}]   ;;  %s5702_s12 = inlined_call_operand.vmem [shape: f32[8,128], index: 12, kind: input, shape index: {}]   ;;  %s5703_s15 = inlined_call_operand.vmem [shape: f32[1,4], index: 15, kind: input, shape index: {}]   ;;  %s5704_s14 = inlined_call_operand.vmem [shape: f32[4,8], index: 14, kind: input, shape index: {}]   ;;  %s5705_s17 = inlined_call_operand.vmem [shape: f32[3,1,8], index: 17, kind: input, shape index: {}]   ;;  %s5706_s16 = inlined_call_operand.vmem [shape: f32[3,8,4], index: 16, kind: input, shape index: {}]   ;;  %s5707_s5 = inlined_call_operand.vmem [shape: bf16[128,128], index: 5, kind: input, shape index: {}]   ;;  %s5708_s18 = inlined_call_operand.vmem [shape: f32[4,1,8], index: 18, kind: input, shape index: {}]   ;;  %s5709_s11 = inlined_call_operand.vmem [shape: f32[1,128], index: 11, kind: input, shape index: {}]   ;;  %s5710_s19 = inlined_call_operand.vmem [shape: f32[50,128], index: 19, kind: output, shape index: {}]  }
   0x1   :  { %5715 = sst [smem:[#allocation2_spill]] %s5691_s0  ;;  %vm1698_vm4 = vcmask 80896   ;;  %vm2017_vm5 = vcmask 15360   ;;  %vm2087_vm6 = vcmask 261120   ;;  %vm2200_vm14 = vcmask 402432  }
   0x2   :  { %5716 = sst [smem:[#allocation3_spill]] %s5692_s1  ;;  %vm2486_vm15 = vcmask 64512  }
   0x3   :  { %5717 = sst [smem:[#allocation4_spill]] %s5693_s2 }
   0x4   :  { %5718 = sst [smem:[#allocation5_spill]] %s5694_s9 }
   0x5   :  { %s5719_s20 = sld [smem:[#allocation2_spill]] }
   0x6   :  { %s5720_s21 = sld [smem:[#allocation3_spill]] }
   0x7   :  { %s5721_s26 = sld [smem:[#allocation4_spill]] }
   0x8   :  { %s5722_s27 = sld [smem:[#allocation5_spill]] }
   0xb   :  { %v68_v0 = vld [vmem:[%s5719_s20 + $0x30] sm:$0x3]  ;;  %v67_v1 = vld [vmem:[%s5719_s20 + $0x28] sm:$0xff]  ;;  %v66_v2 = vld [vmem:[%s5719_s20 + $0x20] sm:$0xff] }
   0xc   :  { %3308 = vmatpush.msk.msra.mxu0 %vm272_vm0, %v68_v0  ;;  %v65_v3 = vld [vmem:[%s5719_s20 + $0x18] sm:$0xff]  ;;  %v64_v4 = vld [vmem:[%s5719_s20 + $0x10] sm:$0xff]  ;;  %v63_v5 = vld [vmem:[%s5719_s20 + $0x8] sm:$0xff] }
   0xd   :  { %v62_v6 = vld [vmem:[%s5719_s20] sm:$0xff]  ;;  %v72_v8 = vld [vmem:[%s5720_s21 + $0x8] sm:$0xff]  ;;  %v73_v9 = vld [vmem:[%s5720_s21 + $0x10] sm:$0xff] }
   0xe   :  { %286 = vmatpush.msra.mxu0 %v67_v1  ;;  %v71_v7 = vld [vmem:[%s5720_s21] sm:$0xff]  ;;  %v74_v10 = vld [vmem:[%s5720_s21 + $0x18] sm:$0xff]  ;;  %v76_v12 = vld [vmem:[%s5720_s21 + $0x28] sm:$0xff] }
   0xf   :  { %v75_v11 = vld [vmem:[%s5720_s21 + $0x20] sm:$0xff]  ;;  %v77_v13 = vld [vmem:[%s5720_s21 + $0x30] sm:$0xff]  ;;  %v78_v14 = vld [vmem:[%s5720_s21 + $0x38] sm:$0xff] }
  0x10   :  { %287 = vmatpush.msra.mxu0 %v66_v2  ;;  %v79_v15 = vld [vmem:[%s5720_s21 + $0x40] sm:$0xff]  ;;  %v80_v16 = vld [vmem:[%s5720_s21 + $0x48] sm:$0xff]  ;;  %v4090_v17 = vld [vmem:[%s5721_s26 + $0x38] sm:$0xff] }
  0x11   :  { %755 = vmatpush.bf16.msra.mxu1 %v4090_v17  ;;  %v81_v18 = vld [vmem:[%s5720_s21 + $0x50] sm:$0xff]  ;;  %v4088_v20 = vld [vmem:[%s5721_s26 + $0x28] sm:$0xff]  ;;  %v82_v21 = vld [vmem:[%s5720_s21 + $0x58] sm:$0xff] }
  0x12   :  { %288 = vmatpush.msra.mxu0 %v65_v3  ;;  %v4089_v19 = vld [vmem:[%s5721_s26 + $0x30] sm:$0xff]  ;;  %v4087_v22 = vld [vmem:[%s5721_s26 + $0x20] sm:$0xff]  ;;  %v4086_v23 = vld [vmem:[%s5721_s26 + $0x18] sm:$0xff] }
  0x13   :  { %v83_v24 = vld [vmem:[%s5720_s21 + $0x60] sm:$0xff]  ;;  %v4085_v25 = vld [vmem:[%s5721_s26 + $0x10] sm:$0xff]  ;;  %v4084_v26 = vld [vmem:[%s5721_s26 + $0x8] sm:$0xff] }
  0x14   :  { %289 = vmatpush.msra.mxu0 %v64_v4  ;;  %v84_v27 = vld [vmem:[%s5720_s21 + $0x68] sm:$0xff]  ;;  %v4083_v28 = vld [vmem:[%s5721_s26] sm:$0xff]  ;;  %v85_v29 = vld [vmem:[%s5720_s21 + $0x70] sm:$0xff] }
  0x15   :  { %756 = vmatpush.bf16.msra.mxu1 %v4089_v19  ;;  %v86_v30 = vld [vmem:[%s5720_s21 + $0x78] sm:$0xff]  ;;  %v87_v32 = vld [vmem:[%s5720_s21 + $0x80] sm:$0xff]  ;;  %v88_v36 = vld [vmem:[%s5720_s21 + $0x88] sm:$0xff] }
  0x16   :  { %290 = vmatpush.msra.mxu0 %v63_v5  ;;  %v4098_v33 = vld [vmem:[%s5721_s26 + $0x78] sm:$0xff]  ;;  %v4097_v38 = vld [vmem:[%s5721_s26 + $0x70] sm:$0xff]  ;;  %v4096_v42 = vld [vmem:[%s5721_s26 + $0x68] sm:$0xff] }
  0x17   :  { %783 = vmatpush.bf16.msra.mxu2 %v4098_v33  ;;  %v89_v44 = vld [vmem:[%s5720_s21 + $0x90] sm:$0xff]  ;;  %v4095_v45 = vld [vmem:[%s5721_s26 + $0x60] sm:$0xff]  ;;  %v4094_v46 = vld [vmem:[%s5721_s26 + $0x58] sm:$0xff] }
  0x18   :  { %291 = vmatpush.msra.mxu0 %v62_v6  ;;  %v90_v49 = vld [vmem:[%s5720_s21 + $0x98] sm:$0xff]  ;;  %v4093_v51 = vld [vmem:[%s5721_s26 + $0x50] sm:$0xff]  ;;  %v4092_v55 = vld [vmem:[%s5721_s26 + $0x48] sm:$0xff] }
  0x19   :  { %3309 = vmatmul.msk.f32.vlgmr.msra.gmra.mxu0 %vm121_vm1, %v71_v7  ;;  %757 = vmatpush.bf16.msra.mxu1 %v4088_v20  ;;  %v91_v57 = vld [vmem:[%s5720_s21 + $0xa0] sm:$0xff]  ;;  %v92_v61 = vld [vmem:[%s5720_s21 + $0xa8] sm:$0xff]  ;;  %v93_v3 = vld [vmem:[%s5720_s21 + $0xb0] sm:$0xff] }
  0x1a   :  { %v4091_v58 = vld [vmem:[%s5721_s26 + $0x40] sm:$0xff]  ;;  %v94_v6 = vld [vmem:[%s5720_s21 + $0xb8] sm:$0xff]  ;;  %v96_v20 = vld [vmem:[%s5720_s21 + $0xc8] sm:$0xff] }
  0x1b   :  { %784 = vmatpush.bf16.msra.mxu2 %v4097_v38  ;;  %v98_v33 = vld [vmem:[%s5720_s21 + $0xd8] sm:$0xff] }
  0x1d   :  { %758 = vmatpush.bf16.msra.mxu1 %v4087_v22  ;;  %v4102_v22 = vld [vmem:[%s5721_s26 + $0x98] sm:$0xff] }
  0x1f   :  { %785 = vmatpush.bf16.msra.mxu2 %v4096_v42 }
  0x21   :  { %3310 = vmatmul.msk.f32.gmra.mxu0 %vm121_vm1, %v72_v8  ;;  %759 = vmatpush.bf16.msra.mxu1 %v4086_v23 }
  0x23   :  { %786 = vmatpush.bf16.msra.mxu2 %v4095_v45 }
  0x25   :  { %760 = vmatpush.bf16.msra.mxu1 %v4085_v25  ;;  %v97_v25 = vld [vmem:[%s5720_s21 + $0xd0] sm:$0xff] }
  0x27   :  { %787 = vmatpush.bf16.msra.mxu2 %v4094_v46  ;;  %v101_v46 = vld [vmem:[%s5720_s21 + $0xf0] sm:$0xff] }
  0x29   :  { %3311 = vmatmul.msk.f32.gmra.mxu0 %vm121_vm1, %v73_v9  ;;  %761 = vmatpush.bf16.msra.mxu1 %v4084_v26  ;;  %v4106_v9 = vld [vmem:[%s5721_s26 + $0xb8] sm:$0xff] }
  0x2a   :  { %811 = vmatpush.bf16.msra.mxu3 %v4106_v9  ;;  %v4122_v9 = vld [vmem:[%s5721_s26 + $0x138] sm:$0xff] }
  0x2b   :  { %788 = vmatpush.bf16.msra.mxu2 %v4093_v51 }
  0x2d   :  { %762 = vmatpush.bf16.msra.mxu1 %v4083_v28 }
  0x2f   :  { %789 = vmatpush.bf16.msra.mxu2 %v4092_v55 }
  0x31   :  { %3312 = vmatmul.msk.f32.gmra.mxu0 %vm121_vm1, %v74_v10 }
  0x33   :  { %790 = vmatpush.bf16.msra.mxu2 %v4091_v58  ;;  %v4112_v58 = vld [vmem:[%s5721_s26 + $0xe8] sm:$0xff] }
  0x37   :  { %1092 = vmatpush.bf16.msrb.mxu2 %v4122_v9 }
  0x39   :  { %3313 = vmatmul.msk.f32.gmra.mxu0 %vm121_vm1, %v75_v11 }
  0x41   :  { %3314 = vmatmul.msk.f32.gmra.mxu0 %vm121_vm1, %v76_v12  ;;  %v95_v12 = vld [vmem:[%s5720_s21 + $0xc0] sm:$0xff] }
  0x49   :  { %3315 = vmatmul.msk.f32.gmra.mxu0 %vm121_vm1, %v77_v13 }
  0x51   :  { %3316 = vmatmul.msk.f32.gmra.mxu0 %vm121_vm1, %v78_v14  ;;  %v4105_v14 = vld [vmem:[%s5721_s26 + $0xb0] sm:$0xff] }
  0x52   :  { %812 = vmatpush.bf16.msra.mxu3 %v4105_v14 }
  0x59   :  { %3317 = vmatmul.msk.f32.gmra.mxu0 %vm121_vm1, %v79_v15 }
  0x61   :  { %3318 = vmatmul.msk.f32.gmra.mxu0 %vm121_vm1, %v80_v16 }
  0x69   :  { %3319 = vmatmul.msk.f32.gmra.mxu0 %vm121_vm1, %v81_v18  ;;  %v4104_v18 = vld [vmem:[%s5721_s26 + $0xa8] sm:$0xff] }
  0x6a   :  { %813 = vmatpush.bf16.msra.mxu3 %v4104_v18  ;;  %v106_v18 = vld [vmem:[%s5720_s21 + $0x118] sm:$0xff] }
  0x71   :  { %3320 = vmatmul.msk.f32.gmra.mxu0 %vm121_vm1, %v82_v21  ;;  %v4103_v21 = vld [vmem:[%s5721_s26 + $0xa0] sm:$0xff] }
  0x72   :  { %814 = vmatpush.bf16.msra.mxu3 %v4103_v21 }
  0x76   :  { %815 = vmatpush.bf16.msra.mxu3 %v4102_v22 }
  0x79   :  { %3321 = vmatmul.msk.f32.gmra.mxu0 %vm121_vm1, %v83_v24 }
  0x81   :  { %3322 = vmatmul.msk.f32.gmra.mxu0 %vm121_vm1, %v84_v27  ;;  %v4101_v27 = vld [vmem:[%s5721_s26 + $0x90] sm:$0xff] }
  0x82   :  { %816 = vmatpush.bf16.msra.mxu3 %v4101_v27  ;;  %v107_v27 = vld [vmem:[%s5720_s21 + $0x120] sm:$0xff] }
  0x89   :  { %3323 = vmatmul.msk.f32.gmra.mxu0 %vm121_vm1, %v85_v29 }
  0x91   :  { %3324 = vmatmul.msk.f32.gmra.mxu0 %vm121_vm1, %v86_v30 }
  0x96   :  { %v293_v31 = vpop.f32.mrf.mxu0 }
  0x97   :  { %v443_v34 = vpack.c.bf16 %v293_v31, %v293_v31  ;;  %v4100_v31 = vld [vmem:[%s5721_s26 + $0x88] sm:$0xff] }
  0x98   :  { %817 = vmatpush.bf16.msra.mxu3 %v4100_v31  ;;  %v4116_v31 = vld [vmem:[%s5721_s26 + $0x108] sm:$0xff] }
  0x99   :  { %3325 = vmatmul.msk.f32.gmra.mxu0 %vm121_vm1, %v87_v32  ;;  %v548_v39 = vunpack.c.l.b16 %v443_v34  ;;  %v4099_v34 = vld [vmem:[%s5721_s26 + $0x80] sm:$0xff] }
  0x9c   :  { %818 = vmatpush.bf16.msra.mxu3 %v4099_v34  ;;  %v108_v34 = vld [vmem:[%s5720_s21 + $0x128] sm:$0xff] }
  0x9e   :  { %v296_v35 = vpop.f32.mrf.mxu0 }
  0x9f   :  { %v444_v37 = vpack.c.bf16 %v296_v35, %v296_v35 }
  0xa1   :  { %v549_v40 = vunpack.c.l.b16 %v444_v37  ;;  %3326 = vmatmul.msk.f32.gmra.mxu0 %vm121_vm1, %v88_v36  ;;  %v99_v37 = vld [vmem:[%s5720_s21 + $0xe0] sm:$0xff] }
  0xa3   :  { %v555_v41 = vpack.c.b16 %v549_v40, %v548_v39 }
  0xa5   :  { %763 = vmatmul.bf16.vlgmr.msra.gmra.mxu1 %v555_v41 }
  0xa6   :  { %v299_v43 = vpop.f32.mrf.mxu0 }
  0xa7   :  { %v445_v47 = vpack.c.bf16 %v299_v43, %v299_v43  ;;  %v100_v43 = vld [vmem:[%s5720_s21 + $0xe8] sm:$0xff] }
  0xa9   :  { %3327 = vmatmul.msk.f32.gmra.mxu0 %vm121_vm1, %v89_v44  ;;  %v550_v52 = vunpack.c.l.b16 %v445_v47 }
  0xae   :  { %v302_v48 = vpop.f32.mrf.mxu0 }
  0xaf   :  { %v446_v50 = vpack.c.bf16 %v302_v48, %v302_v48 }
  0xb1   :  { %v551_v53 = vunpack.c.l.b16 %v446_v50  ;;  %3328 = vmatmul.msk.f32.gmra.mxu0 %vm121_vm1, %v90_v49  ;;  %v4114_v49 = vld [vmem:[%s5721_s26 + $0xf8] sm:$0xff] }
  0xb2   :  { %1074 = vmatpush.bf16.msrb.mxu1 %v4114_v49 }
  0xb3   :  { %v556_v54 = vpack.c.b16 %v551_v53, %v550_v52  ;;  %v102_v52 = vld [vmem:[%s5720_s21 + $0xf8] sm:$0xff] }
  0xb5   :  { %768 = vmatmul.bf16.gmra.mxu1 %v556_v54  ;;  %v4113_v54 = vld [vmem:[%s5721_s26 + $0xf0] sm:$0xff] }
  0xb6   :  { %v305_v56 = vpop.f32.mrf.mxu0  ;;  %1075 = vmatpush.bf16.msrb.mxu1 %v4113_v54 }
  0xb7   :  { %v447_v59 = vpack.c.bf16 %v305_v56, %v305_v56 }
  0xb9   :  { %3329 = vmatmul.msk.f32.gmra.mxu0 %vm121_vm1, %v91_v57  ;;  %v552_v63 = vunpack.c.l.b16 %v447_v59 }
  0xba   :  { %1076 = vmatpush.bf16.msrb.mxu1 %v4112_v58 }
  0xbe   :  { %v308_v60 = vpop.f32.mrf.mxu0 }
  0xbf   :  { %v448_v62 = vpack.c.bf16 %v308_v60, %v308_v60  ;;  %v103_v60 = vld [vmem:[%s5720_s21 + $0x100] sm:$0xff] }
  0xc1   :  { %v553_v0 = vunpack.c.l.b16 %v448_v62  ;;  %3330 = vmatmul.msk.f32.gmra.mxu0 %vm121_vm1, %v92_v61  ;;  %v4111_v61 = vld [vmem:[%s5721_s26 + $0xe0] sm:$0xff]  ;;  %v4110_v62 = vld [vmem:[%s5721_s26 + $0xd8] sm:$0xff] }
  0xc2   :  { %1077 = vmatpush.bf16.msrb.mxu1 %v4111_v61  ;;  %v4123_v61 = vld [vmem:[%s5721_s26 + $0x140] sm:$0xff] }
  0xc3   :  { %v557_v1 = vpack.c.b16 %v553_v0, %v552_v63 }
  0xc5   :  { %773 = vmatmul.bf16.gmra.mxu1 %v557_v1  ;;  %v104_v1 = vld [vmem:[%s5720_s21 + $0x108] sm:$0xff] }
  0xc6   :  { %v311_v2 = vpop.f32.mrf.mxu0  ;;  %1078 = vmatpush.bf16.msrb.mxu1 %v4110_v62  ;;  %v4137_v62 = vld [vmem:[%s5721_s26 + $0x1b0] sm:$0xff] }
  0xc7   :  { %v449_v4 = vpack.c.bf16 %v311_v2, %v311_v2 }
  0xc9   :  { %3331 = vmatmul.msk.f32.gmra.mxu0 %vm121_vm1, %v93_v3  ;;  %v554_v7 = vunpack.c.l.b16 %v449_v4  ;;  %v4109_v3 = vld [vmem:[%s5721_s26 + $0xd0] sm:$0xff] }
  0xca   :  { %1079 = vmatpush.bf16.msrb.mxu1 %v4109_v3 }
  0xcb   :  { %v558_v8 = vpack.c.b16 %v554_v7, %v554_v7 }
  0xce   :  { %v314_v5 = vpop.f32.mrf.mxu0 }
  0xcf   :  { %v450_v10 = vpack.c.bf16 %v314_v5, %v314_v5 }
  0xd1   :  { %3332 = vmatmul.msk.f32.gmra.mxu0 %vm121_vm1, %v94_v6  ;;  %v570_v15 = vunpack.c.l.b16 %v450_v10 }
  0xd5   :  { %778 = vmatmul.bf16.gmra.mxu1 %v558_v8  ;;  %v4108_v8 = vld [vmem:[%s5721_s26 + $0xc8] sm:$0xff] }
  0xd6   :  { %v317_v11 = vpop.f32.mrf.mxu0  ;;  %1080 = vmatpush.bf16.msrb.mxu1 %v4108_v8  ;;  %v4135_v8 = vld [vmem:[%s5721_s26 + $0x1a0] sm:$0xff] }
  0xd7   :  { %v451_v13 = vpack.c.bf16 %v317_v11, %v317_v11  ;;  %v105_v11 = vld [vmem:[%s5720_s21 + $0x110] sm:$0xff] }
  0xd9   :  { %v571_v16 = vunpack.c.l.b16 %v451_v13  ;;  %3333 = vmatmul.msk.f32.gmra.mxu0 %vm121_vm1, %v95_v12  ;;  %v4107_v12 = vld [vmem:[%s5721_s26 + $0xc0] sm:$0xff]  ;;  %v4121_v13 = vld [vmem:[%s5721_s26 + $0x130] sm:$0xff] }
  0xda   :  { %1081 = vmatpush.bf16.msrb.mxu1 %v4107_v12  ;;  %1093 = vmatpush.bf16.msrb.mxu2 %v4121_v13  ;;  %v4134_v12 = vld [vmem:[%s5721_s26 + $0x198] sm:$0xff] }
  0xdb   :  { %v577_v17 = vpack.c.b16 %v571_v16, %v570_v15  ;;  %v4120_v15 = vld [vmem:[%s5721_s26 + $0x128] sm:$0xff]  ;;  %v4146_v13 = vld [vmem:[%s5721_s26 + $0x1f8] sm:$0xff] }
  0xdd   :  { %791 = vmatmul.bf16.vlgmr.msra.gmra.mxu2 %v577_v17 }
  0xde   :  { %v320_v19 = vpop.f32.mrf.mxu0  ;;  %1094 = vmatpush.bf16.msrb.mxu2 %v4120_v15 }
  0xdf   :  { %v452_v23 = vpack.c.bf16 %v320_v19, %v320_v19 }
  0xe1   :  { %3334 = vmatmul.msk.f32.gmra.mxu0 %vm121_vm1, %v96_v20  ;;  %v572_v28 = vunpack.c.l.b16 %v452_v23  ;;  %v4119_v20 = vld [vmem:[%s5721_s26 + $0x120] sm:$0xff] }
  0xe2   :  { %1095 = vmatpush.bf16.msrb.mxu2 %v4119_v20 }
  0xe6   :  { %v323_v24 = vpop.f32.mrf.mxu0 }
  0xe7   :  { %v453_v26 = vpack.c.bf16 %v323_v24, %v323_v24 }
  0xe9   :  { %v573_v29 = vunpack.c.l.b16 %v453_v26  ;;  %3335 = vmatmul.msk.f32.gmra.mxu0 %vm121_vm1, %v97_v25  ;;  %v4118_v25 = vld [vmem:[%s5721_s26 + $0x118] sm:$0xff] }
  0xea   :  { %1096 = vmatpush.bf16.msrb.mxu2 %v4118_v25  ;;  %v114_v25 = vld [vmem:[%s5720_s21 + $0x158] sm:$0xff] }
  0xeb   :  { %v578_v30 = vpack.c.b16 %v573_v29, %v572_v28  ;;  %v4117_v28 = vld [vmem:[%s5721_s26 + $0x110] sm:$0xff] }
  0xed   :  { %796 = vmatmul.bf16.gmra.mxu2 %v578_v30 }
  0xee   :  { %v326_v32 = vpop.f32.mrf.mxu0  ;;  %1097 = vmatpush.bf16.msrb.mxu2 %v4117_v28  ;;  %v4131_v28 = vld [vmem:[%s5721_s26 + $0x180] sm:$0xff] }
  0xef   :  { %v454_v35 = vpack.c.bf16 %v326_v32, %v326_v32  ;;  %v4130_v32 = vld [vmem:[%s5721_s26 + $0x178] sm:$0xff] }
  0xf0   :  { %1110 = vmatpush.bf16.msrb.mxu3 %v4130_v32  ;;  %v4142_v32 = vld [vmem:[%s5721_s26 + $0x1d8] sm:$0xff] }
  0xf1   :  { %3336 = vmatmul.msk.f32.gmra.mxu0 %vm121_vm1, %v98_v33  ;;  %v574_v39 = vunpack.c.l.b16 %v454_v35 }
  0xf2   :  { %1098 = vmatpush.bf16.msrb.mxu2 %v4116_v31 }
  0xf6   :  { %v329_v36 = vpop.f32.mrf.mxu0 }
  0xf7   :  { %v455_v38 = vpack.c.bf16 %v329_v36, %v329_v36  ;;  %v4115_v36 = vld [vmem:[%s5721_s26 + $0x100] sm:$0xff] }
  0xf8   :  { %1099 = vmatpush.bf16.msrb.mxu2 %v4115_v36  ;;  %v115_v36 = vld [vmem:[%s5720_s21 + $0x160] sm:$0xff] }
  0xf9   :  { %v575_v40 = vunpack.c.l.b16 %v455_v38  ;;  %3337 = vmatmul.msk.f32.gmra.mxu0 %vm121_vm1, %v99_v37  ;;  %v4129_v37 = vld [vmem:[%s5721_s26 + $0x170] sm:$0xff] }
  0xfa   :  { %1111 = vmatpush.bf16.msrb.mxu3 %v4129_v37 }
  0xfb   :  { %v579_v41 = vpack.c.b16 %v575_v40, %v574_v39  ;;  %v4128_v40 = vld [vmem:[%s5721_s26 + $0x168] sm:$0xff] }
  0xfc   :  { %1365 = vmatpush.bf16.msra.mxu2 %v4146_v13 }
  0xfd   :  { %801 = vmatmul.bf16.gmra.mxu2 %v579_v41 }
  0xfe   :  { %v332_v42 = vpop.f32.mrf.mxu0  ;;  %1112 = vmatpush.bf16.msrb.mxu3 %v4128_v40  ;;  %v4141_v40 = vld [vmem:[%s5721_s26 + $0x1d0] sm:$0xff] }
  0xff   :  { %v456_v44 = vpack.c.bf16 %v332_v42, %v332_v42 }
 0x101   :  { %3338 = vmatmul.msk.f32.gmra.mxu0 %vm121_vm1, %v100_v43  ;;  %v576_v47 = vunpack.c.l.b16 %v456_v44  ;;  %v109_v43 = vld [vmem:[%s5720_s21 + $0x130] sm:$0xff] }
 0x103   :  { %v580_v48 = vpack.c.b16 %v576_v47, %v576_v47 }
 0x106   :  { %v335_v45 = vpop.f32.mrf.mxu0 }
 0x107   :  { %v457_v50 = vpack.c.bf16 %v335_v45, %v335_v45  ;;  %v4127_v45 = vld [vmem:[%s5721_s26 + $0x160] sm:$0xff] }
 0x108   :  { %1113 = vmatpush.bf16.msrb.mxu3 %v4127_v45  ;;  %v4140_v45 = vld [vmem:[%s5721_s26 + $0x1c8] sm:$0xff] }
 0x109   :  { %3339 = vmatmul.msk.f32.gmra.mxu0 %vm121_vm1, %v101_v46  ;;  %v592_v55 = vunpack.c.l.b16 %v457_v50  ;;  %v4126_v50 = vld [vmem:[%s5721_s26 + $0x158] sm:$0xff] }
 0x10c   :  { %1114 = vmatpush.bf16.msrb.mxu3 %v4126_v50 }
 0x10d   :  { %806 = vmatmul.bf16.gmra.mxu2 %v580_v48 }
 0x10e   :  { %v338_v51 = vpop.f32.mrf.mxu0 }
 0x10f   :  { %v458_v53 = vpack.c.bf16 %v338_v51, %v338_v51 }
 0x111   :  { %v593_v56 = vunpack.c.l.b16 %v458_v53  ;;  %3340 = vmatmul.msk.f32.gmra.mxu0 %vm121_vm1, %v102_v52  ;;  %v110_v52 = vld [vmem:[%s5720_s21 + $0x138] sm:$0xff]  ;;  %v4125_v53 = vld [vmem:[%s5721_s26 + $0x150] sm:$0xff] }
 0x112   :  { %1115 = vmatpush.bf16.msrb.mxu3 %v4125_v53 }
 0x113   :  { %v599_v57 = vpack.c.b16 %v593_v56, %v592_v55  ;;  %v4124_v56 = vld [vmem:[%s5721_s26 + $0x148] sm:$0xff] }
 0x115   :  { %819 = vmatmul.bf16.vlgmr.msra.gmra.mxu3 %v599_v57  ;;  %v4138_v57 = vld [vmem:[%s5721_s26 + $0x1b8] sm:$0xff] }
 0x116   :  { %v341_v59 = vpop.f32.mrf.mxu0  ;;  %1116 = vmatpush.bf16.msrb.mxu3 %v4124_v56  ;;  %1351 = vmatpush.bf16.msra.mxu1 %v4138_v57  ;;  %v4162_v56 = vld [vmem:[%s5695_s3 + $0x38] sm:$0xff] }
 0x117   :  { %v459_v63 = vpack.c.bf16 %v341_v59, %v341_v59  ;;  %v111_v59 = vld [vmem:[%s5720_s21 + $0x140] sm:$0xff] }
 0x119   :  { %3341 = vmatmul.msk.f32.gmra.mxu0 %vm121_vm1, %v103_v60  ;;  %v594_v4 = vunpack.c.l.b16 %v459_v63 }
 0x11a   :  { %1117 = vmatpush.bf16.msrb.mxu3 %v4123_v61  ;;  %1352 = vmatpush.bf16.msra.mxu1 %v4137_v62  ;;  %v4149_v61 = vld [vmem:[%s5721_s26 + $0x210] sm:$0xff] }
 0x11b   :  { %v4161_v62 = vld [vmem:[%s5695_s3 + $0x30] sm:$0xff] }
 0x11e   :  { %v344_v0 = vpop.f32.mrf.mxu0 }
 0x11f   :  { %v460_v2 = vpack.c.bf16 %v344_v0, %v344_v0 }
 0x121   :  { %v595_v5 = vunpack.c.l.b16 %v460_v2  ;;  %3342 = vmatmul.msk.f32.gmra.mxu0 %vm121_vm1, %v104_v1  ;;  %v4136_v1 = vld [vmem:[%s5721_s26 + $0x1a8] sm:$0xff] }
 0x122   :  { %v4623_v6 = vpop.f32.mrf.mxu1  ;;  %1353 = vmatpush.bf16.msra.mxu1 %v4136_v1  ;;  %v4160_v1 = vld [vmem:[%s5695_s3 + $0x28] sm:$0xff] }
 0x123   :  { %v600_v7 = vpack.c.b16 %v595_v5, %v594_v4  ;;  %v112_v4 = vld [vmem:[%s5720_s21 + $0x148] sm:$0xff] }
 0x125   :  { %824 = vmatmul.bf16.gmra.mxu3 %v600_v7 }
 0x126   :  { %v347_v10 = vpop.f32.mrf.mxu0  ;;  %1354 = vmatpush.bf16.msra.mxu1 %v4135_v8 }
 0x127   :  { %v461_v16 = vpack.c.bf16 %v347_v10, %v347_v10 }
 0x129   :  { %3343 = vmatmul.msk.f32.gmra.mxu0 %vm121_vm1, %v105_v11  ;;  %v596_v21 = vunpack.c.l.b16 %v461_v16  ;;  %v113_v16 = vld [vmem:[%s5720_s21 + $0x150] sm:$0xff] }
 0x12a   :  { %v4641_v14 = vpop.f32.mrf.mxu1  ;;  %1355 = vmatpush.bf16.msra.mxu1 %v4134_v12 }
 0x12e   :  { %v350_v17 = vpop.f32.mrf.mxu0 }
 0x12f   :  { %v462_v19 = vpack.c.bf16 %v350_v17, %v350_v17 }
 0x131   :  { %v597_v22 = vunpack.c.l.b16 %v462_v19  ;;  %3344 = vmatmul.msk.f32.gmra.mxu0 %vm121_vm1, %v106_v18  ;;  %v4133_v18 = vld [vmem:[%s5721_s26 + $0x190] sm:$0xff] }
 0x132   :  { %v4653_v23 = vpop.f32.mrf.mxu1  ;;  %v4145_v19 = vld [vmem:[%s5721_s26 + $0x1f0] sm:$0xff]  ;;  %1356 = vmatpush.bf16.msra.mxu1 %v4133_v18 }
 0x133   :  { %v601_v24 = vpack.c.b16 %v597_v22, %v596_v21  ;;  %1366 = vmatpush.bf16.msra.mxu2 %v4145_v19  ;;  %v4132_v21 = vld [vmem:[%s5721_s26 + $0x188] sm:$0xff] }
 0x134   :  { %v4144_v22 = vld [vmem:[%s5721_s26 + $0x1e8] sm:$0xff] }
 0x135   :  { %829 = vmatmul.bf16.gmra.mxu3 %v601_v24 }
 0x136   :  { %v353_v26 = vpop.f32.mrf.mxu0  ;;  %1357 = vmatpush.bf16.msra.mxu1 %v4132_v21 }
 0x137   :  { %v463_v30 = vpack.c.bf16 %v353_v26, %v353_v26  ;;  %1367 = vmatpush.bf16.msra.mxu2 %v4144_v22 }
 0x139   :  { %3345 = vmatmul.msk.f32.gmra.mxu0 %vm121_vm1, %v107_v27  ;;  %v598_v35 = vunpack.c.l.b16 %v463_v30  ;;  %v4143_v30 = vld [vmem:[%s5721_s26 + $0x1e0] sm:$0xff] }
 0x13a   :  { %v4665_v29 = vpop.f32.mrf.mxu1  ;;  %1358 = vmatpush.bf16.msra.mxu1 %v4131_v28 }
 0x13b   :  { %v602_v39 = vpack.c.b16 %v598_v35, %v598_v35  ;;  %1368 = vmatpush.bf16.msra.mxu2 %v4143_v30 }
 0x13e   :  { %v356_v33 = vpop.f32.mrf.mxu0 }
 0x13f   :  { %v464_v41 = vpack.c.bf16 %v356_v33, %v356_v33  ;;  %v4154_v33 = vld [vmem:[%s5721_s26 + $0x238] sm:$0xff]  ;;  %1369 = vmatpush.bf16.msra.mxu2 %v4142_v32 }
 0x140   :  { %1379 = vmatpush.bf16.msra.mxu3 %v4154_v33  ;;  %v4155_v33 = vld [vmem:[%s5695_s3] sm:$0xff] }
 0x141   :  { %3346 = vmatmul.msk.f32.gmra.mxu0 %vm121_vm1, %v108_v34  ;;  %v898_v46 = vunpack.c.l.b16 %v464_v41  ;;  %v4153_v41 = vld [vmem:[%s5721_s26 + $0x230] sm:$0xff] }
 0x142   :  { %v4683_v38 = vpop.f32.mrf.mxu1 }
 0x143   :  { %1370 = vmatpush.bf16.msra.mxu2 %v4141_v40 }
 0x144   :  { %1380 = vmatpush.bf16.msra.mxu3 %v4153_v41 }
 0x145   :  { %834 = vmatmul.bf16.gmra.mxu3 %v602_v39 }
 0x146   :  { %v359_v42 = vpop.f32.mrf.mxu0 }
 0x147   :  { %v465_v44 = vpack.c.bf16 %v359_v42, %v359_v42  ;;  %1371 = vmatpush.bf16.msra.mxu2 %v4140_v45 }
 0x149   :  { %v899_v47 = vunpack.c.l.b16 %v465_v44  ;;  %3347 = vmatmul.msk.f32.gmra.mxu0 %vm121_vm1, %v109_v43 }
 0x14a   :  { %v4695_v48 = vpop.f32.mrf.mxu1 }
 0x14b   :  { %v901_v49 = vpack.c.b16 %v899_v47, %v898_v46  ;;  %v4152_v46 = vld [vmem:[%s5721_s26 + $0x228] sm:$0xff] }
 0x14c   :  { %1381 = vmatpush.bf16.msra.mxu3 %v4152_v46 }
 0x14d   :  { %1082 = vmatmul.bf16.vlgmr.msrb.gmra.mxu1 %v901_v49  ;;  %v116_v49 = vld [vmem:[%s5720_s21 + $0x168] sm:$0xff] }
 0x14e   :  { %v362_v51 = vpop.f32.mrf.mxu0  ;;  %1479 = vmatpush.bf16.msrb.mxu1 %v4162_v56 }
 0x14f   :  { %v466_v55 = vpack.c.bf16 %v362_v51, %v362_v51  ;;  %v4139_v51 = vld [vmem:[%s5721_s26 + $0x1c0] sm:$0xff] }
 0x150   :  { %1372 = vmatpush.bf16.msra.mxu2 %v4139_v51 }
 0x151   :  { %3348 = vmatmul.msk.f32.gmra.mxu0 %vm121_vm1, %v110_v52  ;;  %v900_v60 = vunpack.c.l.b16 %v466_v55  ;;  %v4151_v52 = vld [vmem:[%s5721_s26 + $0x220] sm:$0xff]  ;;  %v4150_v55 = vld [vmem:[%s5721_s26 + $0x218] sm:$0xff] }
 0x152   :  { %v4707_v54 = vpop.f32.mrf.mxu1  ;;  %1382 = vmatpush.bf16.msra.mxu3 %v4151_v52  ;;  %1480 = vmatpush.bf16.msrb.mxu1 %v4161_v62 }
 0x153   :  { %v902_v0 = vpack.c.b16 %v900_v60, %v900_v60 }
 0x156   :  { %v365_v58 = vpop.f32.mrf.mxu0  ;;  %1383 = vmatpush.bf16.msra.mxu3 %v4150_v55  ;;  %1481 = vmatpush.bf16.msrb.mxu1 %v4160_v1  ;;  %v4178_v1 = vld [vmem:[%s5696_s4 + $0x38] sm:$0xff] }
 0x157   :  { %v467_v2 = vpack.c.bf16 %v365_v58, %v365_v58  ;;  %v117_v58 = vld [vmem:[%s5720_s21 + $0x170] sm:$0xff] }
 0x159   :  { %3349 = vmatmul.msk.f32.gmra.mxu0 %vm121_vm1, %v111_v59  ;;  %v908_v9 = vunpack.c.l.b16 %v467_v2 }
 0x15a   :  { %v781_v63 = vpop.f32.mrf.mxu1  ;;  %1384 = vmatpush.bf16.msra.mxu3 %v4149_v61 }
 0x15d   :  { %1087 = vmatmul.bf16.gmra.mxu1 %v902_v0  ;;  %v4148_v0 = vld [vmem:[%s5721_s26 + $0x208] sm:$0xff] }
 0x15e   :  { %v368_v3 = vpop.f32.mrf.mxu0  ;;  %1385 = vmatpush.bf16.msra.mxu3 %v4148_v0 }
 0x15f   :  { %v468_v5 = vpack.c.bf16 %v368_v3, %v368_v3 }
 0x160   :  { %v4731_v7 = vpop.f32.mrf.mxu2 }
 0x161   :  { %v909_v10 = vunpack.c.l.b16 %v468_v5  ;;  %3350 = vmatmul.msk.f32.gmra.mxu0 %vm121_vm1, %v112_v4  ;;  %v118_v4 = vld [vmem:[%s5720_s21 + $0x178] sm:$0xff] }
 0x163   :  { %v911_v11 = vpack.c.b16 %v909_v10, %v908_v9  ;;  %v4147_v9 = vld [vmem:[%s5721_s26 + $0x200] sm:$0xff] }
 0x164   :  { %v4159_v10 = vld [vmem:[%s5695_s3 + $0x20] sm:$0xff]  ;;  %1386 = vmatpush.bf16.msra.mxu3 %v4147_v9 }
 0x165   :  { %1100 = vmatmul.bf16.vlgmr.msrb.gmra.mxu2 %v911_v11  ;;  %v4847_v11 = vld [vmem:[%s5722_s27] ss:$0 sm:$0xff]  ;;  %1482 = vmatpush.bf16.msrb.mxu1 %v4159_v10 }
 0x166   :  { %v371_v15 = vpop.f32.mrf.mxu0  ;;  %v765_v18 = vadd.f32 %v4847_v11, %v4623_v6  ;;  %v4156_v6 = vld [vmem:[%s5695_s3 + $0x8] sm:$0xff]  ;;  %v4167_v9 = vld [vmem:[%s5695_s3 + $0x60] sm:$0xff] }
 0x167   :  { %v469_v20 = vpack.c.bf16 %v371_v15, %v371_v15 }
 0x168   :  { %v4746_v17 = vpop.f32.mrf.mxu2  ;;  %v793_v21 = vadd.f32 %v4731_v7, %v765_v18  ;;  %v120_v7 = vld [vmem:[%s5720_s21 + $0x188] sm:$0xff] }
 0x169   :  { %3351 = vmatmul.msk.f32.gmra.mxu0 %vm121_vm1, %v113_v16  ;;  %v910_v26 = vunpack.c.l.b16 %v469_v20  ;;  %v4158_v16 = vld [vmem:[%s5695_s3 + $0x18] sm:$0xff]  ;;  %v119_v20 = vld [vmem:[%s5720_s21 + $0x180] sm:$0xff] }
 0x16a   :  { %1483 = vmatpush.bf16.msrb.mxu1 %v4158_v16 }
 0x16b   :  { %v912_v31 = vpack.c.b16 %v910_v26, %v910_v26 }
 0x16e   :  { %v374_v24 = vpop.f32.mrf.mxu0 }
 0x16f   :  { %v470_v34 = vpack.c.bf16 %v374_v24, %v374_v24 }
 0x170   :  { %v4764_v27 = vpop.f32.mrf.mxu2 }
 0x171   :  { %3352 = vmatmul.msk.f32.gmra.mxu0 %vm121_vm1, %v114_v25  ;;  %v918_v42 = vunpack.c.l.b16 %v470_v34  ;;  %v4157_v25 = vld [vmem:[%s5695_s3 + $0x10] sm:$0xff] }
 0x172   :  { %1484 = vmatpush.bf16.msrb.mxu1 %v4157_v25 }
 0x175   :  { %1105 = vmatmul.bf16.gmra.mxu2 %v912_v31 }
 0x176   :  { %v377_v35 = vpop.f32.mrf.mxu0  ;;  %1485 = vmatpush.bf16.msrb.mxu1 %v4156_v6 }
 0x177   :  { %v471_v37 = vpack.c.bf16 %v377_v35, %v377_v35 }
 0x178   :  { %v4782_v39 = vpop.f32.mrf.mxu2 }
 0x179   :  { %v919_v43 = vunpack.c.l.b16 %v471_v37  ;;  %3353 = vmatmul.msk.f32.gmra.mxu0 %vm121_vm1, %v115_v36  ;;  %v770_v37 = vadd.f32 %v4847_v11, %v4653_v23 }
 0x17a   :  { %1486 = vmatpush.bf16.msrb.mxu1 %v4155_v33  ;;  %v4163_v33 = vld [vmem:[%s5695_s3 + $0x40] sm:$0xff] }
 0x17b   :  { %v921_v44 = vpack.c.b16 %v919_v43, %v918_v42  ;;  %v798_v41 = vadd.f32 %v4764_v27, %v770_v37 }
 0x17d   :  { %1118 = vmatmul.bf16.vlgmr.msrb.gmra.mxu3 %v921_v44 }
 0x17e   :  { %v380_v47 = vpop.f32.mrf.mxu0 }
 0x17f   :  { %v472_v53 = vpack.c.bf16 %v380_v47, %v380_v47 }
 0x180   :  { %v4800_v50 = vpop.f32.mrf.mxu2 }
 0x181   :  { %3354 = vmatmul.msk.f32.gmra.mxu0 %vm121_vm1, %v116_v49  ;;  %v920_v59 = vunpack.c.l.b16 %v472_v53  ;;  %v775_v53 = vadd.f32 %v4847_v11, %v4683_v38  ;;  %v4169_v38 = vld [vmem:[%s5695_s3 + $0x70] sm:$0xff] }
 0x183   :  { %v922_v63 = vpack.c.b16 %v920_v59, %v920_v59  ;;  %v803_v55 = vadd.f32 %v4800_v50, %v775_v53 }
 0x186   :  { %v383_v57 = vpop.f32.mrf.mxu0 }
 0x187   :  { %v473_v2 = vpack.c.bf16 %v383_v57, %v383_v57  ;;  %v4170_v57 = vld [vmem:[%s5695_s3 + $0x78] sm:$0xff] }
 0x188   :  { %v4818_v60 = vpop.f32.mrf.mxu2  ;;  %1670 = vmatpush.bf16.msrb.mxu3 %v4170_v57 }
 0x189   :  { %3355 = vmatmul.msk.f32.gmra.mxu0 %vm121_vm1, %v117_v58  ;;  %v1186_v12 = vunpack.c.l.b16 %v473_v2  ;;  %v4168_v2 = vld [vmem:[%s5695_s3 + $0x68] sm:$0xff] }
 0x18c   :  { %1671 = vmatpush.bf16.msrb.mxu3 %v4169_v38 }
 0x18d   :  { %1123 = vmatmul.bf16.gmra.mxu3 %v922_v63 }
 0x18e   :  { %v386_v3 = vpop.f32.mrf.mxu0 }
 0x18f   :  { %v474_v5 = vpack.c.bf16 %v386_v3, %v386_v3 }
 0x190   :  { %v4836_v8 = vpop.f32.mrf.mxu2  ;;  %1672 = vmatpush.bf16.msrb.mxu3 %v4168_v2  ;;  %v4958_v2 = vld [vmem:[%s5719_s20] sm:$0xff] }
 0x191   :  { %v1187_v13 = vunpack.c.l.b16 %v474_v5  ;;  %3356 = vmatmul.msk.f32.gmra.mxu0 %vm121_vm1, %v118_v4  ;;  %v4177_v5 = vld [vmem:[%s5696_s4 + $0x30] sm:$0xff] }
 0x193   :  { %v1188_v15 = vpack.c.b16 %v1187_v13, %v1186_v12  ;;  %v4176_v12 = vld [vmem:[%s5696_s4 + $0x28] sm:$0xff]  ;;  %v4166_v13 = vld [vmem:[%s5695_s3 + $0x58] sm:$0xff] }
 0x194   :  { %1673 = vmatpush.bf16.msrb.mxu3 %v4167_v9 }
 0x195   :  { %1359 = vmatmul.bf16.vlgmr.msra.gmra.mxu1 %v1188_v15 }
 0x196   :  { %v389_v19 = vpop.f32.mrf.mxu0  ;;  %1859 = vmatpush.bf16.msra.mxu1 %v4178_v1 }
 0x197   :  { %v475_v28 = vpack.c.bf16 %v389_v19, %v389_v19 }
 0x198   :  { %v809_v22 = vpop.f32.mrf.mxu2  ;;  %v820_v24 = vpop.f32.mrf.mxu3  ;;  %1674 = vmatpush.bf16.msrb.mxu3 %v4166_v13 }
 0x199   :  { %v4862_v26 = vadd.f32 %v820_v24, %v793_v21  ;;  %3357 = vmatmul.msk.f32.gmra.mxu0 %vm121_vm1, %v119_v20  ;;  %v1192_v34 = vunpack.c.l.b16 %v475_v28  ;;  %v4175_v20 = vld [vmem:[%s5696_s4 + $0x20] sm:$0xff]  ;;  %v4165_v21 = vld [vmem:[%s5695_s3 + $0x50] sm:$0xff]  ;;  %v4174_v28 = vld [vmem:[%s5696_s4 + $0x18] sm:$0xff] }
 0x19a   :  { %1860 = vmatpush.bf16.msra.mxu1 %v4177_v5  ;;  %v4964_v5 = vld [vmem:[%s5719_s20 + $0x8] sm:$0xff] }
 0x19c   :  { %1675 = vmatpush.bf16.msrb.mxu3 %v4165_v21  ;;  %v4976_v21 = vld [vmem:[%s5699_s13] sm:$0x3] }
 0x19d   :  { %1985 = vxpose.xlu0.b32.start.end [1/1] (short) (narrow) %v4976_v21, 56 }
 0x19e   :  { %v392_v30 = vpop.f32.mrf.mxu0  ;;  %1861 = vmatpush.bf16.msra.mxu1 %v4176_v12 }
 0x19f   :  { %v476_v31 = vpack.c.bf16 %v392_v30, %v392_v30  ;;  %v4164_v30 = vld [vmem:[%s5695_s3 + $0x48] sm:$0xff] }
 0x1a0   :  { %v4871_v32 = vpop.f32.mrf.mxu3  ;;  %1676 = vmatpush.bf16.msrb.mxu3 %v4164_v30 }
 0x1a1   :  { %v1193_v35 = vunpack.c.l.b16 %v476_v31  ;;  %3358 = vmatmul.msk.f32.gmra.mxu0 %vm121_vm1, %v120_v7  ;;  %v4173_v31 = vld [vmem:[%s5696_s4 + $0x10] sm:$0xff] }
 0x1a2   :  { %1862 = vmatpush.bf16.msra.mxu1 %v4175_v20 }
 0x1a3   :  { %v1194_v36 = vpack.c.b16 %v1193_v35, %v1192_v34  ;;  %v4172_v35 = vld [vmem:[%s5696_s4 + $0x8] sm:$0xff] }
 0x1a4   :  { %1677 = vmatpush.bf16.msrb.mxu3 %v4163_v33  ;;  %v1775_v33 = vld [vmem:[%s5697_s8 + $0x10] sm:$0xff] }
 0x1a5   :  { %1373 = vmatmul.bf16.vlgmr.msra.gmra.mxu2 %v1194_v36 }
 0x1a6   :  { %v395_v40 = vpop.f32.mrf.mxu0  ;;  %1863 = vmatpush.bf16.msra.mxu1 %v4174_v28 }
 0x1a7   :  { %v477_v44 = vpack.c.bf16 %v395_v40, %v395_v40 }
 0x1a8   :  { %v825_v42 = vpop.f32.mrf.mxu3 }
 0x1a9   :  { %v4880_v43 = vadd.f32 %v825_v42, %v798_v41  ;;  %v1198_v49 = vunpack.c.l.b16 %v477_v44  ;;  %v4171_v41 = vld [vmem:[%s5696_s4] sm:$0xff] }
 0x1aa   :  { %1864 = vmatpush.bf16.msra.mxu1 %v4173_v31  ;;  %v4209_v31 = vld [vmem:[%s5722_s27 + $0x1] ss:$0 sm:$0xff] }
 0x1ae   :  { %v398_v45 = vpop.f32.mrf.mxu0  ;;  %1865 = vmatpush.bf16.msra.mxu1 %v4172_v35  ;;  %v1776_v35 = vld [vmem:[%s5697_s8 + $0x18] sm:$0xff] }
 0x1af   :  { %v478_v46 = vpack.c.bf16 %v398_v45, %v398_v45 }
 0x1b0   :  { %v4882_v47 = vpop.f32.mrf.mxu3 }
 0x1b1   :  { %v1199_v51 = vunpack.c.l.b16 %v478_v46 }
 0x1b2   :  { %1866 = vmatpush.bf16.msra.mxu1 %v4171_v41 }
 0x1b3   :  { %v1200_v52 = vpack.c.b16 %v1199_v51, %v1198_v49 }
 0x1b5   :  { %1387 = vmatmul.bf16.vlgmr.msra.gmra.mxu3 %v1200_v52 }
 0x1b6   :  { %v401_v23 = vpop.f32.mrf.mxu0 }
 0x1b7   :  { %v479_v58 = vpack.c.bf16 %v401_v23, %v401_v23 }
 0x1b8   :  { %v830_v56 = vpop.f32.mrf.mxu3 }
 0x1b9   :  { %v4887_v27 = vadd.f32 %v830_v56, %v803_v55  ;;  %v1416_v63 = vunpack.c.l.b16 %v479_v58 }
 0x1be   :  { %v404_v59 = vpop.f32.mrf.mxu0 }
 0x1bf   :  { %v480_v61 = vpack.c.bf16 %v404_v59, %v404_v59 }
 0x1c0   :  { %v4892_v62 = vpop.f32.mrf.mxu3 }
 0x1c1   :  { %v1417_v0 = vunpack.c.l.b16 %v480_v61 }
 0x1c3   :  { %v1423_v50 = vpack.c.b16 %v1417_v0, %v1416_v63  ;;  %v1773_v0 = vld [vmem:[%s5697_s8] sm:$0xff] }
 0x1c5   :  { %1487 = vmatmul.bf16.vlgmr.msrb.gmra.mxu1 %v1423_v50  ;;  %v1774_v50 = vld [vmem:[%s5697_s8 + $0x8] sm:$0xff] }
 0x1c6   :  { %v407_v3 = vpop.f32.mrf.mxu0  ;;  %v1781_v9 = vadd.f32 %v4964_v5, %v1774_v50 }
 0x1c7   :  { %v481_v15 = vpack.c.bf16 %v407_v3, %v407_v3  ;;  %v1780_v3 = vadd.f32 %v4958_v2, %v1773_v0 }
 0x1c8   :  { %v4903_v4 = vpop.f32.mrf.mxu3 }
 0x1c9   :  { %v1418_v22 = vunpack.c.l.b16 %v481_v15 }
 0x1ca   :  { %v4911_v10 = vpop.f32.mrf.mxu1 }
 0x1ce   :  { %v410_v16 = vpop.f32.mrf.mxu0 }
 0x1cf   :  { %v482_v18 = vpack.c.bf16 %v410_v16, %v410_v16  ;;  %v4967_v16 = vpack.c.bf16 %v1781_v9, %v1780_v3  ;;  %v4180_v9 = vld [vmem:[%s5696_s4 + $0x48] sm:$0xff] }
 0x1d0   :  { %v837_v19 = vpop.f32.mrf.mxu3 }
 0x1d1   :  { %v1419_v24 = vunpack.c.l.b16 %v482_v18  ;;  %v4186_v18 = vld [vmem:[%s5696_s4 + $0x78] sm:$0xff] }
 0x1d2   :  { %v4925_v25 = vpop.f32.mrf.mxu1  ;;  %1957 = vmatpush.bf16.msra.mxu3 %v4186_v18  ;;  %v841_v18 = vld [vmem:[%s5700_s6 + $0x10] sm:$0xff] }
 0x1d3   :  { %v1424_v6 = vpack.c.b16 %v1419_v24, %v1418_v22  ;;  %v4185_v22 = vld [vmem:[%s5696_s4 + $0x70] sm:$0xff] }
 0x1d5   :  { %1492 = vmatmul.bf16.gmra.mxu1 %v1424_v6 }
 0x1d6   :  { %v413_v7 = vpop.f32.mrf.mxu0  ;;  %1958 = vmatpush.bf16.msra.mxu3 %v4185_v22  ;;  %v4266_v22 = vld [vmem:[%s5719_s20 + $0x28] sm:$0xff] }
 0x1d7   :  { %v483_v36 = vpack.c.bf16 %v413_v7, %v413_v7  ;;  %v4184_v7 = vld [vmem:[%s5696_s4 + $0x68] sm:$0xff] }
 0x1d9   :  { %v1420_v42 = vunpack.c.l.b16 %v483_v36 }
 0x1da   :  { %v4939_v34 = vpop.f32.mrf.mxu1  ;;  %1959 = vmatpush.bf16.msra.mxu3 %v4184_v7 }
 0x1de   :  { %v416_v37 = vpop.f32.mrf.mxu0 }
 0x1df   :  { %v484_v40 = vpack.c.bf16 %v416_v37, %v416_v37  ;;  %v1089_v37 = vadd.f32 %v4209_v31, %v4939_v34  ;;  %v4183_v34 = vld [vmem:[%s5696_s4 + $0x60] sm:$0xff] }
 0x1e0   :  { %1960 = vmatpush.bf16.msra.mxu3 %v4183_v34 }
 0x1e1   :  { %v1421_v44 = vunpack.c.l.b16 %v484_v40  ;;  %v4998_v40 = vld [vmem:[%s5719_s20 + $0x10] sm:$0xff] }
 0x1e2   :  { %v1090_v45 = vpop.f32.mrf.mxu1  ;;  %v1782_v41 = vadd.f32 %v4998_v40, %v1775_v33  ;;  %v842_v33 = vld [vmem:[%s5700_s6 + $0x18] sm:$0xff] }
 0x1e3   :  { %v1425_v46 = vpack.c.b16 %v1421_v44, %v1420_v42  ;;  %v5004_v42 = vld [vmem:[%s5719_s20 + $0x18] sm:$0xff] }
 0x1e4   :  { %v1783_v44 = vadd.f32 %v5004_v42, %v1776_v35 }
 0x1e5   :  { %1497 = vmatmul.bf16.gmra.mxu1 %v1425_v46  ;;  %v1086_v46 = vadd.f32 %v4209_v31, %v4925_v25 }
 0x1e6   :  { %v419_v49 = vpop.f32.mrf.mxu0 }
 0x1e7   :  { %v485_v52 = vpack.c.bf16 %v419_v49, %v419_v49 }
 0x1e8   :  { %v4947_v51 = vpop.f32.mrf.mxu2 }
 0x1e9   :  { %v1422_v53 = vunpack.c.l.b16 %v485_v52 }
 0x1eb   :  { %v1426_v56 = vpack.c.b16 %v1422_v53, %v1422_v53  ;;  %v1084_v53 = vadd.f32 %v4209_v31, %v4911_v10  ;;  %v839_v10 = vld [vmem:[%s5700_s6] sm:$0xff]  ;;  %v4267_v31 = vld [vmem:[%s5719_s20 + $0x30] sm:$0x3] }
 0x1ee   :  { %v422_v23 = vpop.f32.mrf.mxu0 }
 0x1ef   :  { %v486_v57 = vpack.c.bf16 %v422_v23, %v422_v23 }
 0x1f0   :  { %v1103_v55 = vpop.f32.mrf.mxu2 }
 0x1f1   :  { %v1607_v59 = vunpack.c.l.b16 %v486_v57  ;;  %v1104_v23 = vadd.f32 %v1103_v55, %v1086_v46  ;;  %v5012_v57 = vpack.c.bf16 %v1783_v44, %v1782_v41  ;;  %v840_v55 = vld [vmem:[%s5700_s6 + $0x8] sm:$0xff]  ;;  %v843_v41 = vld [vmem:[%s5700_s6 + $0x20] sm:$0xff] }
 0x1f2   :  { %v844_v46 = vld [vmem:[%s5700_s6 + $0x28] sm:$0xff] }
 0x1f5   :  { %1502 = vmatmul.bf16.gmra.mxu1 %v1426_v56 }
 0x1f6   :  { %v425_v58 = vpop.f32.mrf.mxu0 }
 0x1f7   :  { %v487_v61 = vpack.c.bf16 %v425_v58, %v425_v58  ;;  %v4182_v58 = vld [vmem:[%s5696_s4 + $0x58] sm:$0xff] }
 0x1f8   :  { %v1106_v38 = vpop.f32.mrf.mxu2  ;;  %1961 = vmatpush.bf16.msra.mxu3 %v4182_v58 }
 0x1f9   :  { %v1608_v63 = vunpack.c.l.b16 %v487_v61  ;;  %v1107_v49 = vadd.f32 %v1106_v38, %v1089_v37  ;;  %v1779_v37 = vld [vmem:[%s5697_s8 + $0x30] sm:$0x3] }
 0x1fa   :  { %v1786_v44 = vadd.f32 %v4267_v31, %v1779_v37 }
 0x1fb   :  { %v1614_v1 = vpack.c.b16 %v1608_v63, %v1607_v59  ;;  %v1102_v59 = vadd.f32 %v4947_v51, %v1084_v53  ;;  %v4181_v63 = vld [vmem:[%s5696_s4 + $0x50] sm:$0xff] }
 0x1fc   :  { %1962 = vmatpush.bf16.msra.mxu3 %v4181_v63  ;;  %v1790_v34 = vpack.c.bf16 %v1786_v44, %v1786_v44  ;;  %v1130_v63 = vld [vmem:[%s5701_s7 + $0x10] sm:$0xff] }
 0x1fd   :  { %1678 = vmatmul.bf16.vlgmr.msrb.gmra.mxu3 %v1614_v1 }
 0x1fe   :  { %v428_v12 = vpop.f32.mrf.mxu0 }
 0x1ff   :  { %v488_v19 = vpack.c.bf16 %v428_v12, %v428_v12  ;;  %v1777_v12 = vld [vmem:[%s5697_s8 + $0x20] sm:$0xff] }
 0x200   :  { %v1108_v13 = vpop.f32.mrf.mxu2  ;;  %v1119_v15 = vpop.f32.mrf.mxu3  ;;  %1963 = vmatpush.bf16.msra.mxu3 %v4180_v9  ;;  %v1133_v9 = vld [vmem:[%s5701_s7 + $0x28] sm:$0xff] }
 0x201   :  { %v1609_v24 = vunpack.c.l.b16 %v488_v19  ;;  %v1120_v38 = vadd.f32 %v1119_v15, %v1102_v59  ;;  %v1778_v13 = vld [vmem:[%s5697_s8 + $0x28] sm:$0xff]  ;;  %v4265_v19 = vld [vmem:[%s5719_s20 + $0x20] sm:$0xff] }
 0x205   :  { %1867 = vmatmul.bf16.vlgmr.msra.gmra.mxu1 %v4967_v16 }
 0x206   :  { %v431_v20 = vpop.f32.mrf.mxu0 }
 0x207   :  { %v489_v6 = vpack.c.bf16 %v431_v20, %v431_v20  ;;  %v1784_v20 = vadd.f32 %v4265_v19, %v1777_v12 }
 0x208   :  { %v1121_v28 = vpop.f32.mrf.mxu3 }
 0x209   :  { %v1610_v30 = vunpack.c.l.b16 %v489_v6  ;;  %v1122_v61 = vadd.f32 %v1121_v28, %v1104_v23  ;;  %v4179_v28 = vld [vmem:[%s5696_s4 + $0x40] sm:$0xff] }
 0x20a   :  { %1964 = vmatpush.bf16.msra.mxu3 %v4179_v28 }
 0x20b   :  { %v1615_v36 = vpack.c.b16 %v1610_v30, %v1609_v24  ;;  %v1785_v24 = vadd.f32 %v4266_v22, %v1778_v13  ;;  %v1134_v13 = vld [vmem:[%s5701_s7 + $0x30] sm:$0x3] }
 0x20d   :  { %1683 = vmatmul.bf16.gmra.mxu3 %v1615_v36  ;;  %v1789_v7 = vpack.c.bf16 %v1785_v24, %v1784_v20 }
 0x20e   :  { %v434_v45 = vpop.f32.mrf.mxu0  ;;  %3946 = vmatpush.msk.msrb.mxu3 %vm272_vm0, %v4267_v31 }
 0x20f   :  { %v490_v25 = vpack.c.bf16 %v434_v45, %v434_v45 }
 0x210   :  { %v1124_v52 = vpop.f32.mrf.mxu3  ;;  %2291 = vmatpush.msrb.mxu3 %v4266_v22 }
 0x211   :  { %v1125_v56 = vadd.f32 %v1124_v52, %v1107_v49  ;;  %v1611_v0 = vunpack.c.l.b16 %v490_v25 }
 0x212   :  { %2292 = vmatpush.msrb.mxu3 %v4265_v19  ;;  %v1360_v45 = vpop.f32.mrf.mxu1 }
 0x213   :  { %3777 = vmatpush.msk.msrb.mxu0 %vm1529_vm2, %v1125_v56  ;;  %4203 = vmatpush.msk.msrb.mxu2 %vm1529_vm2, %v1125_v56 }
 0x214   :  { %2293 = vmatpush.msrb.mxu3 %v5004_v42 }
 0x215   :  { %1547 = vmatpush.msrb.mxu0 %v1122_v61  ;;  %4204 = vmatpush.msrb.mxu2 %v1122_v61 }
 0x216   :  { %1872 = vmatmul.bf16.gmra.mxu1 %v5012_v57  ;;  %v437_v51 = vpop.f32.mrf.mxu0  ;;  %2294 = vmatpush.msrb.mxu3 %v4998_v40 }
 0x217   :  { %1548 = vmatpush.msrb.mxu0 %v1120_v38  ;;  %4205 = vmatpush.msrb.mxu2 %v1120_v38  ;;  %v491_v50 = vpack.c.bf16 %v437_v51, %v437_v51 }
 0x218   :  { %v1126_v1 = vpop.f32.mrf.mxu3  ;;  %3778 = vmatmul.msk.f32.vlgmr.msrb.gmra.mxu0 %vm1507_vm3, %v839_v10  ;;  %3779 = vmatmul.msk.f32.vlgmr.msrb.gmra.mxu2 %vm1507_vm3, %v840_v55  ;;  %v1128_v10 = vld [vmem:[%s5701_s7] sm:$0xff]  ;;  %v1129_v55 = vld [vmem:[%s5701_s7 + $0x8] sm:$0xff] }
 0x219   :  { %v1612_v3 = vunpack.c.l.b16 %v491_v50  ;;  %2295 = vmatpush.msrb.mxu3 %v4964_v5  ;;  %v4210_v5 = vld [vmem:[%s5722_s27 + $0x2] ss:$0 sm:$0xff]  ;;  %v1131_v50 = vld [vmem:[%s5701_s7 + $0x18] sm:$0xff] }
 0x21a   :  { %v1362_v49 = vpop.f32.mrf.mxu1  ;;  %v1361_v23 = vadd.f32 %v4210_v5, %v1360_v45  ;;  %v1132_v1 = vld [vmem:[%s5701_s7 + $0x20] sm:$0xff] }
 0x21b   :  { %v1616_v15 = vpack.c.b16 %v1612_v3, %v1611_v0  ;;  %2296 = vmatpush.msrb.mxu3 %v4958_v2  ;;  %v1363_v53 = vadd.f32 %v4210_v5, %v1362_v49  ;;  %v845_v2 = vld [vmem:[%s5700_s6 + $0x30] sm:$0x3] }
 0x21d   :  { %1688 = vmatmul.bf16.gmra.mxu3 %v1616_v15 }
 0x21e   :  { %v440_v6 = vpop.f32.mrf.mxu0 }
 0x21f   :  { %v492_v30 = vpack.c.bf16 %v440_v6, %v440_v6 }
 0x220   :  { %3780 = vmatmul.msk.f32.gmra.mxu2 %vm1507_vm3, %v841_v18 }
 0x221   :  { %v1613_v35 = vunpack.c.l.b16 %v492_v30 }
 0x223   :  { %v1617_v36 = vpack.c.b16 %v1613_v35, %v1613_v35 }
 0x226   :  { %1877 = vmatmul.bf16.gmra.mxu1 %v1789_v7 }
 0x228   :  { %3781 = vmatmul.msk.f32.gmra.mxu2 %vm1507_vm3, %v842_v33  ;;  %v1374_v42 = vpop.f32.mrf.mxu2 }
 0x229   :  { %v1375_v59 = vadd.f32 %v1374_v42, %v1361_v23  ;;  %v4211_v42 = vld [vmem:[%s5698_s10] ss:$0 sm:$0xff] }
 0x22d   :  { %1693 = vmatmul.bf16.gmra.mxu3 %v1617_v36 }
 0x230   :  { %3782 = vmatmul.msk.f32.gmra.mxu2 %vm1507_vm3, %v843_v41  ;;  %v1376_v52 = vpop.f32.mrf.mxu2 }
 0x231   :  { %v1377_v56 = vadd.f32 %v1376_v52, %v1363_v53 }
 0x236   :  { %1882 = vmatmul.bf16.gmra.mxu1 %v1790_v34 }
 0x238   :  { %v1388_v40 = vpop.f32.mrf.mxu3  ;;  %3783 = vmatmul.msk.f32.gmra.mxu2 %vm1507_vm3, %v844_v46 }
 0x239   :  { %v1389_v38 = vadd.f32 %v1388_v40, %v1375_v59 }
 0x23d   :  { %1965 = vmatmul.bf16.vlgmr.msra.gmra.mxu3 %v4967_v16 }
 0x240   :  { %v1390_v58 = vpop.f32.mrf.mxu3  ;;  %3784 = vmatmul.msk.f32.gmra.mxu2 %vm1507_vm3, %v845_v2 }
 0x241   :  { %v1391_v61 = vadd.f32 %v1390_v58, %v1377_v56  ;;  %v5147_v44 = vpop.trf.xlu0 }
 0x242   :  { %v5083_v25 = vpop.f32.mrf.mxu1 }
 0x243   :  { %3834 = vmatpush.msk.msra.mxu2 %vm272_vm0, %v1391_v61 }
 0x245   :  { %1738 = vmatpush.msra.mxu2 %v1389_v38 }
 0x247   :  { %3924 = vmatpush.msk.msrb.mxu2 %vm272_vm0, %v4976_v21 }
 0x248   :  { %3835 = vmatmul.msk.f32.vlgmr.msra.gmra.mxu2 %vm1698_vm4, %v1128_v10 }
 0x249   :  { %v5158_v49 = vpop.trf.xlu0 }
 0x24a   :  { %v5092_v16 = vpop.f32.mrf.mxu1 }
 0x24d   :  { %1970 = vmatmul.bf16.gmra.mxu3 %v5012_v57 }
 0x250   :  { %3836 = vmatmul.msk.f32.gmra.mxu2 %vm1698_vm4, %v1129_v55 }
 0x251   :  { %v5164_v56 = vpop.trf.xlu0 }
 0x252   :  { %v5099_v51 = vpop.f32.mrf.mxu1 }
 0x258   :  { %3837 = vmatmul.msk.f32.gmra.mxu2 %vm1698_vm4, %v1130_v63 }
 0x259   :  { %v5170_v10 = vpop.trf.xlu0 }
 0x25a   :  { %v5105_v0 = vpop.f32.mrf.mxu1 }
 0x25d   :  { %1975 = vmatmul.bf16.gmra.mxu3 %v1789_v7 }
 0x260   :  { %3838 = vmatmul.msk.f32.gmra.mxu2 %vm1698_vm4, %v1131_v50  ;;  %v4214_v50 = vld [vmem:[%s5698_s10 + $0x1] ss:$0 sm:$0xff] }
 0x262   :  { %v5111_v57 = vpop.f32.mrf.mxu1 }
 0x268   :  { %3839 = vmatmul.msk.f32.gmra.mxu2 %vm1698_vm4, %v1132_v1 }
 0x26a   :  { %v5117_v3 = vpop.f32.mrf.mxu1 }
 0x26d   :  { %1980 = vmatmul.bf16.gmra.mxu3 %v1790_v34 }
 0x270   :  { %3840 = vmatmul.msk.f32.gmra.mxu2 %vm1698_vm4, %v1133_v9 }
 0x272   :  { %v5123_v12 = vpop.f32.mrf.mxu1 }
 0x278   :  { %3841 = vmatmul.msk.f32.gmra.mxu2 %vm1698_vm4, %v1134_v13  ;;  %v5181_v13 = vpop.trf.xlu0 }
 0x27a   :  { %v1505_v15 = vpop.f32.mrf.mxu1 }
 0x280   :  { %v5129_v18 = vpop.f32.mrf.mxu3  ;;  %3925 = vmatmul.msk.f32.vlgmr.msrb.gmra.mxu2 %vm2017_vm5, %v5147_v44 }
 0x282   :  { %v1868_v19 = vpop.f32.mrf.mxu1 }
 0x283   :  { %v1869_v9 = vadd.f32 %v4211_v42, %v1868_v19 }
 0x288   :  { %v5131_v20 = vpop.f32.mrf.mxu3  ;;  %3926 = vmatmul.msk.f32.gmra.mxu2 %vm2017_vm5, %v5158_v49 }
 0x28a   :  { %v1870_v22 = vpop.f32.mrf.mxu1 }
 0x28b   :  { %v1871_v55 = vadd.f32 %v4211_v42, %v1870_v22 }
 0x290   :  { %v5133_v24 = vpop.f32.mrf.mxu3  ;;  %3927 = vmatmul.msk.f32.gmra.mxu2 %vm2017_vm5, %v5164_v56 }
 0x293   :  { %v1873_v6 = vpop.f32.mrf.mxu1 }
 0x294   :  { %v1874_v38 = vadd.f32 %v4211_v42, %v1873_v6 }
 0x298   :  { %v5135_v28 = vpop.f32.mrf.mxu3  ;;  %3928 = vmatmul.msk.f32.gmra.mxu2 %vm2017_vm5, %v5170_v10 }
 0x29b   :  { %v1875_v30 = vpop.f32.mrf.mxu1  ;;  %v5137_v7 = vpop.f32.mrf.mxu2 }
 0x29c   :  { %v1876_v58 = vadd.f32 %v4211_v42, %v1875_v30  ;;  %v5189_v30 = vpop.trf.xlu0 }
 0x2a0   :  { %v5139_v31 = vpop.f32.mrf.mxu3  ;;  %3929 = vmatmul.msk.f32.gmra.mxu2 %vm2017_vm5, %v5181_v13 }
 0x2a3   :  { %v1878_v33 = vpop.f32.mrf.mxu1  ;;  %v5141_v35 = vpop.f32.mrf.mxu2 }
 0x2a4   :  { %v1879_v23 = vadd.f32 %v4211_v42, %v1878_v33 }
 0x2a8   :  { %v5143_v36 = vpop.f32.mrf.mxu3  ;;  %3930 = vmatmul.msk.f32.gmra.mxu2 %vm2017_vm5, %v5189_v30 }
 0x2ab   :  { %v1880_v37 = vpop.f32.mrf.mxu1  ;;  %v5145_v41 = vpop.f32.mrf.mxu2 }
 0x2ac   :  { %v1881_v5 = vadd.f32 %v4211_v42, %v1880_v37 }
 0x2b0   :  { %v5151_v45 = vpop.f32.mrf.mxu3 }
 0x2b3   :  { %v1883_v34 = vpop.f32.mrf.mxu1  ;;  %v5156_v46 = vpop.f32.mrf.mxu2 }
 0x2b4   :  { %v1884_v40 = vadd.f32 %v4211_v42, %v1883_v34  ;;  %v5194_v42 = vpop.trf.xlu0 }
 0x2b5   :  { %3931 = vmatmul.msk.f32.gmra.mxu2 %vm2017_vm5, %v5194_v42 }
 0x2b6   :  { %3932 = vmatpush.xpose.msk.msrb.mxu1 %vm2087_vm6, %v1884_v40 }
 0x2b8   :  { %v1696_v52 = vpop.f32.mrf.mxu3 }
 0x2ba   :  { %3933 = vmatpush.xpose.msk.msrb.mxu1 %vm2087_vm6, %v1881_v5 }
 0x2bb   :  { %v1885_v53 = vpop.f32.mrf.mxu1  ;;  %v1565_v2 = vpop.f32.mrf.mxu2 }
 0x2be   :  { %3934 = vmatpush.xpose.msk.msrb.mxu1 %vm2087_vm6, %v1879_v23 }
 0x2c0   :  { %v1966_v59 = vpop.f32.mrf.mxu3 }
 0x2c1   :  { %v1967_v15 = vadd.f32 %v4214_v50, %v1966_v59 }
 0x2c2   :  { %3935 = vmatpush.xpose.msk.msrb.mxu1 %vm2087_vm6, %v1876_v58 }
 0x2c3   :  { %v1568_v61 = vpop.f32.mrf.mxu2 }
 0x2c6   :  { %3936 = vmatpush.xpose.msk.msrb.mxu1 %vm2087_vm6, %v1874_v38 }
 0x2c8   :  { %v1968_v63 = vpop.f32.mrf.mxu3 }
 0x2c9   :  { %v1969_v33 = vadd.f32 %v4214_v50, %v1968_v63 }
 0x2ca   :  { %3937 = vmatpush.xpose.msk.msrb.mxu1 %vm2087_vm6, %v1871_v55  ;;  %v1569_v55 = vadd.f32 %v1568_v61, %v5123_v12 }
 0x2cb   :  { %v5179_v1 = vpop.f32.mrf.mxu2 }
 0x2ce   :  { %3938 = vmatpush.xpose.msk.msrb.mxu1 %vm2087_vm6, %v1869_v9  ;;  %v780_v9 = vadd.f32 %v4847_v11, %v4707_v54 }
 0x2d0   :  { %v1971_v6 = vpop.f32.mrf.mxu3  ;;  %v808_v12 = vadd.f32 %v4836_v8, %v780_v9  ;;  %v4213_v8 = vld [vmem:[%s5722_s27 + $0x4] ss:$0 sm:$0xff] }
 0x2d1   :  { %3939 = vmatmul.msk.f32.vlgmr.msrb.gmra.mxu1 %vm2087_vm6, %v1967_v15  ;;  %v1972_v34 = vadd.f32 %v4214_v50, %v1971_v6  ;;  %v4212_v15 = vld [vmem:[%s5722_s27 + $0x3] ss:$0 sm:$0xff]  ;;  %v1566_v6 = vadd.f32 %v1565_v2, %v5117_v3  ;;  %v1560_v2 = vadd.f32 %v5145_v41, %v5105_v0  ;;  %v1550_v41 = vpop.f32.mrf.mxu0 }
 0x2d2   :  { %v5214_v61 = vadd.f32 %v4212_v15, %v1569_v55  ;;  %v1741_v55 = vadd.f32 %v5179_v1, %v5129_v18 }
 0x2d3   :  { %v5187_v22 = vpop.f32.mrf.mxu2 }
 0x2d4   :  { %v5296_v1 = vadd.f32 %v4213_v8, %v1741_v55 }
 0x2d8   :  { %v1973_v19 = vpop.f32.mrf.mxu3 }
 0x2d9   :  { %3940 = vmatmul.msk.f32.gmra.mxu1 %vm2087_vm6, %v1969_v33  ;;  %v1974_v52 = vadd.f32 %v4214_v50, %v1973_v19  ;;  %v777_v19 = vadd.f32 %v4847_v11, %v4695_v48 }
 0x2db   :  { %v1746_v37 = vpop.f32.mrf.mxu2  ;;  %v805_v3 = vadd.f32 %v4818_v60, %v777_v19  ;;  %v1557_v60 = vadd.f32 %v5141_v35, %v5099_v51 }
 0x2dc   :  { %v1747_v35 = vadd.f32 %v1746_v37, %v5133_v24  ;;  %v1744_v24 = vadd.f32 %v5187_v22, %v5131_v20 }
 0x2e0   :  { %v1976_v40 = vpop.f32.mrf.mxu3 }
 0x2e1   :  { %3941 = vmatmul.msk.f32.gmra.mxu1 %vm2087_vm6, %v1972_v34  ;;  %v1977_v58 = vadd.f32 %v4214_v50, %v1976_v40  ;;  %v1563_v34 = vadd.f32 %v5156_v46, %v5111_v57  ;;  %v772_v40 = vadd.f32 %v4847_v11, %v4665_v29  ;;  %v5225_v57 = vadd.f32 %v4212_v15, %v1566_v6 }
 0x2e2   :  { %v5233_v29 = vadd.f32 %v4892_v62, %v805_v3  ;;  %v1554_v62 = vadd.f32 %v5137_v7, %v5092_v16  ;;  %v5263_v16 = vadd.f32 %v4212_v15, %v1557_v60  ;;  %v5291_v6 = vadd.f32 %v4213_v8, %v1744_v24 }
 0x2e3   :  { %v1749_v5 = vpop.f32.mrf.mxu2  ;;  %v5237_v0 = vadd.f32 %v4212_v15, %v1563_v34 }
 0x2e4   :  { %v2426_v51 = vadd.f32 %v5225_v57, %v5233_v29 }
 0x2e5   :  { %v2425_v7 = vadd.f32 %v5237_v0, %v4887_v27 }
 0x2e8   :  { %v1978_v53 = vpop.f32.mrf.mxu3 }
 0x2e9   :  { %3942 = vmatmul.msk.f32.gmra.mxu1 %vm2087_vm6, %v1974_v52  ;;  %v1979_v63 = vadd.f32 %v4214_v50, %v1978_v53  ;;  %v5223_v52 = vadd.f32 %v4903_v4, %v808_v12 }
 0x2eb   :  { %v1752_v23 = vpop.f32.mrf.mxu2  ;;  %v2427_v53 = vadd.f32 %v5214_v61, %v5223_v52 }
 0x2f0   :  { %v1981_v59 = vpop.f32.mrf.mxu3 }
 0x2f1   :  { %3943 = vmatmul.msk.f32.gmra.mxu1 %vm2087_vm6, %v1977_v58  ;;  %v1982_v4 = vadd.f32 %v4214_v50, %v1981_v59  ;;  %v1750_v58 = vadd.f32 %v1749_v5, %v5135_v28  ;;  %v767_v5 = vadd.f32 %v4847_v11, %v4641_v14 }
 0x2f3   :  { %v1755_v38 = vpop.f32.mrf.mxu2  ;;  %v5270_v37 = vadd.f32 %v4213_v8, %v1750_v58  ;;  %v795_v11 = vadd.f32 %v4746_v17, %v767_v5  ;;  %v2423_v17 = vadd.f32 %v5263_v16, %v4880_v43 }
 0x2f4   :  { %v1756_v54 = vadd.f32 %v1755_v38, %v5143_v36  ;;  %v1753_v36 = vadd.f32 %v1752_v23, %v5139_v31  ;;  %v5249_v23 = vadd.f32 %v4212_v15, %v1560_v2 }
 0x2f5   :  { %v5285_v22 = vadd.f32 %v4871_v32, %v795_v11 }
 0x2f6   :  { %v5242_v38 = vadd.f32 %v4213_v8, %v1756_v54  ;;  %v5254_v50 = vadd.f32 %v4213_v8, %v1753_v36 }
 0x2f8   :  { %v1983_v33 = vpop.f32.mrf.mxu3  ;;  %v2433_v14 = vadd.f32 %v2426_v51, %v5242_v38  ;;  %v2432_v20 = vadd.f32 %v2425_v7, %v5254_v50 }
 0x2f9   :  { %3944 = vmatmul.msk.f32.gmra.mxu1 %vm2087_vm6, %v1979_v63  ;;  %v5281_v63 = vadd.f32 %v4213_v8, %v1747_v35 }
 0x2fb   :  { %v1758_v48 = vpop.f32.mrf.mxu2  ;;  %v2430_v19 = vadd.f32 %v2423_v17, %v5281_v63 }
 0x2fc   :  { %v1759_v46 = vadd.f32 %v1758_v48, %v5151_v45  ;;  %v800_v45 = vadd.f32 %v4782_v39, %v772_v40  ;;  %v1551_v39 = vadd.f32 %v1550_v41, %v5083_v25 }
 0x2fe   :  { %v5244_v31 = vadd.f32 %v4213_v8, %v1759_v46  ;;  %v5260_v59 = vadd.f32 %v4882_v47, %v800_v45  ;;  %v5275_v47 = vadd.f32 %v4212_v15, %v1554_v62  ;;  %v5287_v9 = vadd.f32 %v4212_v15, %v1551_v39 }
 0x300   :  { %v2434_v28 = vadd.f32 %v2427_v53, %v5244_v31  ;;  %v2424_v25 = vadd.f32 %v5249_v23, %v5260_v59  ;;  %v2422_v18 = vadd.f32 %v5275_v47, %v5285_v22  ;;  %v2421_v32 = vadd.f32 %v5287_v9, %v4862_v26 }
 0x301   :  { %3945 = vmatmul.msk.f32.gmra.mxu1 %vm2087_vm6, %v1982_v4 }
 0x302   :  { %4003 = vmatpush.msk.msra.mxu3 %vm272_vm0, %v2434_v28  ;;  %v2431_v33 = vadd.f32 %v2424_v25, %v5270_v37  ;;  %v2429_v15 = vadd.f32 %v2422_v18, %v5291_v6  ;;  %v2428_v34 = vadd.f32 %v2421_v32, %v5296_v1 }
 0x303   :  { %v2059_v12 = vpop.f32.mrf.mxu2 }
 0x304   :  { %2450 = vmatpush.msra.mxu3 %v2433_v14  ;;  %vm2080_vm7 = vcmp.gt.f32.partialorder %v2059_v12, 0.5 }
 0x306   :  { %2451 = vmatpush.msra.mxu3 %v2432_v20 }
 0x308   :  { %2452 = vmatpush.msra.mxu3 %v2431_v33 }
 0x30a   :  { %2453 = vmatpush.msra.mxu3 %v2430_v19 }
 0x30b   :  { %v2062_v54 = vpop.f32.mrf.mxu2 }
 0x30c   :  { %2454 = vmatpush.msra.mxu3 %v2429_v15  ;;  %vm2081_vm8 = vcmp.gt.f32.partialorder %v2062_v54, 0.5 }
 0x30e   :  { %2455 = vmatpush.msra.mxu3 %v2428_v34 }
 0x313   :  { %v2065_v8 = vpop.f32.mrf.mxu2 }
 0x314   :  { %vm2082_vm9 = vcmp.gt.f32.partialorder %v2065_v8, 0.5 }
 0x31b   :  { %v2068_v41 = vpop.f32.mrf.mxu2 }
 0x31c   :  { %vm2083_vm10 = vcmp.gt.f32.partialorder %v2068_v41, 0.5 }
 0x323   :  { %v2071_v28 = vpop.f32.mrf.mxu2 }
 0x324   :  { %vm2084_vm11 = vcmp.gt.f32.partialorder %v2071_v28, 0.5 }
 0x32b   :  { %v2074_v11 = vpop.f32.mrf.mxu2 }
 0x32c   :  { %vm2085_vm12 = vcmp.gt.f32.partialorder %v2074_v11, 0.5 }
 0x338   :  { %v2077_v18 = vpop.f32.mrf.mxu2 }
 0x339   :  { %vm2086_vm13 = vcmp.gt.f32.partialorder %v2077_v18, 0.5 }
 0x34e   :  { %v2147_v40 = vpop.f32.mrf.mxu1 }
 0x34f   :  { %v2168_v3 = vmul.f32 0.03125, %v2147_v40 }
 0x351   :  { %v2175_v2 = vsel %vm2080_vm7, %v2168_v3, -1e+30 }
 0x352   :  { %v2182_v48 = vsel %vm121_vm1, %v2175_v2, -inf }
 0x353   :  { %2183 = vmax.xlane.f32.xlu0 %v2182_v48 }
 0x356   :  { %v2150_v36 = vpop.f32.mrf.mxu1 }
 0x357   :  { %v2169_v46 = vmul.f32 0.03125, %v2150_v36 }
 0x359   :  { %v2176_v60 = vsel %vm2081_vm8, %v2169_v46, -1e+30 }
 0x35a   :  { %v2185_v4 = vsel %vm121_vm1, %v2176_v60, -inf }
 0x35b   :  { %2186 = vmax.xlane.f32.xlu1 %v2185_v4 }
 0x35e   :  { %v2153_v53 = vpop.f32.mrf.mxu1 }
 0x35f   :  { %v2170_v58 = vmul.f32 0.03125, %v2153_v53 }
 0x361   :  { %v2177_v45 = vsel %vm2082_vm9, %v2170_v58, -1e+30 }
 0x362   :  { %v2188_v62 = vsel %vm121_vm1, %v2177_v45, -inf }
 0x363   :  { %2189 = vmax.xlane.f32.xlu1 %v2188_v62 }
 0x366   :  { %v2156_v51 = vpop.f32.mrf.mxu1 }
 0x367   :  { %v2171_v35 = vmul.f32 0.03125, %v2156_v51 }
 0x369   :  { %v2178_v5 = vsel %vm2083_vm10, %v2171_v35, -1e+30 }
 0x36a   :  { %v2191_v39 = vsel %vm121_vm1, %v2178_v5, -inf }
 0x36b   :  { %2192 = vmax.xlane.f32.xlu2 %v2191_v39 }
 0x36e   :  { %v2159_v7 = vpop.f32.mrf.mxu1 }
 0x36f   :  { %v2172_v24 = vmul.f32 0.03125, %v2159_v7 }
 0x371   :  { %v2179_v14 = vsel %vm2084_vm11, %v2172_v24, -1e+30 }
 0x372   :  { %v2194_v25 = vsel %vm121_vm1, %v2179_v14, -inf }
 0x373   :  { %2195 = vmax.xlane.f32.xlu2 %v2194_v25 }
 0x376   :  { %v2162_v55 = vpop.f32.mrf.mxu1 }
 0x377   :  { %v2173_v20 = vmul.f32 0.03125, %v2162_v55 }
 0x379   :  { %v2180_v17 = vsel %vm2085_vm12, %v2173_v20, -1e+30 }
 0x37a   :  { %v2197_v33 = vsel %vm121_vm1, %v2180_v17, -inf }
 0x37b   :  { %2198 = vmax.xlane.f32.xlu1 %v2197_v33 }
 0x37e   :  { %v2165_v19 = vpop.f32.mrf.mxu1 }
 0x37f   :  { %v2174_v32 = vmul.f32 0.03125, %v2165_v19 }
 0x381   :  { %v2181_v15 = vsel %vm2086_vm13, %v2174_v32, -1e+30 }
 0x382   :  { %v2201_v34 = vsel %vm2200_vm14, %v2181_v15, -inf }
 0x383   :  { %2202 = vmax.xlane.f32.xlu2 %v2201_v34 }
 0x3c6   :  { %v2184_v12 = vpop.xlane.xlu0 %2183 }
 0x3c7   :  { %v2204_v54 = vsub.f32 %v2175_v2, %v2184_v12 }
 0x3c9   :  { %v2211_v40 = vmul.f32 1.442695, %v2204_v54 }
 0x3cb   :  { %4221 = vpow2.f32 %v2211_v40 }
 0x3ce   :  { %v2187_v3 = vpop.xlane.xlu1 %2186 }
 0x3cf   :  { %v2205_v48 = vsub.f32 %v2176_v60, %v2187_v3 }
 0x3d1   :  { %v4222_v8 = vpop.eup %4221  ;;  %v2213_v36 = vmul.f32 1.442695, %v2205_v48 }
 0x3d2   :  { %v2225_v46 = vsel %vm121_vm1, %v4222_v8, 0.0 }
 0x3d3   :  { %4223 = vpow2.f32 %v2213_v36  ;;  %2226 = vadd.xlane.f32.xlu1 %v2225_v46 }
 0x3d6   :  { %v2190_v4 = vpop.xlane.xlu1 %2189 }
 0x3d7   :  { %v2206_v41 = vsub.f32 %v2177_v45, %v2190_v4 }
 0x3d9   :  { %v4224_v53 = vpop.eup %4223  ;;  %v2215_v58 = vmul.f32 1.442695, %v2206_v41 }
 0x3da   :  { %v2228_v62 = vsel %vm121_vm1, %v4224_v53, 0.0 }
 0x3db   :  { %4225 = vpow2.f32 %v2215_v58  ;;  %2229 = vadd.xlane.f32.xlu2 %v2228_v62 }
 0x3de   :  { %v2193_v51 = vpop.xlane.xlu2 %2192 }
 0x3df   :  { %v2207_v2 = vsub.f32 %v2178_v5, %v2193_v51 }
 0x3e1   :  { %v4226_v35 = vpop.eup %4225  ;;  %v2217_v28 = vmul.f32 1.442695, %v2207_v2 }
 0x3e2   :  { %v2231_v60 = vsel %vm121_vm1, %v4226_v35, 0.0 }
 0x3e3   :  { %4227 = vpow2.f32 %v2217_v28  ;;  %2232 = vadd.xlane.f32.xlu1 %v2231_v60 }
 0x3e6   :  { %v2196_v39 = vpop.xlane.xlu2 %2195 }
 0x3e7   :  { %v2208_v7 = vsub.f32 %v2179_v14, %v2196_v39  ;;  %v4192_v39 = vld [vmem:[%s5695_s3 + $0xa8] sm:$0xff] }
 0x3e9   :  { %v4228_v24 = vpop.eup %4227  ;;  %v2219_v11 = vmul.f32 1.442695, %v2208_v7  ;;  %v4191_v7 = vld [vmem:[%s5695_s3 + $0xa0] sm:$0xff] }
 0x3ea   :  { %v2234_v45 = vsel %vm121_vm1, %v4228_v24, 0.0 }
 0x3eb   :  { %4229 = vpow2.f32 %v2219_v11  ;;  %2235 = vadd.xlane.f32.xlu2 %v2234_v45 }
 0x3ee   :  { %v2199_v25 = vpop.xlane.xlu1 %2198 }
 0x3ef   :  { %v2209_v55 = vsub.f32 %v2180_v17, %v2199_v25  ;;  %v4190_v25 = vld [vmem:[%s5695_s3 + $0x98] sm:$0xff] }
 0x3f1   :  { %v4230_v20 = vpop.eup %4229  ;;  %v2221_v33 = vmul.f32 1.442695, %v2209_v55 }
 0x3f2   :  { %v2237_v5 = vsel %vm121_vm1, %v4230_v20, 0.0 }
 0x3f3   :  { %4231 = vpow2.f32 %v2221_v33  ;;  %2238 = vadd.xlane.f32.xlu1 %v2237_v5  ;;  %v4189_v33 = vld [vmem:[%s5695_s3 + $0x90] sm:$0xff]  ;;  %v4188_v5 = vld [vmem:[%s5695_s3 + $0x88] sm:$0xff] }
 0x3f6   :  { %v2203_v18 = vpop.xlane.xlu2 %2202 }
 0x3f7   :  { %v2210_v19 = vsub.f32 %v2181_v15, %v2203_v18  ;;  %v4187_v18 = vld [vmem:[%s5695_s3 + $0x80] sm:$0xff] }
 0x3f9   :  { %v4232_v32 = vpop.eup %4231  ;;  %v2223_v34 = vmul.f32 1.442695, %v2210_v19 }
 0x3fa   :  { %v2240_v14 = vsel %vm121_vm1, %v4232_v32, 0.0 }
 0x3fb   :  { %4233 = vpow2.f32 %v2223_v34  ;;  %2241 = vadd.xlane.f32.xlu2 %v2240_v14  ;;  %v5353_v14 = vld [vmem:[%s5702_s12] sm:$0xff] }
 0x3fc   :  { %2907 = vmatpush.xpose.msra.mxu0 %v5353_v14 }
 0x400   :  { %2928 = vmatpush.xpose.msrb.mxu0 %v5353_v14 }
 0x401   :  { %v4234_v12 = vpop.eup %4233 }
 0x402   :  { %v2243_v54 = vsel %vm2200_vm14, %v4234_v12, 0.0 }
 0x403   :  { %2244 = vadd.xlane.f32.xlu1 %v2243_v54 }
 0x446   :  { %v2227_v40 = vpop.xlane.xlu1 %2226 }
 0x447   :  { %4235 = vrcp.f32 %v2227_v40 }
 0x44d   :  { %v4236_v17 = vpop.eup %4235 }
 0x44e   :  { %v2253_v3 = vmul.f32 %v4236_v17, %v4222_v8  ;;  %v2230_v48 = vpop.xlane.xlu2 %2229  ;;  %v4194_v8 = vld [vmem:[%s5695_s3 + $0xb8] sm:$0xff] }
 0x44f   :  { %4237 = vrcp.f32 %v2230_v48  ;;  %2393 = vmatpush.bf16.msra.mxu2 %v4194_v8 }
 0x450   :  { %3947 = vmatmul.msk.f32.vlgmr.msrb.gmra.mxu3 %vm121_vm1, %v2253_v3 }
 0x451   :  { %2475 = vmatpush.xpose.msrb.mxu3 %v5353_v14 }
 0x455   :  { %v4238_v36 = vpop.eup %4237 }
 0x456   :  { %v2233_v15 = vpop.xlane.xlu1 %2232  ;;  %v2254_v46 = vmul.f32 %v4238_v36, %v4224_v53  ;;  %v4193_v53 = vld [vmem:[%s5695_s3 + $0xb0] sm:$0xff] }
 0x457   :  { %4239 = vrcp.f32 %v2233_v15  ;;  %2394 = vmatpush.bf16.msra.mxu2 %v4193_v53 }
 0x458   :  { %3948 = vmatmul.msk.f32.gmra.mxu3 %vm121_vm1, %v2254_v46  ;;  %v2481_v46 = vld [vmem:[%s5704_s14] sm:$0xf] }
 0x459   :  { %4005 = vmatpush.xpose.msk.msra.mxu1 %vm2486_vm15, %v2481_v46 }
 0x45b   :  { %2395 = vmatpush.bf16.msra.mxu2 %v4192_v39  ;;  %v4009_v39 = vld [vmem:[%s5706_s16 + $0x8] sm:$0xff] }
 0x45d   :  { %v4240_v4 = vpop.eup %4239 }
 0x45e   :  { %v2236_v41 = vpop.xlane.xlu2 %2235  ;;  %v2255_v58 = vmul.f32 %v4240_v4, %v4226_v35 }
 0x45f   :  { %4241 = vrcp.f32 %v2236_v41  ;;  %2396 = vmatpush.bf16.msra.mxu2 %v4191_v7  ;;  %v4013_v7 = vld [vmem:[%s5706_s16 + $0x10] sm:$0xff] }
 0x460   :  { %3949 = vmatmul.msk.f32.gmra.mxu3 %vm121_vm1, %v2255_v58 }
 0x463   :  { %2397 = vmatpush.bf16.msra.mxu2 %v4190_v25 }
 0x465   :  { %v4242_v62 = vpop.eup %4241 }
 0x466   :  { %v2239_v51 = vpop.xlane.xlu1 %2238  ;;  %v2256_v2 = vmul.f32 %v4242_v62, %v4228_v24 }
 0x467   :  { %4243 = vrcp.f32 %v2239_v51  ;;  %2398 = vmatpush.bf16.msra.mxu2 %v4189_v33 }
 0x468   :  { %3950 = vmatmul.msk.f32.gmra.mxu3 %vm121_vm1, %v2256_v2 }
 0x46b   :  { %2399 = vmatpush.bf16.msra.mxu2 %v4188_v5 }
 0x46d   :  { %v4244_v28 = vpop.eup %4243 }
 0x46e   :  { %v2242_v35 = vpop.xlane.xlu2 %2241  ;;  %v2257_v60 = vmul.f32 %v4244_v28, %v4230_v20 }
 0x46f   :  { %4245 = vrcp.f32 %v2242_v35  ;;  %2400 = vmatpush.bf16.msra.mxu2 %v4187_v18  ;;  %v4219_v18 = vld [vmem:[%s5705_s17 + $0x2] ss:$0 sm:$0xff] }
 0x470   :  { %3951 = vmatmul.msk.f32.gmra.mxu3 %vm121_vm1, %v2257_v60  ;;  %v2513_v60 = vld [vmem:[%s5706_s16] sm:$0xff] }
 0x475   :  { %v4246_v24 = vpop.eup %4245 }
 0x476   :  { %v2258_v11 = vmul.f32 %v4246_v24, %v4232_v32  ;;  %v2245_v45 = vpop.xlane.xlu1 %2244  ;;  %v4216_v24 = vld [vmem:[%s5703_s15] ss:$0 sm:$0xff] }
 0x477   :  { %4247 = vrcp.f32 %v2245_v45 }
 0x478   :  { %3952 = vmatmul.msk.f32.gmra.mxu3 %vm121_vm1, %v2258_v11 }
 0x47d   :  { %v4248_v55 = vpop.eup %4247 }
 0x47e   :  { %v2259_v20 = vmul.f32 %v4248_v55, %v4234_v12  ;;  %v4217_v55 = vld [vmem:[%s5705_s17] ss:$0 sm:$0xff] }
 0x480   :  { %3953 = vmatmul.msk.f32.gmra.mxu3 %vm121_vm1, %v2259_v20  ;;  %v4218_v20 = vld [vmem:[%s5705_s17 + $0x1] ss:$0 sm:$0xff] }
 0x488   :  { %4004 = vmatmul.msk.f32.vlgmr.msra.gmra.mxu3 %vm121_vm1, %v4976_v21  ;;  %vm2518_vm1 = vcmask 31744  }
 0x489   :  { %4007 = vmatpush.xpose.msk.msra.mxu3 %vm2518_vm1, %v2513_v60  ;;  %4011 = vmatpush.xpose.msk.msrb.mxu1 %vm2518_vm1, %v4009_v39 }
 0x4d3   :  { %v2298_v19 = vpop.f32.mrf.mxu3 }
 0x4db   :  { %v2301_v32 = vpop.f32.mrf.mxu3 }
 0x4dc   :  { %v2319_v34 = vpack.c.bf16 %v2301_v32, %v2298_v19 }
 0x4de   :  { %2401 = vmatmul.bf16.vlgmr.msra.gmra.mxu2 %v2319_v34 }
 0x4e3   :  { %v2304_v21 = vpop.f32.mrf.mxu3 }
 0x4eb   :  { %v2307_v12 = vpop.f32.mrf.mxu3 }
 0x4ec   :  { %v2320_v54 = vpack.c.bf16 %v2307_v12, %v2304_v21 }
 0x4ee   :  { %2406 = vmatmul.bf16.gmra.mxu2 %v2320_v54 }
 0x4f3   :  { %v2310_v40 = vpop.f32.mrf.mxu3 }
 0x4fb   :  { %v2313_v17 = vpop.f32.mrf.mxu3 }
 0x4fc   :  { %v2321_v3 = vpack.c.bf16 %v2313_v17, %v2310_v40 }
 0x4fe   :  { %2411 = vmatmul.bf16.gmra.mxu2 %v2321_v3 }
 0x503   :  { %v2316_v48 = vpop.f32.mrf.mxu3 }
 0x504   :  { %v2322_v15 = vpack.c.bf16 %v2316_v48, %v2316_v48 }
 0x50b   :  { %v2457_v36 = vpop.f32.mrf.mxu3 }
 0x50c   :  { %2476 = vmatmul.f32.vlgmr.msrb.gmra.mxu3 %v2457_v36 }
 0x50d   :  { %4015 = vmatpush.xpose.msk.msrb.mxu3 %vm2518_vm1, %v4013_v7 }
 0x50e   :  { %2416 = vmatmul.bf16.gmra.mxu2 %v2322_v15 }
 0x561   :  { %v5362_v4 = vpop.f32.mrf.mxu2 }
 0x569   :  { %v5364_v41 = vpop.f32.mrf.mxu2 }
 0x571   :  { %v5366_v58 = vpop.f32.mrf.mxu2 }
 0x579   :  { %v5368_v62 = vpop.f32.mrf.mxu2 }
 0x581   :  { %v5370_v51 = vpop.f32.mrf.mxu2 }
 0x589   :  { %v5372_v2 = vpop.f32.mrf.mxu2 }
 0x58f   :  { %v2477_v8 = vpop.f32.mrf.mxu3 }
 0x590   :  { %v2480_v53 = vmul.f32 0.0025, %v2477_v8 }
 0x591   :  { %v5374_v28 = vpop.f32.mrf.mxu2 }
 0x592   :  { %4006 = vmatmul.msk.f32.vlgmr.msra.gmra.mxu1 %vm2486_vm15, %v2480_v53 }
 0x593   :  { %2638 = vmatpush.msra.mxu1 %v5353_v14 }
 0x599   :  { %v2419_v35 = vpop.f32.mrf.mxu2 }
 0x60f   :  { %v2510_v11 = vpop.f32.mrf.mxu1 }
 0x610   :  { %v2511_v45 = vadd.f32 %v4216_v24, %v2510_v11 }
 0x612   :  { %4008 = vmatmul.msk.f32.vlgmr.msra.gmra.mxu3 %vm2518_vm1, %v2511_v45  ;;  %4012 = vmatmul.msk.f32.vlgmr.msrb.gmra.mxu1 %vm2518_vm1, %v2511_v45 }
 0x613   :  { %2710 = vmatpush.msrb.mxu1 %v5353_v14 }
 0x61a   :  { %4016 = vmatmul.msk.f32.vlgmr.msrb.gmra.mxu3 %vm2518_vm1, %v2511_v45 }
 0x68f   :  { %v2572_v33 = vpop.f32.mrf.mxu1 }
 0x690   :  { %v2573_v19 = vadd.f32 %v4218_v20, %v2572_v33 }
 0x695   :  { %v2542_v25 = vpop.f32.mrf.mxu3 }
 0x696   :  { %v2543_v5 = vadd.f32 %v4217_v55, %v2542_v25 }
 0x698   :  { %v2605_v34 = vmax.f32 %v2543_v5, %v2573_v19 }
 0x69d   :  { %v2602_v32 = vpop.f32.mrf.mxu3 }
 0x69e   :  { %v2603_v21 = vadd.f32 %v4219_v18, %v2602_v32 }
 0x6a0   :  { %v2606_v12 = vmax.f32 %v2605_v34, %v2603_v21 }
 0x6a2   :  { %v2607_v54 = vsub.f32 %v2543_v5, %v2606_v12  ;;  %v2610_v40 = vsub.f32 %v2573_v19, %v2606_v12  ;;  %v2613_v17 = vsub.f32 %v2603_v21, %v2606_v12 }
 0x6a4   :  { %v2608_v3 = vmul.f32 1.442695, %v2607_v54  ;;  %v2611_v48 = vmul.f32 1.442695, %v2610_v40  ;;  %v2614_v36 = vmul.f32 1.442695, %v2613_v17 }
 0x6a6   :  { %4249 = vpow2.f32 %v2608_v3 }
 0x6a7   :  { %4251 = vpow2.f32 %v2611_v48 }
 0x6a8   :  { %4253 = vpow2.f32 %v2614_v36 }
 0x6ac   :  { %v4250_v15 = vpop.eup %4249 }
 0x6ad   :  { %v4252_v46 = vpop.eup %4251 }
 0x6ae   :  { %v2616_v8 = vadd.f32 %v4252_v46, %v4250_v15  ;;  %v4254_v53 = vpop.eup %4253 }
 0x6b0   :  { %v2617_v35 = vadd.f32 %v4254_v53, %v2616_v8 }
 0x6b2   :  { %4255 = vrcp.f32 %v2617_v35 }
 0x6b8   :  { %v4256_v60 = vpop.eup %4255 }
 0x6b9   :  { %v2619_v39 = vmul.f32 %v4256_v60, %v4250_v15  ;;  %v2770_v7 = vmul.f32 %v4256_v60, %v4254_v53  ;;  %v2691_v24 = vmul.f32 %v4256_v60, %v4252_v46 }
 0x6bb   :  { %4017 = vmatmul.msk.f32.vlgmr.msra.gmra.mxu1 %vm2486_vm15, %v2619_v39 }
 0x6c3   :  { %4026 = vmatmul.msk.f32.vlgmr.msrb.gmra.mxu1 %vm2486_vm15, %v2691_v24 }
 0x738   :  { %v2640_v11 = vpop.f32.mrf.mxu1 }
 0x739   :  { %4018 = vmatpush.msk.msra.mxu3 %vm272_vm0, %v2640_v11 }
 0x73a   :  { %4019 = vmatmul.msk.f32.vlgmr.msra.gmra.mxu3 %vm2017_vm5, %v5147_v44 }
 0x73b   :  { %2968 = vmatpush.msrb.mxu3 %v5353_v14 }
 0x73d   :  { %3178 = vmatpush.xpose.msra.mxu3 %v5353_v14 }
 0x740   :  { %v2712_v45 = vpop.f32.mrf.mxu1 }
 0x741   :  { %4027 = vmatpush.msk.msra.mxu1 %vm272_vm0, %v2712_v45  ;;  %4206 = vmatpush.msk.msrb.mxu2 %vm272_vm0, %v2712_v45 }
 0x742   :  { %4020 = vmatmul.msk.f32.gmra.mxu3 %vm2017_vm5, %v5158_v49  ;;  %4028 = vmatmul.msk.f32.vlgmr.msra.gmra.mxu1 %vm2017_vm5, %v5147_v44 }
 0x743   :  { %4031 = vmatmul.msk.f32.vlgmr.msrb.gmra.mxu2 %vm2017_vm5, %v5170_v10  ;;  %2789 = vmatpush.msrb.mxu1 %v5353_v14 }
 0x74a   :  { %4021 = vmatmul.msk.f32.gmra.mxu3 %vm2017_vm5, %v5164_v56  ;;  %4029 = vmatmul.msk.f32.gmra.mxu1 %vm2017_vm5, %v5158_v49 }
 0x74b   :  { %4032 = vmatmul.msk.f32.gmra.mxu2 %vm2017_vm5, %v5181_v13 }
 0x752   :  { %4022 = vmatmul.msk.f32.gmra.mxu3 %vm2017_vm5, %v5170_v10  ;;  %4030 = vmatmul.msk.f32.gmra.mxu1 %vm2017_vm5, %v5164_v56 }
 0x753   :  { %4033 = vmatmul.msk.f32.gmra.mxu2 %vm2017_vm5, %v5189_v30 }
 0x75a   :  { %4023 = vmatmul.msk.f32.gmra.mxu3 %vm2017_vm5, %v5181_v13  ;;  %4035 = vmatmul.msk.f32.vlgmr.msrb.gmra.mxu1 %vm2486_vm15, %v2770_v7 }
 0x75b   :  { %4034 = vmatmul.msk.f32.gmra.mxu2 %vm2017_vm5, %v5194_v42 }
 0x762   :  { %4024 = vmatmul.msk.f32.gmra.mxu3 %vm2017_vm5, %v5189_v30 }
 0x76a   :  { %4025 = vmatmul.msk.f32.gmra.mxu3 %vm2017_vm5, %v5194_v42 }
 0x7bd   :  { %v2663_v5 = vpop.f32.mrf.mxu3 }
 0x7bf   :  { %v2735_v25 = vpop.f32.mrf.mxu1 }
 0x7c0   :  { %v2756_v18 = vmul.f32 %v2735_v25, %v5287_v9 }
 0x7c7   :  { %v2738_v55 = vpop.f32.mrf.mxu1 }
 0x7c8   :  { %v2757_v34 = vmul.f32 %v2738_v55, %v5275_v47 }
 0x7cf   :  { %v2741_v20 = vpop.f32.mrf.mxu1 }
 0x7d0   :  { %v2758_v3 = vmul.f32 %v2741_v20, %v5263_v16 }
 0x7d7   :  { %v2791_v33 = vpop.f32.mrf.mxu1 }
 0x7d8   :  { %4036 = vmatpush.msk.msra.mxu1 %vm272_vm0, %v2791_v33 }
 0x7d9   :  { %4037 = vmatmul.msk.f32.vlgmr.msra.gmra.mxu1 %vm2017_vm5, %v5147_v44  ;;  %v2666_v44 = vpop.f32.mrf.mxu3 }
 0x7da   :  { %v2685_v9 = vmul.f32 %v2666_v44, %v5285_v22 }
 0x7dc   :  { %v2764_v54 = vadd.f32 %v2757_v34, %v2685_v9 }
 0x7e1   :  { %4038 = vmatmul.msk.f32.gmra.mxu1 %vm2017_vm5, %v5158_v49  ;;  %v5456_v49 = vld [vmem:[%s5722_s27 + $0x5] ss:$0 sm:$0xff]  ;;  %v2669_v32 = vpop.f32.mrf.mxu3 }
 0x7e2   :  { %v2686_v47 = vmul.f32 %v2669_v32, %v4880_v43  ;;  %v2408_v46 = vadd.f32 %v5456_v49, %v5366_v58 }
 0x7e4   :  { %v2765_v15 = vadd.f32 %v2758_v3, %v2686_v47 }
 0x7e9   :  { %4039 = vmatmul.msk.f32.gmra.mxu1 %vm2017_vm5, %v5164_v56  ;;  %v2684_v56 = vmul.f32 %v2663_v5, %v4862_v26  ;;  %v2405_v26 = vadd.f32 %v5456_v49, %v5364_v41 }
 0x7eb   :  { %v2763_v19 = vadd.f32 %v2756_v18, %v2684_v56  ;;  %v2415_v56 = vadd.f32 %v5456_v49, %v5372_v2 }
 0x7f1   :  { %4040 = vmatmul.msk.f32.gmra.mxu1 %vm2017_vm5, %v5170_v10 }
 0x7f9   :  { %4041 = vmatmul.msk.f32.gmra.mxu1 %vm2017_vm5, %v5181_v13 }
 0x801   :  { %4042 = vmatmul.msk.f32.gmra.mxu1 %vm2017_vm5, %v5189_v30  ;;  %v2403_v30 = vadd.f32 %v5456_v49, %v5362_v4  ;;  %v2744_v4 = vpop.f32.mrf.mxu2 }
 0x802   :  { %v2759_v43 = vmul.f32 %v2744_v4, %v5249_v23  ;;  %v2410_v23 = vadd.f32 %v5456_v49, %v5368_v62 }
 0x809   :  { %4043 = vmatmul.msk.f32.gmra.mxu1 %vm2017_vm5, %v5194_v42  ;;  %v2747_v53 = vpop.f32.mrf.mxu2 }
 0x80a   :  { %v2760_v11 = vmul.f32 %v2747_v53, %v5237_v0  ;;  %v2413_v0 = vadd.f32 %v5456_v49, %v5370_v51 }
 0x811   :  { %v2750_v7 = vpop.f32.mrf.mxu2 }
 0x812   :  { %v2761_v55 = vmul.f32 %v2750_v7, %v5225_v57 }
 0x819   :  { %v2753_v18 = vpop.f32.mrf.mxu2 }
 0x856   :  { %v2814_v10 = vpop.f32.mrf.mxu1 }
 0x857   :  { %v2835_v13 = vmul.f32 %v2814_v10, %v5296_v1  ;;  %v2672_v1 = vpop.f32.mrf.mxu3 }
 0x858   :  { %v2687_v39 = vmul.f32 %v2672_v1, %v5260_v59 }
 0x859   :  { %v2842_v42 = vadd.f32 %v2835_v13, %v2763_v19  ;;  %v2762_v13 = vmul.f32 %v2753_v18, %v5214_v61  ;;  %v2418_v61 = vadd.f32 %v5456_v49, %v5374_v28 }
 0x85a   :  { %v2766_v58 = vadd.f32 %v2759_v43, %v2687_v39 }
 0x85b   :  { %v5463_v21 = vadd.f32 %v2842_v42, %v2403_v30 }
 0x85d   :  { %v2872_v62 = vmul.f32 %v5463_v21, %v5463_v21 }
 0x85e   :  { %v2817_v12 = vpop.f32.mrf.mxu1 }
 0x85f   :  { %v2836_v40 = vmul.f32 %v2817_v12, %v5291_v6  ;;  %v2675_v41 = vpop.f32.mrf.mxu3 }
 0x860   :  { %v2688_v24 = vmul.f32 %v2675_v41, %v4887_v27 }
 0x861   :  { %v2843_v17 = vadd.f32 %v2836_v40, %v2764_v54 }
 0x862   :  { %v2767_v20 = vadd.f32 %v2760_v11, %v2688_v24 }
 0x863   :  { %v5470_v48 = vadd.f32 %v2843_v17, %v2405_v26 }
 0x865   :  { %v2859_v10 = vadd.f32 %v5470_v48, %v5463_v21 }
 0x866   :  { %v2820_v36 = vpop.f32.mrf.mxu1 }
 0x867   :  { %v2837_v22 = vmul.f32 %v2820_v36, %v5281_v63  ;;  %v2678_v60 = vpop.f32.mrf.mxu3 }
 0x868   :  { %v2689_v45 = vmul.f32 %v2678_v60, %v5233_v29  ;;  %v2873_v29 = vmul.f32 %v5470_v48, %v5470_v48 }
 0x869   :  { %v2844_v6 = vadd.f32 %v2837_v22, %v2765_v15 }
 0x86a   :  { %v2768_v27 = vadd.f32 %v2761_v55, %v2689_v45  ;;  %v2879_v32 = vadd.f32 %v2873_v29, %v2872_v62 }
 0x86b   :  { %v5476_v8 = vadd.f32 %v2844_v6, %v2408_v46 }
 0x86d   :  { %v2874_v51 = vmul.f32 %v5476_v8, %v5476_v8  ;;  %v2860_v30 = vadd.f32 %v2859_v10, %v5476_v8 }
 0x86e   :  { %v2823_v35 = vpop.f32.mrf.mxu1 }
 0x86f   :  { %v2838_v63 = vmul.f32 %v2823_v35, %v5270_v37  ;;  %v2681_v44 = vpop.f32.mrf.mxu3  ;;  %v2880_v12 = vadd.f32 %v2879_v32, %v2874_v51  ;;  %v4044_v51 = vld [vmem:[%s5708_s18 + $0x1] sm:$0x1] }
 0x871   :  { %v2845_v33 = vadd.f32 %v2838_v63, %v2766_v58 }
 0x876   :  { %v2826_v16 = vpop.f32.mrf.mxu1 }
 0x877   :  { %v2839_v25 = vmul.f32 %v2826_v16, %v5254_v50  ;;  %v5493_v50 = vadd.f32 %v2845_v33, %v2410_v23 }
 0x879   :  { %v2846_v37 = vadd.f32 %v2839_v25, %v2767_v20  ;;  %v2875_v2 = vmul.f32 %v5493_v50, %v5493_v50  ;;  %v2861_v54 = vadd.f32 %v2860_v30, %v5493_v50  ;;  %v4202_v25 = vld [vmem:[%s5707_s5 + $0x38] sm:$0xff] }
 0x87a   :  { %3098 = vmatpush.bf16.msra.mxu2 %v4202_v25  ;;  %v4198_v30 = vld [vmem:[%s5707_s5 + $0x18] sm:$0xff] }
 0x87b   :  { %v5504_v19 = vadd.f32 %v2846_v37, %v2413_v0  ;;  %v2881_v17 = vadd.f32 %v2880_v12, %v2875_v2  ;;  %v4197_v2 = vld [vmem:[%s5707_s5 + $0x10] sm:$0xff] }
 0x87d   :  { %v2876_v40 = vmul.f32 %v5504_v19, %v5504_v19  ;;  %v2862_v1 = vadd.f32 %v2861_v54, %v5504_v19 }
 0x87e   :  { %v2829_v5 = vpop.f32.mrf.mxu1 }
 0x87f   :  { %v2840_v59 = vmul.f32 %v2829_v5, %v5242_v38  ;;  %v2690_v38 = vmul.f32 %v2681_v44, %v5223_v52  ;;  %v2882_v47 = vadd.f32 %v2881_v17, %v2876_v40  ;;  %v4201_v5 = vld [vmem:[%s5707_s5 + $0x30] sm:$0xff]  ;;  %v4199_v44 = vld [vmem:[%s5707_s5 + $0x20] sm:$0xff] }
 0x880   :  { %3099 = vmatpush.bf16.msra.mxu2 %v4201_v5 }
 0x881   :  { %v2847_v57 = vadd.f32 %v2840_v59, %v2768_v27  ;;  %v2769_v34 = vadd.f32 %v2762_v13, %v2690_v38  ;;  %v4200_v27 = vld [vmem:[%s5707_s5 + $0x28] sm:$0xff] }
 0x883   :  { %v5510_v52 = vadd.f32 %v2847_v57, %v2415_v56  ;;  %v2856_v56 = vld [vmem:[%s5708_s18] sm:$0x1] }
 0x884   :  { %3100 = vmatpush.bf16.msra.mxu2 %v4200_v27 }
 0x885   :  { %v2877_v3 = vmul.f32 %v5510_v52, %v5510_v52 }
 0x886   :  { %v2832_v42 = vpop.f32.mrf.mxu1 }
 0x887   :  { %v2841_v9 = vmul.f32 %v2832_v42, %v5244_v31  ;;  %v2863_v31 = vadd.f32 %v2862_v1, %v5510_v52  ;;  %v2883_v22 = vadd.f32 %v2882_v47, %v2877_v3  ;;  %v4196_v42 = vld [vmem:[%s5707_s5 + $0x8] sm:$0xff]  ;;  %v5570_v1 = vld [vmem:[%s5719_s20] sm:$0xff] }
 0x888   :  { %3101 = vmatpush.bf16.msra.mxu2 %v4199_v44  ;;  %v5576_v47 = vld [vmem:[%s5719_s20 + $0x8] sm:$0xff] }
 0x889   :  { %v2848_v26 = vadd.f32 %v2841_v9, %v2769_v34  ;;  %v4195_v34 = vld [vmem:[%s5707_s5] sm:$0xff] }
 0x88b   :  { %v5521_v4 = vadd.f32 %v2848_v26, %v2418_v61 }
 0x88c   :  { %3102 = vmatpush.bf16.msra.mxu2 %v4198_v30 }
 0x88d   :  { %v2864_v36 = vsel %vm272_vm0, %v5521_v4, 0.0  ;;  %v2878_v15 = vmul.f32 %v5521_v4, %v5521_v4 }
 0x88e   :  { %v2865_v28 = vadd.f32 %v2864_v36, %v2863_v31 }
 0x88f   :  { %v2884_v49 = vsel %vm272_vm0, %v2878_v15, 0.0 }
 0x890   :  { %v2866_v46 = vrot.slane %v2865_v28, 4  ;;  %v2885_v6 = vadd.f32 %v2884_v49, %v2883_v22  ;;  %3103 = vmatpush.bf16.msra.mxu2 %v4197_v2 }
 0x892   :  { %v2867_v41 = vadd.f32 %v2866_v46, %v2865_v28  ;;  %v2886_v53 = vrot.slane %v2885_v6, 4  ;;  %v5584_v46 = vld [vmem:[%s5719_s20 + $0x10] sm:$0xff] }
 0x894   :  { %v2868_v35 = vrot.slane %v2867_v41, 2  ;;  %v2887_v60 = vadd.f32 %v2886_v53, %v2885_v6  ;;  %3104 = vmatpush.bf16.msra.mxu2 %v4196_v42 }
 0x896   :  { %v2869_v16 = vadd.f32 %v2868_v35, %v2867_v41  ;;  %v2888_v39 = vrot.slane %v2887_v60, 2  ;;  %v5590_v41 = vld [vmem:[%s5719_s20 + $0x18] sm:$0xff] }
 0x898   :  { %v2870_v7 = vrot.slane %v2869_v16, 1  ;;  %v2889_v24 = vadd.f32 %v2888_v39, %v2887_v60  ;;  %3105 = vmatpush.bf16.msra.mxu2 %v4195_v34 }
 0x89a   :  { %v2871_v43 = vadd.f32 %v2870_v7, %v2869_v16  ;;  %v2890_v63 = vrot.slane %v2889_v24, 1 }
 0x89c   :  { %2908 = vmatmul.f32.vlgmr.msra.gmra.mxu0 %v2871_v43  ;;  %v2891_v11 = vadd.f32 %v2890_v63, %v2889_v24  ;;  %v5598_v43 = vld [vmem:[%s5719_s20 + $0x20] sm:$0xff]  ;;  %v5604_v63 = vld [vmem:[%s5719_s20 + $0x28] sm:$0xff] }
 0x89d   :  { %2999 = vmatpush.msra.mxu0 %v5353_v14 }
 0x8a4   :  { %2929 = vmatmul.f32.vlgmr.msrb.gmra.mxu0 %v2891_v11 }
 0x8a5   :  { %3199 = vmatpush.xpose.msrb.mxu0 %v5353_v14 }
 0x919   :  { %v2909_v58 = vpop.f32.mrf.mxu0 }
 0x91a   :  { %v2912_v45 = vmul.f32 0.00125, %v2909_v58 }
 0x91c   :  { %v2934_v20 = vmul.f32 %v2912_v45, %v2912_v45 }
 0x921   :  { %v2930_v55 = vpop.f32.mrf.mxu0 }
 0x922   :  { %v2933_v33 = vmul.f32 0.00125, %v2930_v55  ;;  %v5611_v55 = vld [vmem:[%s5719_s20 + $0x30] sm:$0x3] }
 0x924   :  { %v2935_v59 = vsub.f32 %v2933_v33, %v2934_v20 }
 0x926   :  { %v2936_v23 = vadd.f32 1e-05, %v2935_v59 }
 0x928   :  { %4257 = vrsqrt.f32 %v2936_v23  ;;  %vm2943_vm3 = vweird.f32 %v2936_v23 }
 0x92e   :  { %v4258_v37 = vpop.eup %4257 }
 0x92f   :  { %v2938_v0 = vmul.f32 %v4258_v37, %v2936_v23  ;;  %vm2944_vm2 = vweird.f32 %v4258_v37 }
 0x930   :  { %vm2945_vm4 = vmor %vm2943_vm3, %vm2944_vm2 }
 0x931   :  { %v2939_v18 = vmul.f32 %v4258_v37, %v2938_v0 }
 0x933   :  { %v2940_v29 = vmul.f32 0.5, %v2939_v18 }
 0x935   :  { %v2941_v57 = vsub.f32 1.5, %v2940_v29 }
 0x937   :  { %v2942_v38 = vmul.f32 %v4258_v37, %v2941_v57 }
 0x939   :  { %v2946_v62 = vsel %vm2945_vm4, %v4258_v37, %v2942_v38 }
 0x93a   :  { %v2947_v10 = vmul.f32 %v2946_v62, %v2856_v56 }
 0x93c   :  { %v2948_v13 = vmul.f32 %v2947_v10, %v2912_v45  ;;  %4045 = vmatmul.msk.f32.vlgmr.msrb.gmra.mxu3 %vm2486_vm15, %v2947_v10 }
 0x93d   :  { %3239 = vmatpush.msrb.mxu3 %v5353_v14 }
 0x93e   :  { %v2949_v32 = vsub.f32 %v4044_v51, %v2948_v13 }
 0x940   :  { %4046 = vmatmul.msk.f32.vlgmr.msra.gmra.mxu0 %vm2486_vm15, %v2949_v32 }
 0x941   :  { %3270 = vmatpush.msra.mxu0 %v5353_v14 }
 0x9bd   :  { %v3001_v14 = vpop.f32.mrf.mxu0 }
 0x9be   :  { %v3004_v54 = vperm.slane %v3001_v14, 0 }
 0x9bf   :  { %v2970_v9 = vpop.f32.mrf.mxu3 }
 0x9c0   :  { %v2973_v12 = vperm.slane %v2970_v9, 0 }
 0x9c2   :  { %v2974_v40 = vmul.f32 %v2973_v12, %v5463_v21  ;;  %v2975_v61 = vmul.f32 %v2973_v12, %v5470_v48  ;;  %v2976_v48 = vmul.f32 %v2973_v12, %v5476_v8  ;;  %v2977_v22 = vmul.f32 %v2973_v12, %v5493_v50 }
 0x9c3   :  { %v2978_v60 = vmul.f32 %v2973_v12, %v5504_v19  ;;  %v2979_v16 = vmul.f32 %v2973_v12, %v5510_v52  ;;  %v2980_v45 = vmul.f32 %v2973_v12, %v5521_v4  ;;  %v4220_v4 = vld [vmem:[%s5709_s11] ss:$0 sm:$0xff] }
 0x9c4   :  { %v3005_v26 = vadd.f32 %v3004_v54, %v2974_v40  ;;  %v3006_v17 = vadd.f32 %v3004_v54, %v2975_v61  ;;  %v3007_v28 = vadd.f32 %v3004_v54, %v2976_v48  ;;  %v3008_v49 = vadd.f32 %v3004_v54, %v2977_v22 }
 0x9c5   :  { %v3009_v39 = vadd.f32 %v3004_v54, %v2978_v60  ;;  %v3010_v7 = vadd.f32 %v3004_v54, %v2979_v16  ;;  %v3011_v25 = vadd.f32 %v3004_v54, %v2980_v45 }
 0x9c6   :  { %v3012_v3 = vadd.f32 %v5570_v1, %v3005_v26  ;;  %v3013_v31 = vadd.f32 %v5576_v47, %v3006_v17  ;;  %v3014_v6 = vadd.f32 %v5584_v46, %v3007_v28  ;;  %v3015_v53 = vadd.f32 %v5590_v41, %v3008_v49 }
 0x9c7   :  { %v3016_v24 = vadd.f32 %v5598_v43, %v3009_v39  ;;  %v3017_v11 = vadd.f32 %v5604_v63, %v3010_v7  ;;  %v3018_v20 = vadd.f32 %v5611_v55, %v3011_v25 }
 0x9c8   :  { %v3019_v36 = vmax.f32 %v3012_v3, 0.0  ;;  %v3020_v21 = vmax.f32 %v3013_v31, 0.0  ;;  %v3021_v8 = vmax.f32 %v3014_v6, 0.0  ;;  %v3022_v35 = vmax.f32 %v3015_v53, 0.0 }
 0x9c9   :  { %v3023_v19 = vmax.f32 %v3016_v24, 0.0  ;;  %v3024_v58 = vmax.f32 %v3017_v11, 0.0  ;;  %v3025_v33 = vmax.f32 %v3018_v20, 0.0 }
 0x9ca   :  { %v3026_v15 = vpack.c.bf16 %v3020_v21, %v3019_v36  ;;  %v3027_v50 = vpack.c.bf16 %v3022_v35, %v3021_v8 }
 0x9cb   :  { %v3028_v52 = vpack.c.bf16 %v3024_v58, %v3023_v19  ;;  %v3029_v5 = vpack.c.bf16 %v3025_v33, %v3025_v33 }
 0x9cc   :  { %3106 = vmatmul.bf16.vlgmr.msra.gmra.mxu2 %v3026_v15 }
 0x9dc   :  { %3111 = vmatmul.bf16.gmra.mxu2 %v3027_v50 }
 0x9ec   :  { %3116 = vmatmul.bf16.gmra.mxu2 %v3028_v52 }
 0x9fc   :  { %3121 = vmatmul.bf16.gmra.mxu2 %v3029_v5 }
 0xa4f   :  { %v3107_v59 = vpop.f32.mrf.mxu2 }
 0xa50   :  { %v5619_v18 = vadd.f32 %v4220_v4, %v3107_v59 }
 0xa52   :  { %v3143_v62 = vmul.f32 %v5619_v18, %v5619_v18 }
 0xa57   :  { %v3109_v23 = vpop.f32.mrf.mxu2 }
 0xa58   :  { %v5617_v0 = vadd.f32 %v4220_v4, %v3109_v23 }
 0xa5a   :  { %v3144_v57 = vmul.f32 %v5617_v0, %v5617_v0  ;;  %v3130_v10 = vadd.f32 %v5617_v0, %v5619_v18 }
 0xa5c   :  { %v3150_v32 = vadd.f32 %v3144_v57, %v3143_v62  ;;  %v4080_v62 = vld [vmem:[%s5708_s18 + $0x3] sm:$0x1] }
 0xa5f   :  { %v3112_v27 = vpop.f32.mrf.mxu2 }
 0xa60   :  { %v5621_v29 = vadd.f32 %v4220_v4, %v3112_v27 }
 0xa62   :  { %v3145_v51 = vmul.f32 %v5621_v29, %v5621_v29  ;;  %v3131_v30 = vadd.f32 %v3130_v10, %v5621_v29 }
 0xa64   :  { %v3151_v34 = vadd.f32 %v3150_v32, %v3145_v51 }
 0xa67   :  { %v3114_v44 = vpop.f32.mrf.mxu2 }
 0xa68   :  { %v5625_v56 = vadd.f32 %v4220_v4, %v3114_v44 }
 0xa6a   :  { %v3146_v2 = vmul.f32 %v5625_v56, %v5625_v56  ;;  %v3132_v14 = vadd.f32 %v3131_v30, %v5625_v56 }
 0xa6c   :  { %v3152_v12 = vadd.f32 %v3151_v34, %v3146_v2 }
 0xa6f   :  { %v3117_v37 = vpop.f32.mrf.mxu2 }
 0xa70   :  { %v5633_v13 = vadd.f32 %v4220_v4, %v3117_v37  ;;  %v4079_v37 = vld [vmem:[%s5708_s18 + $0x2] sm:$0x1] }
 0xa72   :  { %v3147_v9 = vmul.f32 %v5633_v13, %v5633_v13  ;;  %v3133_v54 = vadd.f32 %v3132_v14, %v5633_v13 }
 0xa74   :  { %v3153_v17 = vadd.f32 %v3152_v12, %v3147_v9 }
 0xa77   :  { %v3119_v38 = vpop.f32.mrf.mxu2 }
 0xa78   :  { %v5638_v42 = vadd.f32 %v4220_v4, %v3119_v38 }
 0xa7a   :  { %v3148_v40 = vmul.f32 %v5638_v42, %v5638_v42  ;;  %v3134_v3 = vadd.f32 %v3133_v54, %v5638_v42 }
 0xa7c   :  { %v3154_v21 = vadd.f32 %v3153_v17, %v3148_v40 }
 0xa7f   :  { %v3122_v61 = vpop.f32.mrf.mxu2 }
 0xa80   :  { %v3123_v26 = vadd.f32 %v4220_v4, %v3122_v61 }
 0xa82   :  { %v3135_v31 = vsel %vm272_vm0, %v3123_v26, 0.0  ;;  %v3149_v36 = vmul.f32 %v3123_v26, %v3123_v26 }
 0xa83   :  { %v3136_v15 = vadd.f32 %v3135_v31, %v3134_v3 }
 0xa84   :  { %v3155_v48 = vsel %vm272_vm0, %v3149_v36, 0.0 }
 0xa85   :  { %v3137_v22 = vrot.slane %v3136_v15, 4  ;;  %v3156_v28 = vadd.f32 %v3155_v48, %v3154_v21 }
 0xa87   :  { %v3138_v49 = vadd.f32 %v3137_v22, %v3136_v15  ;;  %v3157_v6 = vrot.slane %v3156_v28, 4  ;;  %v3124_v53 = vpop.f32.mrf.mxu2 }
 0xa89   :  { %v3139_v8 = vrot.slane %v3138_v49, 2  ;;  %v3158_v35 = vadd.f32 %v3157_v6, %v3156_v28 }
 0xa8b   :  { %v3140_v50 = vadd.f32 %v3139_v8, %v3138_v49  ;;  %v3159_v60 = vrot.slane %v3158_v35, 2 }
 0xa8d   :  { %v3141_v16 = vrot.slane %v3140_v50, 1  ;;  %v3160_v39 = vadd.f32 %v3159_v60, %v3158_v35 }
 0xa8f   :  { %v3142_v7 = vadd.f32 %v3141_v16, %v3140_v50  ;;  %v3161_v24 = vrot.slane %v3160_v39, 1 }
 0xa91   :  { %3179 = vmatmul.f32.vlgmr.msra.gmra.mxu3 %v3142_v7  ;;  %v3162_v11 = vadd.f32 %v3161_v24, %v3160_v39 }
 0xa93   :  { %3200 = vmatmul.f32.vlgmr.msrb.gmra.mxu0 %v3162_v11 }
 0xb10   :  { %v3201_v19 = vpop.f32.mrf.mxu0 }
 0xb11   :  { %v3204_v45 = vmul.f32 0.00125, %v3201_v19 }
 0xb14   :  { %v3180_v58 = vpop.f32.mrf.mxu3 }
 0xb15   :  { %v3183_v52 = vmul.f32 0.00125, %v3180_v58 }
 0xb17   :  { %v3205_v25 = vmul.f32 %v3183_v52, %v3183_v52 }
 0xb19   :  { %v3206_v20 = vsub.f32 %v3204_v45, %v3205_v25 }
 0xb1b   :  { %v3207_v33 = vadd.f32 1e-05, %v3206_v20 }
 0xb1d   :  { %4259 = vrsqrt.f32 %v3207_v33  ;;  %vm3214_vm5 = vweird.f32 %v3207_v33 }
 0xb23   :  { %v4260_v5 = vpop.eup %4259 }
 0xb24   :  { %v3209_v59 = vmul.f32 %v4260_v5, %v3207_v33  ;;  %vm3215_vm0 = vweird.f32 %v4260_v5 }
 0xb25   :  { %vm3216_vm6 = vmor %vm3214_vm5, %vm3215_vm0 }
 0xb26   :  { %v3210_v23 = vmul.f32 %v4260_v5, %v3209_v59 }
 0xb28   :  { %v3211_v27 = vmul.f32 0.5, %v3210_v23 }
 0xb2a   :  { %v3212_v44 = vsub.f32 1.5, %v3211_v27 }
 0xb2c   :  { %v3213_v4 = vmul.f32 %v4260_v5, %v3212_v44 }
 0xb2e   :  { %v3217_v57 = vsel %vm3216_vm6, %v4260_v5, %v3213_v4 }
 0xb2f   :  { %v3218_v38 = vmul.f32 %v4079_v37, %v3217_v57 }
 0xb31   :  { %v3219_v10 = vmul.f32 %v3218_v38, %v3183_v52  ;;  %4081 = vmatmul.msk.f32.vlgmr.msrb.gmra.mxu3 %vm2486_vm15, %v3218_v38 }
 0xb33   :  { %v3220_v51 = vsub.f32 %v4080_v62, %v3219_v10 }
 0xb35   :  { %4082 = vmatmul.msk.f32.vlgmr.msra.gmra.mxu0 %vm2486_vm15, %v3220_v51 }
 0xbb2   :  { %v3272_v32 = vpop.f32.mrf.mxu0 }
 0xbb3   :  { %v3275_v34 = vperm.slane %v3272_v32, 0 }
 0xbb4   :  { %v3241_v30 = vpop.f32.mrf.mxu3 }
 0xbb5   :  { %v3244_v2 = vperm.slane %v3241_v30, 0 }
 0xbb7   :  { %v3245_v14 = vmul.f32 %v3244_v2, %v5619_v18  ;;  %v3246_v9 = vmul.f32 %v3244_v2, %v5617_v0  ;;  %v3247_v12 = vmul.f32 %v3244_v2, %v5621_v29  ;;  %v3248_v54 = vmul.f32 %v3244_v2, %v5625_v56 }
 0xbb8   :  { %v3249_v40 = vmul.f32 %v3244_v2, %v5633_v13  ;;  %v3250_v61 = vmul.f32 %v3244_v2, %v5638_v42  ;;  %v3251_v17 = vmul.f32 %v3244_v2, %v3123_v26 }
 0xbb9   :  { %v3276_v3 = vadd.f32 %v3275_v34, %v3245_v14  ;;  %v3277_v31 = vadd.f32 %v3275_v34, %v3246_v9  ;;  %v3278_v36 = vadd.f32 %v3275_v34, %v3247_v12  ;;  %v3279_v21 = vadd.f32 %v3275_v34, %v3248_v54 }
 0xbba   :  { %v3280_v15 = vadd.f32 %v3275_v34, %v3249_v40  ;;  %v3281_v48 = vadd.f32 %v3275_v34, %v3250_v61  ;;  %v3282_v22 = vadd.f32 %v3275_v34, %v3251_v17 }
 0xbbb   :  { %v3283_v18 = vadd.f32 %v5570_v1, %v3276_v3  ;;  %v3284_v0 = vadd.f32 %v5576_v47, %v3277_v31  ;;  %v3285_v29 = vadd.f32 %v5584_v46, %v3278_v36  ;;  %v3286_v56 = vadd.f32 %v5590_v41, %v3279_v21 }
 0xbbc   :  { %v3287_v13 = vadd.f32 %v5598_v43, %v3280_v15  ;;  %v3288_v42 = vadd.f32 %v5604_v63, %v3281_v48  ;;  %v3289_v26 = vadd.f32 %v5611_v55, %v3282_v22 }
 0xbbd   :  { %v3290_v28 = vmax.f32 %v3283_v18, 0.0  ;;  %v3291_v49 = vmax.f32 %v3284_v0, 0.0  ;;  %v3292_v6 = vmax.f32 %v3285_v29, 0.0  ;;  %v3293_v53 = vmax.f32 %v3286_v56, 0.0 }
 0xbbe   :  { %v3294_v8 = vmax.f32 %v3287_v13, 0.0  ;;  %v3295_v1 = vmax.f32 %v3288_v42, 0.0  ;;  %v3296_v47 = vmax.f32 %v3289_v26, 0.0 }
 0xbbf   :  { %3297 = vst [vmem:[%s5710_s19] sm:$0xff] %v3290_v28 }
 0xbc0   :  { %3298 = vst [vmem:[%s5710_s19 + $0x8] sm:$0xff] %v3291_v49 }
 0xbc1   :  { %3299 = vst [vmem:[%s5710_s19 + $0x10] sm:$0xff] %v3292_v6 }
 0xbc2   :  { %3300 = vst [vmem:[%s5710_s19 + $0x18] sm:$0xff] %v3293_v53 }
 0xbc3   :  { %3301 = vst [vmem:[%s5710_s19 + $0x20] sm:$0xff] %v3294_v8 }
 0xbc4   :  { %3302 = vst [vmem:[%s5710_s19 + $0x28] sm:$0xff] %v3295_v1 }
 0xbc5   :  { %3303 = vst [vmem:[%s5710_s19 + $0x30] sm:$0x3] %v3296_v47 }

</bundles_post_ra>
